<compile_context>
chip_gen: v7x
topology: tpu7x:2x2x1
jax: 0.10.0
libtpu: 0.0.40
codegen_flags: <defaults>
</compile_context>

<pallas_src>
from math import ceil

import jax
import jax.numpy as jnp
from jax import lax
from jax.experimental import pallas as pl
from jax.experimental.pallas import tpu as pltpu


# ----------------------------------------------------------------------------------
# Parameter construction (deterministic, synthetic)
# ----------------------------------------------------------------------------------
class _Init:
    def __init__(self, key):
        self._key = key

    def normal(self, shape, scale=0.1):
        self._key, sub = jax.random.split(self._key)
        return (scale * jax.random.normal(sub, shape)).astype(jnp.float32)


def _make_bn(init, c, eps=1e-5):
    # Eval-mode BatchNorm1d folded to a per-channel affine (running_mean=0, running_var=1).
    # TODO(synk): training-mode BatchNorm (batch statistics) not implemented; real
    # checkpoints must fold their actual running stats into scale/shift here.
    gamma = 1.0 + init.normal((1, c))
    beta = init.normal((1, c))
    running_mean = jnp.zeros((1, c), jnp.float32)
    running_var = jnp.ones((1, c), jnp.float32)
    scale = gamma / jnp.sqrt(running_var + eps)
    shift = beta - running_mean * scale
    return {"scale": scale, "shift": shift}


def _make_sage_gnn(init, din, dhid, dout, lin):
    dims = [(din, dhid), (dhid, dhid), (dhid, dout)]
    convs = [
        {
            "wrel": init.normal((i, o)),    # PyG DenseSAGEConv.lin_rel (no bias)
            "wroot": init.normal((i, o)),   # PyG DenseSAGEConv.lin_root
            "broot": init.normal((1, o)),   # lin_root bias
        }
        for (i, o) in dims
    ]
    bns = [_make_bn(init, o) for (_, o) in dims]
    p = {"convs": convs, "bns": bns}
    if lin:
        p["lin_w"] = init.normal((2 * dhid + dout, dout))
        p["lin_b"] = init.normal((1, dout))
    return p


def make_params(key, din, glob_din, *, base_dhid=8, factor=2.0, pooling_ratio=0.25,
                glob_dout=8, rnn_dout=16, num_classes=3):
    init = _Init(key)
    dhid1, dhid2, dhid3 = [max(1, int(base_dhid * factor ** i)) for i in range(3)]
    n1 = ceil(pooling_ratio * 22)       # clusters after pool 1
    n2 = ceil(pooling_ratio * n1)       # clusters after pool 2

    params = {
        "gnn1_pool": _make_sage_gnn(init, din, dhid1, n1, True),
        "gnn1_embed": _make_sage_gnn(init, din, dhid1, dhid1, False),
        "gnn2_pool": _make_sage_gnn(init, 3 * dhid1, dhid2, n2, True),
        "gnn2_embed": _make_sage_gnn(init, 3 * dhid1, dhid2, dhid2, False),
        "gnn3_embed": _make_sage_gnn(init, 3 * dhid2, dhid3, dhid3, False),
    }
    rnn_din = 3 * dhid3 + glob_dout     # cfg.neck.rnn_din
    params["neck_head"] = {
        "glob_w": init.normal((glob_din, glob_dout)),
        "glob_b": init.normal((1, glob_dout)),
        # GRUCell weights, gate order [reset, update, new] (PyTorch convention).
        # NOTE: stored (in, 3H) and applied as x @ W; real torch GRUCell weights are
        # (3H, in) and must be transposed when porting a trained checkpoint.
        "wih": init.normal((rnn_din, 3 * rnn_dout)),
        "whh": init.normal((rnn_dout, 3 * rnn_dout)),
        "bih": init.normal((1, 3 * rnn_dout)),
        "bhh": init.normal((1, 3 * rnn_dout)),
        # head: simple Linear(rnn_dout, num_classes)
        # TODO(synk): the module's `head` is a plug-in nn.Module; a Linear stands in.
        "head_w": init.normal((rnn_dout, num_classes)),
        "head_b": init.normal((1, num_classes)),
    }
    params["rnn_dout"] = rnn_dout
    return params


# ----------------------------------------------------------------------------------
# Host-side weight packing: one lane-padded (R, 128) slab + static-offset table.
# Wrel / Wroot of every conv are row-stacked so the conv is one MXU matmul.
# Done ONCE in the factory, never per forward call.
# ----------------------------------------------------------------------------------
_LANES = 128
_GNN_NAMES = ("gnn1_pool", "gnn1_embed", "gnn2_pool", "gnn2_embed", "gnn3_embed")


def pack_weights(params):
    entries = []
    for gname in _GNN_NAMES:
        p = params[gname]
        for i in range(3):
            c = p["convs"][i]
            wrr = jnp.concatenate([c["wrel"], c["wroot"]], axis=0)   # (2*Cin, Cout)
            entries.append((f"{gname}/c{i}/wrr", wrr))
            entries.append((f"{gname}/c{i}/broot", c["broot"]))
            entries.append((f"{gname}/c{i}/scale", p["bns"][i]["scale"]))
            entries.append((f"{gname}/c{i}/shift", p["bns"][i]["shift"]))
        if "lin_w" in p:
            entries.append((f"{gname}/lin_w", p["lin_w"]))
            entries.append((f"{gname}/lin_b", p["lin_b"]))
    nh = params["neck_head"]
    for k in ("glob_w", "glob_b", "wih", "whh", "bih", "bhh", "head_w", "head_b"):
        entries.append((f"neck/{k}", nh[k]))

    offsets = {}     # name -> (row_offset, rows, cols)   (all static Python ints)
    blocks = []
    r = 0
    for name, arr in entries:
        arr = jnp.asarray(arr, jnp.float32)
        rr, cc = int(arr.shape[0]), int(arr.shape[1])
        offsets[name] = (r, rr, cc)
        padded = jnp.pad(arr, ((0, (-rr) % 8), (0, _LANES - cc)))   # 8-aligned rows
        blocks.append(padded)
        r += padded.shape[0]
    slab = jnp.concatenate(blocks, axis=0)   # (R, 128)
    return slab, offsets


# ----------------------------------------------------------------------------------
# Kernel body: one (graph b, timestep t) per grid point, full forward fused.
# ----------------------------------------------------------------------------------
def _build_kernel(offsets, H):

    def kernel(x_ref, adj_ref, mask_ref, u_ref, h0_ref, slab_ref, logits_ref, hout_ref):
        t = pl.program_id(1)

        def W(name):
            r0, rr, cc = offsets[name]
            return slab_ref[r0:r0 + rr, 0:cc]          # static slice of resident slab

        def mm(a, b):
            return jnp.dot(a, b, preferred_element_type=jnp.float32)

        def dotT(a, b):
            # a^T @ b without materializing the transpose (contract dim 0 with dim 0)
            return lax.dot_general(a, b, (((0,), (0,)), ((), ())),
                                   preferred_element_type=jnp.float32)

        def recip(v):
            return pl.reciprocal(v, approx=True)       # EUP slot, off the VALU path

        def inv_degree(adj):
            return recip(jnp.maximum(jnp.sum(adj, axis=-1, keepdims=True), 1.0))

        def softmax_last(v):
            m = jnp.max(v, axis=-1, keepdims=True)
            e = jnp.exp(v - m)
            return e * recip(jnp.sum(e, axis=-1, keepdims=True))

        def sage_conv(x, adj, inv_deg, m, pre):
            # PyG DenseSAGEConv: out = lin_rel((A x)/deg) + lin_root(x); normalize; mask.
            # Fused as a single MXU matmul: [agg | x] @ [Wrel ; Wroot] + b.
            agg = mm(adj, x) * inv_deg
            out = mm(jnp.concatenate([agg, x], axis=-1), W(f"{pre}/wrr")) + W(f"{pre}/broot")
            # F.normalize(p=2, dim=-1, eps=1e-12)  ==  x / sqrt(max(|x|^2, 1e-24))
            out = out * lax.rsqrt(
                jnp.maximum(jnp.sum(out * out, axis=-1, keepdims=True), 1e-24))
            if m is not None:
                out = out * m                          # node mask
            out = out * W(f"{pre}/scale") + W(f"{pre}/shift")   # eval-mode BatchNorm
            return jnp.maximum(out, 0.0)               # ReLU

        def sage_gnn(x, adj, inv_deg, m, gname, has_lin):
            x1 = sage_conv(x, adj, inv_deg, m, f"{gname}/c0")
            x2 = sage_conv(x1, adj, inv_deg, m, f"{gname}/c1")
            x3 = sage_conv(x2, adj, inv_deg, m, f"{gname}/c2")
            xc = jnp.concatenate([x1, x2, x3], axis=-1)          # lane concat (<=128)
            if not has_lin:
                return xc
            return jnp.maximum(mm(xc, W(f"{gname}/lin_w")) + W(f"{gname}/lin_b"), 0.0)

        def diff_pool(x, adj, s, m):
            # aux link/entropy losses are discarded by the module -> not computed
            ss = softmax_last(s)
            if m is not None:
                ss = ss * m
                x = x * m
            x_out = dotT(ss, x)                        # s^T x
            adj_out = mm(dotT(ss, adj), ss)            # s^T A s
            return x_out, adj_out

        # ----- one graph (b) at one timestep (t) -----
        x0 = x_ref[...]                                # (N, din)
        adj0 = adj_ref[...]                            # (N, N)
        m0 = mask_ref[...]                             # (N, 1)
        inv0 = inv_degree(adj0)

        # level 1
        s1 = sage_gnn(x0, adj0, inv0, m0, "gnn1_pool", True)
        e1 = sage_gnn(x0, adj0, inv0, m0, "gnn1_embed", False)
        x1, adj1 = diff_pool(e1, adj0, s1, m0)

        # level 2 (no mask after pooling)
        inv1 = inv_degree(adj1)
        s2 = sage_gnn(x1, adj1, inv1, None, "gnn2_pool", True)
        e2 = sage_gnn(x1, adj1, inv1, None, "gnn2_embed", False)
        x2, adj2 = diff_pool(e2, adj1, s2, None)

        # level 3
        inv2 = inv_degree(adj2)
        x3 = sage_gnn(x2, adj2, inv2, None, "gnn3_embed", False)   # (n2, 3*dhid3)

        # readout ('mean') + global projection + GRUCell + head
        graph_emb = jnp.mean(x3, axis=0, keepdims=True)             # (1, 3*dhid3)
        glob = jnp.maximum(mm(u_ref[...], W("neck/glob_w")) + W("neck/glob_b"), 0.0)
        fused = jnp.concatenate([graph_emb, glob], axis=-1)         # (1, rnn_din)

        # GRU hidden state is carried in the resident h-output block across t.
        @pl.when(t == 0)
        def _():
            hout_ref[...] = h0_ref[...]

        h_prev = hout_ref[...]                                      # (1, H)
        gi = mm(fused, W("neck/wih")) + W("neck/bih")
        gh = mm(h_prev, W("neck/whh")) + W("neck/bhh")
        r_g = jax.nn.sigmoid(gi[:, 0:H] + gh[:, 0:H])
        z_g = jax.nn.sigmoid(gi[:, H:2 * H] + gh[:, H:2 * H])
        n_g = jnp.tanh(gi[:, 2 * H:3 * H] + r_g * gh[:, 2 * H:3 * H])
        h_new = (1.0 - z_g) * n_g + z_g * h_prev

        hout_ref[...] = h_new
        logits_ref[...] = mm(h_new, W("neck/head_w")) + W("neck/head_b")

    return kernel


# ----------------------------------------------------------------------------------
# Factory: pack weights + build the pallas_call ONCE, return a cached jitted forward.
# ----------------------------------------------------------------------------------
def make_hierarchical_gnn(params, *, seq_len, batch, num_nodes, din, glob_din):
    T, B, N = seq_len, batch, num_nodes
    H = params["rnn_dout"]
    ncls = int(params["neck_head"]["head_b"].shape[1])

    slab, offsets = pack_weights(params)
    R = int(slab.shape[0])
    kernel = _build_kernel(offsets, H)

    call = pl.pallas_call(
        kernel,
        out_shape=(jax.ShapeDtypeStruct((T, B, 1, ncls), jnp.float32),
                   jax.ShapeDtypeStruct((B, 1, H), jnp.float32)),
        grid_spec=pltpu.PrefetchScalarGridSpec(
            num_scalar_prefetch=0,
            grid=(B, T),                                   # B parallel (v7x), T carried
            in_specs=[
                pl.BlockSpec((None, None, N, din), lambda b, t: (t, b, 0, 0)),   # x
                pl.BlockSpec((None, None, N, N), lambda b, t: (t, b, 0, 0)),     # adj
                pl.BlockSpec((None, None, N, 1), lambda b, t: (t, b, 0, 0)),     # mask
                pl.BlockSpec((None, None, 1, glob_din), lambda b, t: (t, b, 0, 0)),  # u
                pl.BlockSpec((None, 1, H), lambda b, t: (b, 0, 0)),              # prev_h
                pl.BlockSpec((R, _LANES), lambda b, t: (0, 0)),                  # slab
            ],
            out_specs=[
                pl.BlockSpec((None, None, 1, ncls), lambda b, t: (t, b, 0, 0)),  # logits
                pl.BlockSpec((None, 1, H), lambda b, t: (b, 0, 0)),              # h (carried)
            ],
        ),
        compiler_params=pltpu.CompilerParams(
            dimension_semantics=("parallel", "arbitrary")),
    )

    @jax.jit
    def _forward(x, adj, mask, u, prev_h, slab_):
        x = x.astype(jnp.float32)
        adj = adj.astype(jnp.float32)
        mask4 = mask.astype(jnp.float32).reshape(T, B, N, 1)
        u4 = u.astype(jnp.float32).reshape(T, B, 1, glob_din)
        h0 = prev_h.astype(jnp.float32).reshape(B, 1, H)
        logits4, h3 = call(x, adj, mask4, u4, h0, slab_)
        return logits4.reshape(T, B, ncls), h3.reshape(B, H)

    def forward(x, adj, mask, u, prev_h=None):
        if prev_h is None:
            prev_h = jnp.zeros((B, H), jnp.float32)
        logits, h = _forward(x, adj, mask, u, prev_h, slab)
        return logits, h, None      # GRU cell neck -> c is None (matches torch forward)

    return forward


# ----------------------------------------------------------------------------------
# Demo
# ----------------------------------------------------------------------------------
if __name__ == "__main__":
    key = jax.random.PRNGKey(0)
    T, B, N, din, glob_din = 4, 2, 22, 8, 6   # 22 players per soccer graph

    kx, ka, ku, kp = jax.random.split(key, 4)
    x = jax.random.normal(kx, (T, B, N, din), dtype=jnp.float32)
    # dense symmetric 0/1 adjacency (stands in for to_dense_adj(edge_index, batch))
    a = (jax.random.uniform(ka, (T, B, N, N)) < 0.3).astype(jnp.float32)
    adj = jnp.maximum(a, jnp.swapaxes(a, 2, 3))
    u = jax.random.normal(ku, (T, B, glob_din), dtype=jnp.float32)
    mask = jnp.ones((T, B, N, 1), dtype=jnp.float32)      # full graphs -> all-true mask

    params = make_params(kp, din, glob_din)
    forward = make_hierarchical_gnn(params, seq_len=T, batch=B, num_nodes=N,
                                    din=din, glob_din=glob_din)

    logits, h, c = forward(x, adj, mask, u, None)
    jax.block_until_ready((logits, h))
    assert logits.shape == (T, B, 3) and h.shape == (B, params["rnn_dout"]) and c is None
    assert bool(jnp.all(jnp.isfinite(logits))) and bool(jnp.all(jnp.isfinite(h)))

    # Second call reuses the cached compilation / packed slab (no host-side re-packing).
    logits2, h2, _ = forward(x, adj, mask, u, h)
    jax.block_until_ready((logits2, h2))

    print("KERNEL_OK")
</pallas_src>

<mosaic_0001>
module attributes {stable_mosaic.version = 11 : i64} {
  func.func @kernel(%arg0: i32, %arg1: i32, %arg2: memref<1x1x22x8xf32, #tpu.memory_space<vmem>>, %arg3: memref<1x1x22x22xf32, #tpu.memory_space<vmem>>, %arg4: memref<1x1x22x1xf32, #tpu.memory_space<vmem>>, %arg5: memref<1x1x1x6xf32, #tpu.memory_space<vmem>>, %arg6: memref<1x1x16xf32, #tpu.memory_space<vmem>>, %arg7: memref<1160x128xf32, #tpu.memory_space<vmem>>, %arg8: memref<1x1x1x3xf32, #tpu.memory_space<vmem>>, %arg9: memref<1x1x16xf32, #tpu.memory_space<vmem>>) attributes {dimension_semantics = [#tpu.dimension_semantics<parallel>, #tpu.dimension_semantics<arbitrary>], iteration_bounds = array<i64: 2, 4>, scalar_prefetch = 0 : i64, scratch_operands = 0 : i64, tpu.core_type = #tpu.core_type<tc>, window_params = [{transform_indices = @transform_0, window_bounds = array<i64: 1, 1, 22, 8>}, {transform_indices = @transform_1, window_bounds = array<i64: 1, 1, 22, 22>}, {transform_indices = @transform_2, window_bounds = array<i64: 1, 1, 22, 1>}, {transform_indices = @transform_3, window_bounds = array<i64: 1, 1, 1, 6>}, {transform_indices = @transform_4, window_bounds = array<i64: 1, 1, 16>}, {pipeline_mode = #tpu.pipeline_mode<synchronous>, transform_indices = @transform_5, window_bounds = array<i64: 1160, 128>}, {transform_indices = @transform_6, window_bounds = array<i64: 1, 1, 1, 3>}, {transform_indices = @transform_7, window_bounds = array<i64: 1, 1, 16>}]} {
    %c0 = arith.constant 0 : index
    %c0_0 = arith.constant 0 : index
    %c0_1 = arith.constant 0 : index
    %c0_2 = arith.constant 0 : index
    %0 = vector.load %arg2[%c0, %c0_0, %c0_1, %c0_2] : memref<1x1x22x8xf32, #tpu.memory_space<vmem>>, vector<1x1x22x8xf32>
    %1 = vector.shape_cast %0 : vector<1x1x22x8xf32> to vector<22x8xf32>
    %c0_3 = arith.constant 0 : index
    %c0_4 = arith.constant 0 : index
    %c0_5 = arith.constant 0 : index
    %c0_6 = arith.constant 0 : index
    %2 = vector.load %arg3[%c0_3, %c0_4, %c0_5, %c0_6] : memref<1x1x22x22xf32, #tpu.memory_space<vmem>>, vector<1x1x22x22xf32>
    %3 = vector.shape_cast %2 : vector<1x1x22x22xf32> to vector<22x22xf32>
    %c0_7 = arith.constant 0 : index
    %c0_8 = arith.constant 0 : index
    %c0_9 = arith.constant 0 : index
    %c0_10 = arith.constant 0 : index
    %4 = vector.load %arg4[%c0_7, %c0_8, %c0_9, %c0_10] : memref<1x1x22x1xf32, #tpu.memory_space<vmem>>, vector<1x1x22x1xf32>
    %5 = vector.shape_cast %4 : vector<1x1x22x1xf32> to vector<22x1xf32>
    %cst = arith.constant dense<0.000000e+00> : vector<22xf32>
    %6 = vector.multi_reduction <add>, %3, %cst [1] : vector<22x22xf32> to vector<22xf32>
    %7 = vector.shape_cast %6 : vector<22xf32> to vector<22x1xf32>
    %cst_11 = arith.constant 1.000000e+00 : f32
    %8 = vector.broadcast %cst_11 : f32 to vector<22x1xf32>
    %9 = arith.maximumf %7, %8 : vector<22x1xf32>
    %10 = tpu.reciprocal %9 {approx = true} : vector<22x1xf32> -> vector<22x1xf32>
    %cst_12 = arith.constant dense<0.000000e+00> : vector<22x8xf32>
    %11 = tpu.matmul %3, %1, %cst_12 {dimension_numbers = #tpu.dot_dimension_numbers<[1], [0], [0], [1], [0, 0, 1, 1], [], []>} : vector<22x22xf32>, vector<22x8xf32>, vector<22x8xf32> -> vector<22x8xf32>
    %12 = vector.broadcast %10 : vector<22x1xf32> to vector<22x8xf32>
    %13 = arith.mulf %11, %12 : vector<22x8xf32>
    %14 = tpu.concatenate %13, %1 in 1 : vector<22x8xf32>, vector<22x8xf32> -> vector<22x16xf32>
    %c0_13 = arith.constant 0 : index
    %c0_14 = arith.constant 0 : index
    %15 = vector.load %arg7[%c0_13, %c0_14] : memref<1160x128xf32, #tpu.memory_space<vmem>>, vector<16x8xf32>
    %cst_15 = arith.constant dense<0.000000e+00> : vector<22x8xf32>
    %16 = tpu.matmul %14, %15, %cst_15 {dimension_numbers = #tpu.dot_dimension_numbers<[1], [0], [0], [1], [0, 0, 1, 1], [], []>} : vector<22x16xf32>, vector<16x8xf32>, vector<22x8xf32> -> vector<22x8xf32>
    %c16 = arith.constant 16 : index
    %c0_16 = arith.constant 0 : index
    %17 = vector.load %arg7[%c16, %c0_16] : memref<1160x128xf32, #tpu.memory_space<vmem>>, vector<1x8xf32>
    %18 = vector.broadcast %17 : vector<1x8xf32> to vector<22x8xf32>
    %19 = arith.addf %16, %18 : vector<22x8xf32>
    %20 = arith.mulf %19, %19 : vector<22x8xf32>
    %cst_17 = arith.constant dense<0.000000e+00> : vector<22xf32>
    %21 = vector.multi_reduction <add>, %20, %cst_17 [1] : vector<22x8xf32> to vector<22xf32>
    %22 = vector.shape_cast %21 : vector<22xf32> to vector<22x1xf32>
    %cst_18 = arith.constant 1.000000e-24 : f32
    %23 = vector.broadcast %cst_18 : f32 to vector<22x1xf32>
    %24 = arith.maximumf %22, %23 : vector<22x1xf32>
    %25 = math.rsqrt %24 : vector<22x1xf32>
    %26 = vector.broadcast %25 : vector<22x1xf32> to vector<22x8xf32>
    %27 = arith.mulf %19, %26 : vector<22x8xf32>
    %28 = vector.broadcast %5 : vector<22x1xf32> to vector<22x8xf32>
    %29 = arith.mulf %27, %28 : vector<22x8xf32>
    %c24 = arith.constant 24 : index
    %c0_19 = arith.constant 0 : index
    %30 = vector.load %arg7[%c24, %c0_19] : memref<1160x128xf32, #tpu.memory_space<vmem>>, vector<1x8xf32>
    %31 = vector.broadcast %30 : vector<1x8xf32> to vector<22x8xf32>
    %32 = arith.mulf %29, %31 : vector<22x8xf32>
    %c32 = arith.constant 32 : index
    %c0_20 = arith.constant 0 : index
    %33 = vector.load %arg7[%c32, %c0_20] : memref<1160x128xf32, #tpu.memory_space<vmem>>, vector<1x8xf32>
    %34 = vector.broadcast %33 : vector<1x8xf32> to vector<22x8xf32>
    %35 = arith.addf %32, %34 : vector<22x8xf32>
    %cst_21 = arith.constant 0.000000e+00 : f32
    %36 = vector.broadcast %cst_21 : f32 to vector<22x8xf32>
    %37 = arith.maximumf %35, %36 : vector<22x8xf32>
    %cst_22 = arith.constant dense<0.000000e+00> : vector<22x8xf32>
    %38 = tpu.matmul %3, %37, %cst_22 {dimension_numbers = #tpu.dot_dimension_numbers<[1], [0], [0], [1], [0, 0, 1, 1], [], []>} : vector<22x22xf32>, vector<22x8xf32>, vector<22x8xf32> -> vector<22x8xf32>
    %39 = vector.broadcast %10 : vector<22x1xf32> to vector<22x8xf32>
    %40 = arith.mulf %38, %39 : vector<22x8xf32>
    %41 = tpu.concatenate %40, %37 in 1 : vector<22x8xf32>, vector<22x8xf32> -> vector<22x16xf32>
    %c40 = arith.constant 40 : index
    %c0_23 = arith.constant 0 : index
    %42 = vector.load %arg7[%c40, %c0_23] : memref<1160x128xf32, #tpu.memory_space<vmem>>, vector<16x8xf32>
    %cst_24 = arith.constant dense<0.000000e+00> : vector<22x8xf32>
    %43 = tpu.matmul %41, %42, %cst_24 {dimension_numbers = #tpu.dot_dimension_numbers<[1], [0], [0], [1], [0, 0, 1, 1], [], []>} : vector<22x16xf32>, vector<16x8xf32>, vector<22x8xf32> -> vector<22x8xf32>
    %c56 = arith.constant 56 : index
    %c0_25 = arith.constant 0 : index
    %44 = vector.load %arg7[%c56, %c0_25] : memref<1160x128xf32, #tpu.memory_space<vmem>>, vector<1x8xf32>
    %45 = vector.broadcast %44 : vector<1x8xf32> to vector<22x8xf32>
    %46 = arith.addf %43, %45 : vector<22x8xf32>
    %47 = arith.mulf %46, %46 : vector<22x8xf32>
    %cst_26 = arith.constant dense<0.000000e+00> : vector<22xf32>
    %48 = vector.multi_reduction <add>, %47, %cst_26 [1] : vector<22x8xf32> to vector<22xf32>
    %49 = vector.shape_cast %48 : vector<22xf32> to vector<22x1xf32>
    %cst_27 = arith.constant 1.000000e-24 : f32
    %50 = vector.broadcast %cst_27 : f32 to vector<22x1xf32>
    %51 = arith.maximumf %49, %50 : vector<22x1xf32>
    %52 = math.rsqrt %51 : vector<22x1xf32>
    %53 = vector.broadcast %52 : vector<22x1xf32> to vector<22x8xf32>
    %54 = arith.mulf %46, %53 : vector<22x8xf32>
    %55 = vector.broadcast %5 : vector<22x1xf32> to vector<22x8xf32>
    %56 = arith.mulf %54, %55 : vector<22x8xf32>
    %c64 = arith.constant 64 : index
    %c0_28 = arith.constant 0 : index
    %57 = vector.load %arg7[%c64, %c0_28] : memref<1160x128xf32, #tpu.memory_space<vmem>>, vector<1x8xf32>
    %58 = vector.broadcast %57 : vector<1x8xf32> to vector<22x8xf32>
    %59 = arith.mulf %56, %58 : vector<22x8xf32>
    %c72 = arith.constant 72 : index
    %c0_29 = arith.constant 0 : index
    %60 = vector.load %arg7[%c72, %c0_29] : memref<1160x128xf32, #tpu.memory_space<vmem>>, vector<1x8xf32>
    %61 = vector.broadcast %60 : vector<1x8xf32> to vector<22x8xf32>
    %62 = arith.addf %59, %61 : vector<22x8xf32>
    %cst_30 = arith.constant 0.000000e+00 : f32
    %63 = vector.broadcast %cst_30 : f32 to vector<22x8xf32>
    %64 = arith.maximumf %62, %63 : vector<22x8xf32>
    %cst_31 = arith.constant dense<0.000000e+00> : vector<22x8xf32>
    %65 = tpu.matmul %3, %64, %cst_31 {dimension_numbers = #tpu.dot_dimension_numbers<[1], [0], [0], [1], [0, 0, 1, 1], [], []>} : vector<22x22xf32>, vector<22x8xf32>, vector<22x8xf32> -> vector<22x8xf32>
    %66 = vector.broadcast %10 : vector<22x1xf32> to vector<22x8xf32>
    %67 = arith.mulf %65, %66 : vector<22x8xf32>
    %68 = tpu.concatenate %67, %64 in 1 : vector<22x8xf32>, vector<22x8xf32> -> vector<22x16xf32>
    %c80 = arith.constant 80 : index
    %c0_32 = arith.constant 0 : index
    %69 = vector.load %arg7[%c80, %c0_32] : memref<1160x128xf32, #tpu.memory_space<vmem>>, vector<16x6xf32>
    %cst_33 = arith.constant dense<0.000000e+00> : vector<22x6xf32>
    %70 = tpu.matmul %68, %69, %cst_33 {dimension_numbers = #tpu.dot_dimension_numbers<[1], [0], [0], [1], [0, 0, 1, 1], [], []>} : vector<22x16xf32>, vector<16x6xf32>, vector<22x6xf32> -> vector<22x6xf32>
    %c96 = arith.constant 96 : index
    %c0_34 = arith.constant 0 : index
    %71 = vector.load %arg7[%c96, %c0_34] : memref<1160x128xf32, #tpu.memory_space<vmem>>, vector<1x6xf32>
    %72 = vector.broadcast %71 : vector<1x6xf32> to vector<22x6xf32>
    %73 = arith.addf %70, %72 : vector<22x6xf32>
    %74 = arith.mulf %73, %73 : vector<22x6xf32>
    %cst_35 = arith.constant dense<0.000000e+00> : vector<22xf32>
    %75 = vector.multi_reduction <add>, %74, %cst_35 [1] : vector<22x6xf32> to vector<22xf32>
    %76 = vector.shape_cast %75 : vector<22xf32> to vector<22x1xf32>
    %cst_36 = arith.constant 1.000000e-24 : f32
    %77 = vector.broadcast %cst_36 : f32 to vector<22x1xf32>
    %78 = arith.maximumf %76, %77 : vector<22x1xf32>
    %79 = math.rsqrt %78 : vector<22x1xf32>
    %80 = vector.broadcast %79 : vector<22x1xf32> to vector<22x6xf32>
    %81 = arith.mulf %73, %80 : vector<22x6xf32>
    %82 = vector.broadcast %5 : vector<22x1xf32> to vector<22x6xf32>
    %83 = arith.mulf %81, %82 : vector<22x6xf32>
    %c104 = arith.constant 104 : index
    %c0_37 = arith.constant 0 : index
    %84 = vector.load %arg7[%c104, %c0_37] : memref<1160x128xf32, #tpu.memory_space<vmem>>, vector<1x6xf32>
    %85 = vector.broadcast %84 : vector<1x6xf32> to vector<22x6xf32>
    %86 = arith.mulf %83, %85 : vector<22x6xf32>
    %c112 = arith.constant 112 : index
    %c0_38 = arith.constant 0 : index
    %87 = vector.load %arg7[%c112, %c0_38] : memref<1160x128xf32, #tpu.memory_space<vmem>>, vector<1x6xf32>
    %88 = vector.broadcast %87 : vector<1x6xf32> to vector<22x6xf32>
    %89 = arith.addf %86, %88 : vector<22x6xf32>
    %cst_39 = arith.constant 0.000000e+00 : f32
    %90 = vector.broadcast %cst_39 : f32 to vector<22x6xf32>
    %91 = arith.maximumf %89, %90 : vector<22x6xf32>
    %92 = tpu.concatenate %37, %64, %91 in 1 : vector<22x8xf32>, vector<22x8xf32>, vector<22x6xf32> -> vector<22x22xf32>
    %c120 = arith.constant 120 : index
    %c0_40 = arith.constant 0 : index
    %93 = vector.load %arg7[%c120, %c0_40] : memref<1160x128xf32, #tpu.memory_space<vmem>>, vector<22x6xf32>
    %cst_41 = arith.constant dense<0.000000e+00> : vector<22x6xf32>
    %94 = tpu.matmul %92, %93, %cst_41 {dimension_numbers = #tpu.dot_dimension_numbers<[1], [0], [0], [1], [0, 0, 1, 1], [], []>} : vector<22x22xf32>, vector<22x6xf32>, vector<22x6xf32> -> vector<22x6xf32>
    %c144 = arith.constant 144 : index
    %c0_42 = arith.constant 0 : index
    %95 = vector.load %arg7[%c144, %c0_42] : memref<1160x128xf32, #tpu.memory_space<vmem>>, vector<1x6xf32>
    %96 = vector.broadcast %95 : vector<1x6xf32> to vector<22x6xf32>
    %97 = arith.addf %94, %96 : vector<22x6xf32>
    %cst_43 = arith.constant 0.000000e+00 : f32
    %98 = vector.broadcast %cst_43 : f32 to vector<22x6xf32>
    %99 = arith.maximumf %97, %98 : vector<22x6xf32>
    %cst_44 = arith.constant dense<0.000000e+00> : vector<22x8xf32>
    %100 = tpu.matmul %3, %1, %cst_44 {dimension_numbers = #tpu.dot_dimension_numbers<[1], [0], [0], [1], [0, 0, 1, 1], [], []>} : vector<22x22xf32>, vector<22x8xf32>, vector<22x8xf32> -> vector<22x8xf32>
    %101 = vector.broadcast %10 : vector<22x1xf32> to vector<22x8xf32>
    %102 = arith.mulf %100, %101 : vector<22x8xf32>
    %103 = tpu.concatenate %102, %1 in 1 : vector<22x8xf32>, vector<22x8xf32> -> vector<22x16xf32>
    %c152 = arith.constant 152 : index
    %c0_45 = arith.constant 0 : index
    %104 = vector.load %arg7[%c152, %c0_45] : memref<1160x128xf32, #tpu.memory_space<vmem>>, vector<16x8xf32>
    %cst_46 = arith.constant dense<0.000000e+00> : vector<22x8xf32>
    %105 = tpu.matmul %103, %104, %cst_46 {dimension_numbers = #tpu.dot_dimension_numbers<[1], [0], [0], [1], [0, 0, 1, 1], [], []>} : vector<22x16xf32>, vector<16x8xf32>, vector<22x8xf32> -> vector<22x8xf32>
    %c168 = arith.constant 168 : index
    %c0_47 = arith.constant 0 : index
    %106 = vector.load %arg7[%c168, %c0_47] : memref<1160x128xf32, #tpu.memory_space<vmem>>, vector<1x8xf32>
    %107 = vector.broadcast %106 : vector<1x8xf32> to vector<22x8xf32>
    %108 = arith.addf %105, %107 : vector<22x8xf32>
    %109 = arith.mulf %108, %108 : vector<22x8xf32>
    %cst_48 = arith.constant dense<0.000000e+00> : vector<22xf32>
    %110 = vector.multi_reduction <add>, %109, %cst_48 [1] : vector<22x8xf32> to vector<22xf32>
    %111 = vector.shape_cast %110 : vector<22xf32> to vector<22x1xf32>
    %cst_49 = arith.constant 1.000000e-24 : f32
    %112 = vector.broadcast %cst_49 : f32 to vector<22x1xf32>
    %113 = arith.maximumf %111, %112 : vector<22x1xf32>
    %114 = math.rsqrt %113 : vector<22x1xf32>
    %115 = vector.broadcast %114 : vector<22x1xf32> to vector<22x8xf32>
    %116 = arith.mulf %108, %115 : vector<22x8xf32>
    %117 = vector.broadcast %5 : vector<22x1xf32> to vector<22x8xf32>
    %118 = arith.mulf %116, %117 : vector<22x8xf32>
    %c176 = arith.constant 176 : index
    %c0_50 = arith.constant 0 : index
    %119 = vector.load %arg7[%c176, %c0_50] : memref<1160x128xf32, #tpu.memory_space<vmem>>, vector<1x8xf32>
    %120 = vector.broadcast %119 : vector<1x8xf32> to vector<22x8xf32>
    %121 = arith.mulf %118, %120 : vector<22x8xf32>
    %c184 = arith.constant 184 : index
    %c0_51 = arith.constant 0 : index
    %122 = vector.load %arg7[%c184, %c0_51] : memref<1160x128xf32, #tpu.memory_space<vmem>>, vector<1x8xf32>
    %123 = vector.broadcast %122 : vector<1x8xf32> to vector<22x8xf32>
    %124 = arith.addf %121, %123 : vector<22x8xf32>
    %cst_52 = arith.constant 0.000000e+00 : f32
    %125 = vector.broadcast %cst_52 : f32 to vector<22x8xf32>
    %126 = arith.maximumf %124, %125 : vector<22x8xf32>
    %cst_53 = arith.constant dense<0.000000e+00> : vector<22x8xf32>
    %127 = tpu.matmul %3, %126, %cst_53 {dimension_numbers = #tpu.dot_dimension_numbers<[1], [0], [0], [1], [0, 0, 1, 1], [], []>} : vector<22x22xf32>, vector<22x8xf32>, vector<22x8xf32> -> vector<22x8xf32>
    %128 = vector.broadcast %10 : vector<22x1xf32> to vector<22x8xf32>
    %129 = arith.mulf %127, %128 : vector<22x8xf32>
    %130 = tpu.concatenate %129, %126 in 1 : vector<22x8xf32>, vector<22x8xf32> -> vector<22x16xf32>
    %c192 = arith.constant 192 : index
    %c0_54 = arith.constant 0 : index
    %131 = vector.load %arg7[%c192, %c0_54] : memref<1160x128xf32, #tpu.memory_space<vmem>>, vector<16x8xf32>
    %cst_55 = arith.constant dense<0.000000e+00> : vector<22x8xf32>
    %132 = tpu.matmul %130, %131, %cst_55 {dimension_numbers = #tpu.dot_dimension_numbers<[1], [0], [0], [1], [0, 0, 1, 1], [], []>} : vector<22x16xf32>, vector<16x8xf32>, vector<22x8xf32> -> vector<22x8xf32>
    %c208 = arith.constant 208 : index
    %c0_56 = arith.constant 0 : index
    %133 = vector.load %arg7[%c208, %c0_56] : memref<1160x128xf32, #tpu.memory_space<vmem>>, vector<1x8xf32>
    %134 = vector.broadcast %133 : vector<1x8xf32> to vector<22x8xf32>
    %135 = arith.addf %132, %134 : vector<22x8xf32>
    %136 = arith.mulf %135, %135 : vector<22x8xf32>
    %cst_57 = arith.constant dense<0.000000e+00> : vector<22xf32>
    %137 = vector.multi_reduction <add>, %136, %cst_57 [1] : vector<22x8xf32> to vector<22xf32>
    %138 = vector.shape_cast %137 : vector<22xf32> to vector<22x1xf32>
    %cst_58 = arith.constant 1.000000e-24 : f32
    %139 = vector.broadcast %cst_58 : f32 to vector<22x1xf32>
    %140 = arith.maximumf %138, %139 : vector<22x1xf32>
    %141 = math.rsqrt %140 : vector<22x1xf32>
    %142 = vector.broadcast %141 : vector<22x1xf32> to vector<22x8xf32>
    %143 = arith.mulf %135, %142 : vector<22x8xf32>
    %144 = vector.broadcast %5 : vector<22x1xf32> to vector<22x8xf32>
    %145 = arith.mulf %143, %144 : vector<22x8xf32>
    %c216 = arith.constant 216 : index
    %c0_59 = arith.constant 0 : index
    %146 = vector.load %arg7[%c216, %c0_59] : memref<1160x128xf32, #tpu.memory_space<vmem>>, vector<1x8xf32>
    %147 = vector.broadcast %146 : vector<1x8xf32> to vector<22x8xf32>
    %148 = arith.mulf %145, %147 : vector<22x8xf32>
    %c224 = arith.constant 224 : index
    %c0_60 = arith.constant 0 : index
    %149 = vector.load %arg7[%c224, %c0_60] : memref<1160x128xf32, #tpu.memory_space<vmem>>, vector<1x8xf32>
    %150 = vector.broadcast %149 : vector<1x8xf32> to vector<22x8xf32>
    %151 = arith.addf %148, %150 : vector<22x8xf32>
    %cst_61 = arith.constant 0.000000e+00 : f32
    %152 = vector.broadcast %cst_61 : f32 to vector<22x8xf32>
    %153 = arith.maximumf %151, %152 : vector<22x8xf32>
    %cst_62 = arith.constant dense<0.000000e+00> : vector<22x8xf32>
    %154 = tpu.matmul %3, %153, %cst_62 {dimension_numbers = #tpu.dot_dimension_numbers<[1], [0], [0], [1], [0, 0, 1, 1], [], []>} : vector<22x22xf32>, vector<22x8xf32>, vector<22x8xf32> -> vector<22x8xf32>
    %155 = vector.broadcast %10 : vector<22x1xf32> to vector<22x8xf32>
    %156 = arith.mulf %154, %155 : vector<22x8xf32>
    %157 = tpu.concatenate %156, %153 in 1 : vector<22x8xf32>, vector<22x8xf32> -> vector<22x16xf32>
    %c232 = arith.constant 232 : index
    %c0_63 = arith.constant 0 : index
    %158 = vector.load %arg7[%c232, %c0_63] : memref<1160x128xf32, #tpu.memory_space<vmem>>, vector<16x8xf32>
    %cst_64 = arith.constant dense<0.000000e+00> : vector<22x8xf32>
    %159 = tpu.matmul %157, %158, %cst_64 {dimension_numbers = #tpu.dot_dimension_numbers<[1], [0], [0], [1], [0, 0, 1, 1], [], []>} : vector<22x16xf32>, vector<16x8xf32>, vector<22x8xf32> -> vector<22x8xf32>
    %c248 = arith.constant 248 : index
    %c0_65 = arith.constant 0 : index
    %160 = vector.load %arg7[%c248, %c0_65] : memref<1160x128xf32, #tpu.memory_space<vmem>>, vector<1x8xf32>
    %161 = vector.broadcast %160 : vector<1x8xf32> to vector<22x8xf32>
    %162 = arith.addf %159, %161 : vector<22x8xf32>
    %163 = arith.mulf %162, %162 : vector<22x8xf32>
    %cst_66 = arith.constant dense<0.000000e+00> : vector<22xf32>
    %164 = vector.multi_reduction <add>, %163, %cst_66 [1] : vector<22x8xf32> to vector<22xf32>
    %165 = vector.shape_cast %164 : vector<22xf32> to vector<22x1xf32>
    %cst_67 = arith.constant 1.000000e-24 : f32
    %166 = vector.broadcast %cst_67 : f32 to vector<22x1xf32>
    %167 = arith.maximumf %165, %166 : vector<22x1xf32>
    %168 = math.rsqrt %167 : vector<22x1xf32>
    %169 = vector.broadcast %168 : vector<22x1xf32> to vector<22x8xf32>
    %170 = arith.mulf %162, %169 : vector<22x8xf32>
    %171 = vector.broadcast %5 : vector<22x1xf32> to vector<22x8xf32>
    %172 = arith.mulf %170, %171 : vector<22x8xf32>
    %c256 = arith.constant 256 : index
    %c0_68 = arith.constant 0 : index
    %173 = vector.load %arg7[%c256, %c0_68] : memref<1160x128xf32, #tpu.memory_space<vmem>>, vector<1x8xf32>
    %174 = vector.broadcast %173 : vector<1x8xf32> to vector<22x8xf32>
    %175 = arith.mulf %172, %174 : vector<22x8xf32>
    %c264 = arith.constant 264 : index
    %c0_69 = arith.constant 0 : index
    %176 = vector.load %arg7[%c264, %c0_69] : memref<1160x128xf32, #tpu.memory_space<vmem>>, vector<1x8xf32>
    %177 = vector.broadcast %176 : vector<1x8xf32> to vector<22x8xf32>
    %178 = arith.addf %175, %177 : vector<22x8xf32>
    %cst_70 = arith.constant 0.000000e+00 : f32
    %179 = vector.broadcast %cst_70 : f32 to vector<22x8xf32>
    %180 = arith.maximumf %178, %179 : vector<22x8xf32>
    %181 = tpu.concatenate %126, %153, %180 in 1 : vector<22x8xf32>, vector<22x8xf32>, vector<22x8xf32> -> vector<22x24xf32>
    %cst_71 = arith.constant dense<0xFF800000> : vector<22xf32>
    %182 = vector.multi_reduction <maximumf>, %99, %cst_71 [1] : vector<22x6xf32> to vector<22xf32>
    %183 = vector.shape_cast %182 : vector<22xf32> to vector<22x1xf32>
    %184 = vector.broadcast %183 : vector<22x1xf32> to vector<22x6xf32>
    %185 = arith.subf %99, %184 : vector<22x6xf32>
    %186 = math.exp %185 : vector<22x6xf32>
    %cst_72 = arith.constant dense<0.000000e+00> : vector<22xf32>
    %187 = vector.multi_reduction <add>, %186, %cst_72 [1] : vector<22x6xf32> to vector<22xf32>
    %188 = vector.shape_cast %187 : vector<22xf32> to vector<22x1xf32>
    %189 = tpu.reciprocal %188 {approx = true} : vector<22x1xf32> -> vector<22x1xf32>
    %190 = vector.broadcast %189 : vector<22x1xf32> to vector<22x6xf32>
    %191 = arith.mulf %186, %190 : vector<22x6xf32>
    %192 = vector.broadcast %5 : vector<22x1xf32> to vector<22x6xf32>
    %193 = arith.mulf %191, %192 : vector<22x6xf32>
    %194 = vector.broadcast %5 : vector<22x1xf32> to vector<22x24xf32>
    %195 = arith.mulf %181, %194 : vector<22x24xf32>
    %cst_73 = arith.constant dense<0.000000e+00> : vector<6x24xf32>
    %196 = tpu.matmul %193, %195, %cst_73 {dimension_numbers = #tpu.dot_dimension_numbers<[0], [0], [1], [1], [0, 1, 1, 1], [], []>} : vector<22x6xf32>, vector<22x24xf32>, vector<6x24xf32> -> vector<6x24xf32>
    %cst_74 = arith.constant dense<0.000000e+00> : vector<6x22xf32>
    %197 = tpu.matmul %193, %3, %cst_74 {dimension_numbers = #tpu.dot_dimension_numbers<[0], [0], [1], [1], [0, 1, 1, 1], [], []>} : vector<22x6xf32>, vector<22x22xf32>, vector<6x22xf32> -> vector<6x22xf32>
    %cst_75 = arith.constant dense<0.000000e+00> : vector<6x6xf32>
    %198 = tpu.matmul %197, %193, %cst_75 {dimension_numbers = #tpu.dot_dimension_numbers<[1], [0], [0], [1], [0, 0, 1, 1], [], []>} : vector<6x22xf32>, vector<22x6xf32>, vector<6x6xf32> -> vector<6x6xf32>
    %cst_76 = arith.constant dense<0.000000e+00> : vector<6xf32>
    %199 = vector.multi_reduction <add>, %198, %cst_76 [1] : vector<6x6xf32> to vector<6xf32>
    %200 = vector.shape_cast %199 : vector<6xf32> to vector<6x1xf32>
    %cst_77 = arith.constant 1.000000e+00 : f32
    %201 = vector.broadcast %cst_77 : f32 to vector<6x1xf32>
    %202 = arith.maximumf %200, %201 : vector<6x1xf32>
    %203 = tpu.reciprocal %202 {approx = true} : vector<6x1xf32> -> vector<6x1xf32>
    %cst_78 = arith.constant dense<0.000000e+00> : vector<6x24xf32>
    %204 = tpu.matmul %198, %196, %cst_78 {dimension_numbers = #tpu.dot_dimension_numbers<[1], [0], [0], [1], [0, 0, 1, 1], [], []>} : vector<6x6xf32>, vector<6x24xf32>, vector<6x24xf32> -> vector<6x24xf32>
    %205 = vector.broadcast %203 : vector<6x1xf32> to vector<6x24xf32>
    %206 = arith.mulf %204, %205 : vector<6x24xf32>
    %207 = tpu.concatenate %206, %196 in 1 : vector<6x24xf32>, vector<6x24xf32> -> vector<6x48xf32>
    %c272 = arith.constant 272 : index
    %c0_79 = arith.constant 0 : index
    %208 = vector.load %arg7[%c272, %c0_79] : memref<1160x128xf32, #tpu.memory_space<vmem>>, vector<48x16xf32>
    %cst_80 = arith.constant dense<0.000000e+00> : vector<6x16xf32>
    %209 = tpu.matmul %207, %208, %cst_80 {dimension_numbers = #tpu.dot_dimension_numbers<[1], [0], [0], [1], [0, 0, 1, 1], [], []>} : vector<6x48xf32>, vector<48x16xf32>, vector<6x16xf32> -> vector<6x16xf32>
    %c320 = arith.constant 320 : index
    %c0_81 = arith.constant 0 : index
    %210 = vector.load %arg7[%c320, %c0_81] : memref<1160x128xf32, #tpu.memory_space<vmem>>, vector<1x16xf32>
    %211 = vector.broadcast %210 : vector<1x16xf32> to vector<6x16xf32>
    %212 = arith.addf %209, %211 : vector<6x16xf32>
    %213 = arith.mulf %212, %212 : vector<6x16xf32>
    %cst_82 = arith.constant dense<0.000000e+00> : vector<6xf32>
    %214 = vector.multi_reduction <add>, %213, %cst_82 [1] : vector<6x16xf32> to vector<6xf32>
    %215 = vector.shape_cast %214 : vector<6xf32> to vector<6x1xf32>
    %cst_83 = arith.constant 1.000000e-24 : f32
    %216 = vector.broadcast %cst_83 : f32 to vector<6x1xf32>
    %217 = arith.maximumf %215, %216 : vector<6x1xf32>
    %218 = math.rsqrt %217 : vector<6x1xf32>
    %219 = vector.broadcast %218 : vector<6x1xf32> to vector<6x16xf32>
    %220 = arith.mulf %212, %219 : vector<6x16xf32>
    %c328 = arith.constant 328 : index
    %c0_84 = arith.constant 0 : index
    %221 = vector.load %arg7[%c328, %c0_84] : memref<1160x128xf32, #tpu.memory_space<vmem>>, vector<1x16xf32>
    %222 = vector.broadcast %221 : vector<1x16xf32> to vector<6x16xf32>
    %223 = arith.mulf %220, %222 : vector<6x16xf32>
    %c336 = arith.constant 336 : index
    %c0_85 = arith.constant 0 : index
    %224 = vector.load %arg7[%c336, %c0_85] : memref<1160x128xf32, #tpu.memory_space<vmem>>, vector<1x16xf32>
    %225 = vector.broadcast %224 : vector<1x16xf32> to vector<6x16xf32>
    %226 = arith.addf %223, %225 : vector<6x16xf32>
    %cst_86 = arith.constant 0.000000e+00 : f32
    %227 = vector.broadcast %cst_86 : f32 to vector<6x16xf32>
    %228 = arith.maximumf %226, %227 : vector<6x16xf32>
    %cst_87 = arith.constant dense<0.000000e+00> : vector<6x16xf32>
    %229 = tpu.matmul %198, %228, %cst_87 {dimension_numbers = #tpu.dot_dimension_numbers<[1], [0], [0], [1], [0, 0, 1, 1], [], []>} : vector<6x6xf32>, vector<6x16xf32>, vector<6x16xf32> -> vector<6x16xf32>
    %230 = vector.broadcast %203 : vector<6x1xf32> to vector<6x16xf32>
    %231 = arith.mulf %229, %230 : vector<6x16xf32>
    %232 = tpu.concatenate %231, %228 in 1 : vector<6x16xf32>, vector<6x16xf32> -> vector<6x32xf32>
    %c344 = arith.constant 344 : index
    %c0_88 = arith.constant 0 : index
    %233 = vector.load %arg7[%c344, %c0_88] : memref<1160x128xf32, #tpu.memory_space<vmem>>, vector<32x16xf32>
    %cst_89 = arith.constant dense<0.000000e+00> : vector<6x16xf32>
    %234 = tpu.matmul %232, %233, %cst_89 {dimension_numbers = #tpu.dot_dimension_numbers<[1], [0], [0], [1], [0, 0, 1, 1], [], []>} : vector<6x32xf32>, vector<32x16xf32>, vector<6x16xf32> -> vector<6x16xf32>
    %c376 = arith.constant 376 : index
    %c0_90 = arith.constant 0 : index
    %235 = vector.load %arg7[%c376, %c0_90] : memref<1160x128xf32, #tpu.memory_space<vmem>>, vector<1x16xf32>
    %236 = vector.broadcast %235 : vector<1x16xf32> to vector<6x16xf32>
    %237 = arith.addf %234, %236 : vector<6x16xf32>
    %238 = arith.mulf %237, %237 : vector<6x16xf32>
    %cst_91 = arith.constant dense<0.000000e+00> : vector<6xf32>
    %239 = vector.multi_reduction <add>, %238, %cst_91 [1] : vector<6x16xf32> to vector<6xf32>
    %240 = vector.shape_cast %239 : vector<6xf32> to vector<6x1xf32>
    %cst_92 = arith.constant 1.000000e-24 : f32
    %241 = vector.broadcast %cst_92 : f32 to vector<6x1xf32>
    %242 = arith.maximumf %240, %241 : vector<6x1xf32>
    %243 = math.rsqrt %242 : vector<6x1xf32>
    %244 = vector.broadcast %243 : vector<6x1xf32> to vector<6x16xf32>
    %245 = arith.mulf %237, %244 : vector<6x16xf32>
    %c384 = arith.constant 384 : index
    %c0_93 = arith.constant 0 : index
    %246 = vector.load %arg7[%c384, %c0_93] : memref<1160x128xf32, #tpu.memory_space<vmem>>, vector<1x16xf32>
    %247 = vector.broadcast %246 : vector<1x16xf32> to vector<6x16xf32>
    %248 = arith.mulf %245, %247 : vector<6x16xf32>
    %c392 = arith.constant 392 : index
    %c0_94 = arith.constant 0 : index
    %249 = vector.load %arg7[%c392, %c0_94] : memref<1160x128xf32, #tpu.memory_space<vmem>>, vector<1x16xf32>
    %250 = vector.broadcast %249 : vector<1x16xf32> to vector<6x16xf32>
    %251 = arith.addf %248, %250 : vector<6x16xf32>
    %cst_95 = arith.constant 0.000000e+00 : f32
    %252 = vector.broadcast %cst_95 : f32 to vector<6x16xf32>
    %253 = arith.maximumf %251, %252 : vector<6x16xf32>
    %cst_96 = arith.constant dense<0.000000e+00> : vector<6x16xf32>
    %254 = tpu.matmul %198, %253, %cst_96 {dimension_numbers = #tpu.dot_dimension_numbers<[1], [0], [0], [1], [0, 0, 1, 1], [], []>} : vector<6x6xf32>, vector<6x16xf32>, vector<6x16xf32> -> vector<6x16xf32>
    %255 = vector.broadcast %203 : vector<6x1xf32> to vector<6x16xf32>
    %256 = arith.mulf %254, %255 : vector<6x16xf32>
    %257 = tpu.concatenate %256, %253 in 1 : vector<6x16xf32>, vector<6x16xf32> -> vector<6x32xf32>
    %c400 = arith.constant 400 : index
    %c0_97 = arith.constant 0 : index
    %258 = vector.load %arg7[%c400, %c0_97] : memref<1160x128xf32, #tpu.memory_space<vmem>>, vector<32x2xf32>
    %cst_98 = arith.constant dense<0.000000e+00> : vector<6x2xf32>
    %259 = tpu.matmul %257, %258, %cst_98 {dimension_numbers = #tpu.dot_dimension_numbers<[1], [0], [0], [1], [0, 0, 1, 1], [], []>} : vector<6x32xf32>, vector<32x2xf32>, vector<6x2xf32> -> vector<6x2xf32>
    %c432 = arith.constant 432 : index
    %c0_99 = arith.constant 0 : index
    %260 = vector.load %arg7[%c432, %c0_99] : memref<1160x128xf32, #tpu.memory_space<vmem>>, vector<1x2xf32>
    %261 = vector.broadcast %260 : vector<1x2xf32> to vector<6x2xf32>
    %262 = arith.addf %259, %261 : vector<6x2xf32>
    %263 = arith.mulf %262, %262 : vector<6x2xf32>
    %cst_100 = arith.constant dense<0.000000e+00> : vector<6xf32>
    %264 = vector.multi_reduction <add>, %263, %cst_100 [1] : vector<6x2xf32> to vector<6xf32>
    %265 = vector.shape_cast %264 : vector<6xf32> to vector<6x1xf32>
    %cst_101 = arith.constant 1.000000e-24 : f32
    %266 = vector.broadcast %cst_101 : f32 to vector<6x1xf32>
    %267 = arith.maximumf %265, %266 : vector<6x1xf32>
    %268 = math.rsqrt %267 : vector<6x1xf32>
    %269 = vector.broadcast %268 : vector<6x1xf32> to vector<6x2xf32>
    %270 = arith.mulf %262, %269 : vector<6x2xf32>
    %c440 = arith.constant 440 : index
    %c0_102 = arith.constant 0 : index
    %271 = vector.load %arg7[%c440, %c0_102] : memref<1160x128xf32, #tpu.memory_space<vmem>>, vector<1x2xf32>
    %272 = vector.broadcast %271 : vector<1x2xf32> to vector<6x2xf32>
    %273 = arith.mulf %270, %272 : vector<6x2xf32>
    %c448 = arith.constant 448 : index
    %c0_103 = arith.constant 0 : index
    %274 = vector.load %arg7[%c448, %c0_103] : memref<1160x128xf32, #tpu.memory_space<vmem>>, vector<1x2xf32>
    %275 = vector.broadcast %274 : vector<1x2xf32> to vector<6x2xf32>
    %276 = arith.addf %273, %275 : vector<6x2xf32>
    %cst_104 = arith.constant 0.000000e+00 : f32
    %277 = vector.broadcast %cst_104 : f32 to vector<6x2xf32>
    %278 = arith.maximumf %276, %277 : vector<6x2xf32>
    %279 = tpu.concatenate %228, %253, %278 in 1 : vector<6x16xf32>, vector<6x16xf32>, vector<6x2xf32> -> vector<6x34xf32>
    %c456 = arith.constant 456 : index
    %c0_105 = arith.constant 0 : index
    %280 = vector.load %arg7[%c456, %c0_105] : memref<1160x128xf32, #tpu.memory_space<vmem>>, vector<34x2xf32>
    %cst_106 = arith.constant dense<0.000000e+00> : vector<6x2xf32>
    %281 = tpu.matmul %279, %280, %cst_106 {dimension_numbers = #tpu.dot_dimension_numbers<[1], [0], [0], [1], [0, 0, 1, 1], [], []>} : vector<6x34xf32>, vector<34x2xf32>, vector<6x2xf32> -> vector<6x2xf32>
    %c496 = arith.constant 496 : index
    %c0_107 = arith.constant 0 : index
    %282 = vector.load %arg7[%c496, %c0_107] : memref<1160x128xf32, #tpu.memory_space<vmem>>, vector<1x2xf32>
    %283 = vector.broadcast %282 : vector<1x2xf32> to vector<6x2xf32>
    %284 = arith.addf %281, %283 : vector<6x2xf32>
    %cst_108 = arith.constant 0.000000e+00 : f32
    %285 = vector.broadcast %cst_108 : f32 to vector<6x2xf32>
    %286 = arith.maximumf %284, %285 : vector<6x2xf32>
    %cst_109 = arith.constant dense<0.000000e+00> : vector<6x24xf32>
    %287 = tpu.matmul %198, %196, %cst_109 {dimension_numbers = #tpu.dot_dimension_numbers<[1], [0], [0], [1], [0, 0, 1, 1], [], []>} : vector<6x6xf32>, vector<6x24xf32>, vector<6x24xf32> -> vector<6x24xf32>
    %288 = vector.broadcast %203 : vector<6x1xf32> to vector<6x24xf32>
    %289 = arith.mulf %287, %288 : vector<6x24xf32>
    %290 = tpu.concatenate %289, %196 in 1 : vector<6x24xf32>, vector<6x24xf32> -> vector<6x48xf32>
    %c504 = arith.constant 504 : index
    %c0_110 = arith.constant 0 : index
    %291 = vector.load %arg7[%c504, %c0_110] : memref<1160x128xf32, #tpu.memory_space<vmem>>, vector<48x16xf32>
    %cst_111 = arith.constant dense<0.000000e+00> : vector<6x16xf32>
    %292 = tpu.matmul %290, %291, %cst_111 {dimension_numbers = #tpu.dot_dimension_numbers<[1], [0], [0], [1], [0, 0, 1, 1], [], []>} : vector<6x48xf32>, vector<48x16xf32>, vector<6x16xf32> -> vector<6x16xf32>
    %c552 = arith.constant 552 : index
    %c0_112 = arith.constant 0 : index
    %293 = vector.load %arg7[%c552, %c0_112] : memref<1160x128xf32, #tpu.memory_space<vmem>>, vector<1x16xf32>
    %294 = vector.broadcast %293 : vector<1x16xf32> to vector<6x16xf32>
    %295 = arith.addf %292, %294 : vector<6x16xf32>
    %296 = arith.mulf %295, %295 : vector<6x16xf32>
    %cst_113 = arith.constant dense<0.000000e+00> : vector<6xf32>
    %297 = vector.multi_reduction <add>, %296, %cst_113 [1] : vector<6x16xf32> to vector<6xf32>
    %298 = vector.shape_cast %297 : vector<6xf32> to vector<6x1xf32>
    %cst_114 = arith.constant 1.000000e-24 : f32
    %299 = vector.broadcast %cst_114 : f32 to vector<6x1xf32>
    %300 = arith.maximumf %298, %299 : vector<6x1xf32>
    %301 = math.rsqrt %300 : vector<6x1xf32>
    %302 = vector.broadcast %301 : vector<6x1xf32> to vector<6x16xf32>
    %303 = arith.mulf %295, %302 : vector<6x16xf32>
    %c560 = arith.constant 560 : index
    %c0_115 = arith.constant 0 : index
    %304 = vector.load %arg7[%c560, %c0_115] : memref<1160x128xf32, #tpu.memory_space<vmem>>, vector<1x16xf32>
    %305 = vector.broadcast %304 : vector<1x16xf32> to vector<6x16xf32>
    %306 = arith.mulf %303, %305 : vector<6x16xf32>
    %c568 = arith.constant 568 : index
    %c0_116 = arith.constant 0 : index
    %307 = vector.load %arg7[%c568, %c0_116] : memref<1160x128xf32, #tpu.memory_space<vmem>>, vector<1x16xf32>
    %308 = vector.broadcast %307 : vector<1x16xf32> to vector<6x16xf32>
    %309 = arith.addf %306, %308 : vector<6x16xf32>
    %cst_117 = arith.constant 0.000000e+00 : f32
    %310 = vector.broadcast %cst_117 : f32 to vector<6x16xf32>
    %311 = arith.maximumf %309, %310 : vector<6x16xf32>
    %cst_118 = arith.constant dense<0.000000e+00> : vector<6x16xf32>
    %312 = tpu.matmul %198, %311, %cst_118 {dimension_numbers = #tpu.dot_dimension_numbers<[1], [0], [0], [1], [0, 0, 1, 1], [], []>} : vector<6x6xf32>, vector<6x16xf32>, vector<6x16xf32> -> vector<6x16xf32>
    %313 = vector.broadcast %203 : vector<6x1xf32> to vector<6x16xf32>
    %314 = arith.mulf %312, %313 : vector<6x16xf32>
    %315 = tpu.concatenate %314, %311 in 1 : vector<6x16xf32>, vector<6x16xf32> -> vector<6x32xf32>
    %c576 = arith.constant 576 : index
    %c0_119 = arith.constant 0 : index
    %316 = vector.load %arg7[%c576, %c0_119] : memref<1160x128xf32, #tpu.memory_space<vmem>>, vector<32x16xf32>
    %cst_120 = arith.constant dense<0.000000e+00> : vector<6x16xf32>
    %317 = tpu.matmul %315, %316, %cst_120 {dimension_numbers = #tpu.dot_dimension_numbers<[1], [0], [0], [1], [0, 0, 1, 1], [], []>} : vector<6x32xf32>, vector<32x16xf32>, vector<6x16xf32> -> vector<6x16xf32>
    %c608 = arith.constant 608 : index
    %c0_121 = arith.constant 0 : index
    %318 = vector.load %arg7[%c608, %c0_121] : memref<1160x128xf32, #tpu.memory_space<vmem>>, vector<1x16xf32>
    %319 = vector.broadcast %318 : vector<1x16xf32> to vector<6x16xf32>
    %320 = arith.addf %317, %319 : vector<6x16xf32>
    %321 = arith.mulf %320, %320 : vector<6x16xf32>
    %cst_122 = arith.constant dense<0.000000e+00> : vector<6xf32>
    %322 = vector.multi_reduction <add>, %321, %cst_122 [1] : vector<6x16xf32> to vector<6xf32>
    %323 = vector.shape_cast %322 : vector<6xf32> to vector<6x1xf32>
    %cst_123 = arith.constant 1.000000e-24 : f32
    %324 = vector.broadcast %cst_123 : f32 to vector<6x1xf32>
    %325 = arith.maximumf %323, %324 : vector<6x1xf32>
    %326 = math.rsqrt %325 : vector<6x1xf32>
    %327 = vector.broadcast %326 : vector<6x1xf32> to vector<6x16xf32>
    %328 = arith.mulf %320, %327 : vector<6x16xf32>
    %c616 = arith.constant 616 : index
    %c0_124 = arith.constant 0 : index
    %329 = vector.load %arg7[%c616, %c0_124] : memref<1160x128xf32, #tpu.memory_space<vmem>>, vector<1x16xf32>
    %330 = vector.broadcast %329 : vector<1x16xf32> to vector<6x16xf32>
    %331 = arith.mulf %328, %330 : vector<6x16xf32>
    %c624 = arith.constant 624 : index
    %c0_125 = arith.constant 0 : index
    %332 = vector.load %arg7[%c624, %c0_125] : memref<1160x128xf32, #tpu.memory_space<vmem>>, vector<1x16xf32>
    %333 = vector.broadcast %332 : vector<1x16xf32> to vector<6x16xf32>
    %334 = arith.addf %331, %333 : vector<6x16xf32>
    %cst_126 = arith.constant 0.000000e+00 : f32
    %335 = vector.broadcast %cst_126 : f32 to vector<6x16xf32>
    %336 = arith.maximumf %334, %335 : vector<6x16xf32>
    %cst_127 = arith.constant dense<0.000000e+00> : vector<6x16xf32>
    %337 = tpu.matmul %198, %336, %cst_127 {dimension_numbers = #tpu.dot_dimension_numbers<[1], [0], [0], [1], [0, 0, 1, 1], [], []>} : vector<6x6xf32>, vector<6x16xf32>, vector<6x16xf32> -> vector<6x16xf32>
    %338 = vector.broadcast %203 : vector<6x1xf32> to vector<6x16xf32>
    %339 = arith.mulf %337, %338 : vector<6x16xf32>
    %340 = tpu.concatenate %339, %336 in 1 : vector<6x16xf32>, vector<6x16xf32> -> vector<6x32xf32>
    %c632 = arith.constant 632 : index
    %c0_128 = arith.constant 0 : index
    %341 = vector.load %arg7[%c632, %c0_128] : memref<1160x128xf32, #tpu.memory_space<vmem>>, vector<32x16xf32>
    %cst_129 = arith.constant dense<0.000000e+00> : vector<6x16xf32>
    %342 = tpu.matmul %340, %341, %cst_129 {dimension_numbers = #tpu.dot_dimension_numbers<[1], [0], [0], [1], [0, 0, 1, 1], [], []>} : vector<6x32xf32>, vector<32x16xf32>, vector<6x16xf32> -> vector<6x16xf32>
    %c664 = arith.constant 664 : index
    %c0_130 = arith.constant 0 : index
    %343 = vector.load %arg7[%c664, %c0_130] : memref<1160x128xf32, #tpu.memory_space<vmem>>, vector<1x16xf32>
    %344 = vector.broadcast %343 : vector<1x16xf32> to vector<6x16xf32>
    %345 = arith.addf %342, %344 : vector<6x16xf32>
    %346 = arith.mulf %345, %345 : vector<6x16xf32>
    %cst_131 = arith.constant dense<0.000000e+00> : vector<6xf32>
    %347 = vector.multi_reduction <add>, %346, %cst_131 [1] : vector<6x16xf32> to vector<6xf32>
    %348 = vector.shape_cast %347 : vector<6xf32> to vector<6x1xf32>
    %cst_132 = arith.constant 1.000000e-24 : f32
    %349 = vector.broadcast %cst_132 : f32 to vector<6x1xf32>
    %350 = arith.maximumf %348, %349 : vector<6x1xf32>
    %351 = math.rsqrt %350 : vector<6x1xf32>
    %352 = vector.broadcast %351 : vector<6x1xf32> to vector<6x16xf32>
    %353 = arith.mulf %345, %352 : vector<6x16xf32>
    %c672 = arith.constant 672 : index
    %c0_133 = arith.constant 0 : index
    %354 = vector.load %arg7[%c672, %c0_133] : memref<1160x128xf32, #tpu.memory_space<vmem>>, vector<1x16xf32>
    %355 = vector.broadcast %354 : vector<1x16xf32> to vector<6x16xf32>
    %356 = arith.mulf %353, %355 : vector<6x16xf32>
    %c680 = arith.constant 680 : index
    %c0_134 = arith.constant 0 : index
    %357 = vector.load %arg7[%c680, %c0_134] : memref<1160x128xf32, #tpu.memory_space<vmem>>, vector<1x16xf32>
    %358 = vector.broadcast %357 : vector<1x16xf32> to vector<6x16xf32>
    %359 = arith.addf %356, %358 : vector<6x16xf32>
    %cst_135 = arith.constant 0.000000e+00 : f32
    %360 = vector.broadcast %cst_135 : f32 to vector<6x16xf32>
    %361 = arith.maximumf %359, %360 : vector<6x16xf32>
    %362 = tpu.concatenate %311, %336, %361 in 1 : vector<6x16xf32>, vector<6x16xf32>, vector<6x16xf32> -> vector<6x48xf32>
    %cst_136 = arith.constant dense<0xFF800000> : vector<6xf32>
    %363 = vector.multi_reduction <maximumf>, %286, %cst_136 [1] : vector<6x2xf32> to vector<6xf32>
    %364 = vector.shape_cast %363 : vector<6xf32> to vector<6x1xf32>
    %365 = vector.broadcast %364 : vector<6x1xf32> to vector<6x2xf32>
    %366 = arith.subf %286, %365 : vector<6x2xf32>
    %367 = math.exp %366 : vector<6x2xf32>
    %cst_137 = arith.constant dense<0.000000e+00> : vector<6xf32>
    %368 = vector.multi_reduction <add>, %367, %cst_137 [1] : vector<6x2xf32> to vector<6xf32>
    %369 = vector.shape_cast %368 : vector<6xf32> to vector<6x1xf32>
    %370 = tpu.reciprocal %369 {approx = true} : vector<6x1xf32> -> vector<6x1xf32>
    %371 = vector.broadcast %370 : vector<6x1xf32> to vector<6x2xf32>
    %372 = arith.mulf %367, %371 : vector<6x2xf32>
    %cst_138 = arith.constant dense<0.000000e+00> : vector<2x48xf32>
    %373 = tpu.matmul %372, %362, %cst_138 {dimension_numbers = #tpu.dot_dimension_numbers<[0], [0], [1], [1], [0, 1, 1, 1], [], []>} : vector<6x2xf32>, vector<6x48xf32>, vector<2x48xf32> -> vector<2x48xf32>
    %cst_139 = arith.constant dense<0.000000e+00> : vector<2x6xf32>
    %374 = tpu.matmul %372, %198, %cst_139 {dimension_numbers = #tpu.dot_dimension_numbers<[0], [0], [1], [1], [0, 1, 1, 1], [], []>} : vector<6x2xf32>, vector<6x6xf32>, vector<2x6xf32> -> vector<2x6xf32>
    %cst_140 = arith.constant dense<0.000000e+00> : vector<2x2xf32>
    %375 = tpu.matmul %374, %372, %cst_140 {dimension_numbers = #tpu.dot_dimension_numbers<[1], [0], [0], [1], [0, 0, 1, 1], [], []>} : vector<2x6xf32>, vector<6x2xf32>, vector<2x2xf32> -> vector<2x2xf32>
    %cst_141 = arith.constant dense<0.000000e+00> : vector<2xf32>
    %376 = vector.multi_reduction <add>, %375, %cst_141 [1] : vector<2x2xf32> to vector<2xf32>
    %377 = vector.shape_cast %376 : vector<2xf32> to vector<2x1xf32>
    %cst_142 = arith.constant 1.000000e+00 : f32
    %378 = vector.broadcast %cst_142 : f32 to vector<2x1xf32>
    %379 = arith.maximumf %377, %378 : vector<2x1xf32>
    %380 = tpu.reciprocal %379 {approx = true} : vector<2x1xf32> -> vector<2x1xf32>
    %cst_143 = arith.constant dense<0.000000e+00> : vector<2x48xf32>
    %381 = tpu.matmul %375, %373, %cst_143 {dimension_numbers = #tpu.dot_dimension_numbers<[1], [0], [0], [1], [0, 0, 1, 1], [], []>} : vector<2x2xf32>, vector<2x48xf32>, vector<2x48xf32> -> vector<2x48xf32>
    %382 = vector.broadcast %380 : vector<2x1xf32> to vector<2x48xf32>
    %383 = arith.mulf %381, %382 : vector<2x48xf32>
    %384 = tpu.concatenate %383, %373 in 1 : vector<2x48xf32>, vector<2x48xf32> -> vector<2x96xf32>
    %c688 = arith.constant 688 : index
    %c0_144 = arith.constant 0 : index
    %385 = vector.load %arg7[%c688, %c0_144] : memref<1160x128xf32, #tpu.memory_space<vmem>>, vector<96x32xf32>
    %cst_145 = arith.constant dense<0.000000e+00> : vector<2x32xf32>
    %386 = tpu.matmul %384, %385, %cst_145 {dimension_numbers = #tpu.dot_dimension_numbers<[1], [0], [0], [1], [0, 0, 1, 1], [], []>} : vector<2x96xf32>, vector<96x32xf32>, vector<2x32xf32> -> vector<2x32xf32>
    %c784 = arith.constant 784 : index
    %c0_146 = arith.constant 0 : index
    %387 = vector.load %arg7[%c784, %c0_146] : memref<1160x128xf32, #tpu.memory_space<vmem>>, vector<1x32xf32>
    %388 = vector.broadcast %387 : vector<1x32xf32> to vector<2x32xf32>
    %389 = arith.addf %386, %388 : vector<2x32xf32>
    %390 = arith.mulf %389, %389 : vector<2x32xf32>
    %cst_147 = arith.constant dense<0.000000e+00> : vector<2xf32>
    %391 = vector.multi_reduction <add>, %390, %cst_147 [1] : vector<2x32xf32> to vector<2xf32>
    %392 = vector.shape_cast %391 : vector<2xf32> to vector<2x1xf32>
    %cst_148 = arith.constant 1.000000e-24 : f32
    %393 = vector.broadcast %cst_148 : f32 to vector<2x1xf32>
    %394 = arith.maximumf %392, %393 : vector<2x1xf32>
    %395 = math.rsqrt %394 : vector<2x1xf32>
    %396 = vector.broadcast %395 : vector<2x1xf32> to vector<2x32xf32>
    %397 = arith.mulf %389, %396 : vector<2x32xf32>
    %c792 = arith.constant 792 : index
    %c0_149 = arith.constant 0 : index
    %398 = vector.load %arg7[%c792, %c0_149] : memref<1160x128xf32, #tpu.memory_space<vmem>>, vector<1x32xf32>
    %399 = vector.broadcast %398 : vector<1x32xf32> to vector<2x32xf32>
    %400 = arith.mulf %397, %399 : vector<2x32xf32>
    %c800 = arith.constant 800 : index
    %c0_150 = arith.constant 0 : index
    %401 = vector.load %arg7[%c800, %c0_150] : memref<1160x128xf32, #tpu.memory_space<vmem>>, vector<1x32xf32>
    %402 = vector.broadcast %401 : vector<1x32xf32> to vector<2x32xf32>
    %403 = arith.addf %400, %402 : vector<2x32xf32>
    %cst_151 = arith.constant 0.000000e+00 : f32
    %404 = vector.broadcast %cst_151 : f32 to vector<2x32xf32>
    %405 = arith.maximumf %403, %404 : vector<2x32xf32>
    %cst_152 = arith.constant dense<0.000000e+00> : vector<2x32xf32>
    %406 = tpu.matmul %375, %405, %cst_152 {dimension_numbers = #tpu.dot_dimension_numbers<[1], [0], [0], [1], [0, 0, 1, 1], [], []>} : vector<2x2xf32>, vector<2x32xf32>, vector<2x32xf32> -> vector<2x32xf32>
    %407 = vector.broadcast %380 : vector<2x1xf32> to vector<2x32xf32>
    %408 = arith.mulf %406, %407 : vector<2x32xf32>
    %409 = tpu.concatenate %408, %405 in 1 : vector<2x32xf32>, vector<2x32xf32> -> vector<2x64xf32>
    %c808 = arith.constant 808 : index
    %c0_153 = arith.constant 0 : index
    %410 = vector.load %arg7[%c808, %c0_153] : memref<1160x128xf32, #tpu.memory_space<vmem>>, vector<64x32xf32>
    %cst_154 = arith.constant dense<0.000000e+00> : vector<2x32xf32>
    %411 = tpu.matmul %409, %410, %cst_154 {dimension_numbers = #tpu.dot_dimension_numbers<[1], [0], [0], [1], [0, 0, 1, 1], [], []>} : vector<2x64xf32>, vector<64x32xf32>, vector<2x32xf32> -> vector<2x32xf32>
    %c872 = arith.constant 872 : index
    %c0_155 = arith.constant 0 : index
    %412 = vector.load %arg7[%c872, %c0_155] : memref<1160x128xf32, #tpu.memory_space<vmem>>, vector<1x32xf32>
    %413 = vector.broadcast %412 : vector<1x32xf32> to vector<2x32xf32>
    %414 = arith.addf %411, %413 : vector<2x32xf32>
    %415 = arith.mulf %414, %414 : vector<2x32xf32>
    %cst_156 = arith.constant dense<0.000000e+00> : vector<2xf32>
    %416 = vector.multi_reduction <add>, %415, %cst_156 [1] : vector<2x32xf32> to vector<2xf32>
    %417 = vector.shape_cast %416 : vector<2xf32> to vector<2x1xf32>
    %cst_157 = arith.constant 1.000000e-24 : f32
    %418 = vector.broadcast %cst_157 : f32 to vector<2x1xf32>
    %419 = arith.maximumf %417, %418 : vector<2x1xf32>
    %420 = math.rsqrt %419 : vector<2x1xf32>
    %421 = vector.broadcast %420 : vector<2x1xf32> to vector<2x32xf32>
    %422 = arith.mulf %414, %421 : vector<2x32xf32>
    %c880 = arith.constant 880 : index
    %c0_158 = arith.constant 0 : index
    %423 = vector.load %arg7[%c880, %c0_158] : memref<1160x128xf32, #tpu.memory_space<vmem>>, vector<1x32xf32>
    %424 = vector.broadcast %423 : vector<1x32xf32> to vector<2x32xf32>
    %425 = arith.mulf %422, %424 : vector<2x32xf32>
    %c888 = arith.constant 888 : index
    %c0_159 = arith.constant 0 : index
    %426 = vector.load %arg7[%c888, %c0_159] : memref<1160x128xf32, #tpu.memory_space<vmem>>, vector<1x32xf32>
    %427 = vector.broadcast %426 : vector<1x32xf32> to vector<2x32xf32>
    %428 = arith.addf %425, %427 : vector<2x32xf32>
    %cst_160 = arith.constant 0.000000e+00 : f32
    %429 = vector.broadcast %cst_160 : f32 to vector<2x32xf32>
    %430 = arith.maximumf %428, %429 : vector<2x32xf32>
    %cst_161 = arith.constant dense<0.000000e+00> : vector<2x32xf32>
    %431 = tpu.matmul %375, %430, %cst_161 {dimension_numbers = #tpu.dot_dimension_numbers<[1], [0], [0], [1], [0, 0, 1, 1], [], []>} : vector<2x2xf32>, vector<2x32xf32>, vector<2x32xf32> -> vector<2x32xf32>
    %432 = vector.broadcast %380 : vector<2x1xf32> to vector<2x32xf32>
    %433 = arith.mulf %431, %432 : vector<2x32xf32>
    %434 = tpu.concatenate %433, %430 in 1 : vector<2x32xf32>, vector<2x32xf32> -> vector<2x64xf32>
    %c896 = arith.constant 896 : index
    %c0_162 = arith.constant 0 : index
    %435 = vector.load %arg7[%c896, %c0_162] : memref<1160x128xf32, #tpu.memory_space<vmem>>, vector<64x32xf32>
    %cst_163 = arith.constant dense<0.000000e+00> : vector<2x32xf32>
    %436 = tpu.matmul %434, %435, %cst_163 {dimension_numbers = #tpu.dot_dimension_numbers<[1], [0], [0], [1], [0, 0, 1, 1], [], []>} : vector<2x64xf32>, vector<64x32xf32>, vector<2x32xf32> -> vector<2x32xf32>
    %c960 = arith.constant 960 : index
    %c0_164 = arith.constant 0 : index
    %437 = vector.load %arg7[%c960, %c0_164] : memref<1160x128xf32, #tpu.memory_space<vmem>>, vector<1x32xf32>
    %438 = vector.broadcast %437 : vector<1x32xf32> to vector<2x32xf32>
    %439 = arith.addf %436, %438 : vector<2x32xf32>
    %440 = arith.mulf %439, %439 : vector<2x32xf32>
    %cst_165 = arith.constant dense<0.000000e+00> : vector<2xf32>
    %441 = vector.multi_reduction <add>, %440, %cst_165 [1] : vector<2x32xf32> to vector<2xf32>
    %442 = vector.shape_cast %441 : vector<2xf32> to vector<2x1xf32>
    %cst_166 = arith.constant 1.000000e-24 : f32
    %443 = vector.broadcast %cst_166 : f32 to vector<2x1xf32>
    %444 = arith.maximumf %442, %443 : vector<2x1xf32>
    %445 = math.rsqrt %444 : vector<2x1xf32>
    %446 = vector.broadcast %445 : vector<2x1xf32> to vector<2x32xf32>
    %447 = arith.mulf %439, %446 : vector<2x32xf32>
    %c968 = arith.constant 968 : index
    %c0_167 = arith.constant 0 : index
    %448 = vector.load %arg7[%c968, %c0_167] : memref<1160x128xf32, #tpu.memory_space<vmem>>, vector<1x32xf32>
    %449 = vector.broadcast %448 : vector<1x32xf32> to vector<2x32xf32>
    %450 = arith.mulf %447, %449 : vector<2x32xf32>
    %c976 = arith.constant 976 : index
    %c0_168 = arith.constant 0 : index
    %451 = vector.load %arg7[%c976, %c0_168] : memref<1160x128xf32, #tpu.memory_space<vmem>>, vector<1x32xf32>
    %452 = vector.broadcast %451 : vector<1x32xf32> to vector<2x32xf32>
    %453 = arith.addf %450, %452 : vector<2x32xf32>
    %cst_169 = arith.constant 0.000000e+00 : f32
    %454 = vector.broadcast %cst_169 : f32 to vector<2x32xf32>
    %455 = arith.maximumf %453, %454 : vector<2x32xf32>
    %456 = tpu.concatenate %405, %430, %455 in 1 : vector<2x32xf32>, vector<2x32xf32>, vector<2x32xf32> -> vector<2x96xf32>
    %cst_170 = arith.constant dense<0.000000e+00> : vector<96xf32>
    %457 = vector.multi_reduction <add>, %456, %cst_170 [0] : vector<2x96xf32> to vector<96xf32>
    %458 = vector.shape_cast %457 : vector<96xf32> to vector<1x96xf32>
    %cst_171 = arith.constant 2.000000e+00 : f32
    %459 = vector.broadcast %cst_171 : f32 to vector<1x96xf32>
    %460 = arith.divf %458, %459 : vector<1x96xf32>
    %c0_172 = arith.constant 0 : index
    %c0_173 = arith.constant 0 : index
    %c0_174 = arith.constant 0 : index
    %c0_175 = arith.constant 0 : index
    %461 = vector.load %arg5[%c0_172, %c0_173, %c0_174, %c0_175] : memref<1x1x1x6xf32, #tpu.memory_space<vmem>>, vector<1x1x1x6xf32>
    %462 = vector.shape_cast %461 : vector<1x1x1x6xf32> to vector<1x6xf32>
    %c984 = arith.constant 984 : index
    %c0_176 = arith.constant 0 : index
    %463 = vector.load %arg7[%c984, %c0_176] : memref<1160x128xf32, #tpu.memory_space<vmem>>, vector<6x8xf32>
    %cst_177 = arith.constant dense<0.000000e+00> : vector<1x8xf32>
    %464 = tpu.matmul %462, %463, %cst_177 {dimension_numbers = #tpu.dot_dimension_numbers<[1], [0], [0], [1], [0, 0, 1, 1], [], []>} : vector<1x6xf32>, vector<6x8xf32>, vector<1x8xf32> -> vector<1x8xf32>
    %c992 = arith.constant 992 : index
    %c0_178 = arith.constant 0 : index
    %465 = vector.load %arg7[%c992, %c0_178] : memref<1160x128xf32, #tpu.memory_space<vmem>>, vector<1x8xf32>
    %466 = arith.addf %464, %465 : vector<1x8xf32>
    %cst_179 = arith.constant 0.000000e+00 : f32
    %467 = vector.broadcast %cst_179 : f32 to vector<1x8xf32>
    %468 = arith.maximumf %466, %467 : vector<1x8xf32>
    %469 = tpu.concatenate %460, %468 in 1 : vector<1x96xf32>, vector<1x8xf32> -> vector<1x104xf32>
    %c0_i32 = arith.constant 0 : i32
    %470 = arith.cmpi eq, %arg1, %c0_i32 : i32
    %471 = arith.extui %470 : i1 to i32
    %c0_i32_180 = arith.constant 0 : i32
    %472 = arith.cmpi ne, %471, %c0_i32_180 : i32
    scf.if %472 {
      %c0_203 = arith.constant 0 : index
      %c0_204 = arith.constant 0 : index
      %c0_205 = arith.constant 0 : index
      %519 = vector.load %arg6[%c0_203, %c0_204, %c0_205] : memref<1x1x16xf32, #tpu.memory_space<vmem>>, vector<1x1x16xf32>
      %520 = vector.shape_cast %519 : vector<1x1x16xf32> to vector<1x16xf32>
      %c0_206 = arith.constant 0 : index
      %c0_207 = arith.constant 0 : index
      %c0_208 = arith.constant 0 : index
      %521 = vector.load %arg9[%c0_206, %c0_207, %c0_208] : memref<1x1x16xf32, #tpu.memory_space<vmem>>, vector<1x1x16xf32>
      %522 = vector.shape_cast %521 : vector<1x1x16xf32> to vector<1x16xf32>
      %523 = vector.shape_cast %520 : vector<1x16xf32> to vector<1x1x16xf32>
      tpu.vector_store %arg9[%c0_206, %c0_207, %c0_208], %523 {strides = array<i32>} : memref<1x1x16xf32, #tpu.memory_space<vmem>>, vector<1x1x16xf32>,
    } else {
    }
    %c0_181 = arith.constant 0 : index
    %c0_182 = arith.constant 0 : index
    %c0_183 = arith.constant 0 : index
    %473 = vector.load %arg9[%c0_181, %c0_182, %c0_183] : memref<1x1x16xf32, #tpu.memory_space<vmem>>, vector<1x1x16xf32>
    %474 = vector.shape_cast %473 : vector<1x1x16xf32> to vector<1x16xf32>
    %c1000 = arith.constant 1000 : index
    %c0_184 = arith.constant 0 : index
    %475 = vector.load %arg7[%c1000, %c0_184] : memref<1160x128xf32, #tpu.memory_space<vmem>>, vector<104x48xf32>
    %cst_185 = arith.constant dense<0.000000e+00> : vector<1x48xf32>
    %476 = tpu.matmul %469, %475, %cst_185 {dimension_numbers = #tpu.dot_dimension_numbers<[1], [0], [0], [1], [0, 0, 1, 1], [], []>} : vector<1x104xf32>, vector<104x48xf32>, vector<1x48xf32> -> vector<1x48xf32>
    %c1120 = arith.constant 1120 : index
    %c0_186 = arith.constant 0 : index
    %477 = vector.load %arg7[%c1120, %c0_186] : memref<1160x128xf32, #tpu.memory_space<vmem>>, vector<1x48xf32>
    %478 = arith.addf %476, %477 : vector<1x48xf32>
    %c1104 = arith.constant 1104 : index
    %c0_187 = arith.constant 0 : index
    %479 = vector.load %arg7[%c1104, %c0_187] : memref<1160x128xf32, #tpu.memory_space<vmem>>, vector<16x48xf32>
    %cst_188 = arith.constant dense<0.000000e+00> : vector<1x48xf32>
    %480 = tpu.matmul %474, %479, %cst_188 {dimension_numbers = #tpu.dot_dimension_numbers<[1], [0], [0], [1], [0, 0, 1, 1], [], []>} : vector<1x16xf32>, vector<16x48xf32>, vector<1x48xf32> -> vector<1x48xf32>
    %c1128 = arith.constant 1128 : index
    %c0_189 = arith.constant 0 : index
    %481 = vector.load %arg7[%c1128, %c0_189] : memref<1160x128xf32, #tpu.memory_space<vmem>>, vector<1x48xf32>
    %482 = arith.addf %480, %481 : vector<1x48xf32>
    %483 = vector.extract_strided_slice %478 {offsets = [0, 0], sizes = [1, 16], strides = [1, 1]} : vector<1x48xf32> to vector<1x16xf32>
    %484 = vector.extract_strided_slice %482 {offsets = [0, 0], sizes = [1, 16], strides = [1, 1]} : vector<1x48xf32> to vector<1x16xf32>
    %485 = arith.addf %483, %484 : vector<1x16xf32>
    %486 = arith.negf %485 : vector<1x16xf32>
    %487 = math.exp %486 : vector<1x16xf32>
    %cst_190 = arith.constant 1.000000e+00 : f32
    %488 = vector.broadcast %cst_190 : f32 to vector<1x16xf32>
    %489 = arith.addf %488, %487 : vector<1x16xf32>
    %490 = arith.divf %488, %489 : vector<1x16xf32>
    %491 = vector.extract_strided_slice %478 {offsets = [0, 16], sizes = [1, 16], strides = [1, 1]} : vector<1x48xf32> to vector<1x16xf32>
    %492 = vector.extract_strided_slice %482 {offsets = [0, 16], sizes = [1, 16], strides = [1, 1]} : vector<1x48xf32> to vector<1x16xf32>
    %493 = arith.addf %491, %492 : vector<1x16xf32>
    %494 = arith.negf %493 : vector<1x16xf32>
    %495 = math.exp %494 : vector<1x16xf32>
    %cst_191 = arith.constant 1.000000e+00 : f32
    %496 = vector.broadcast %cst_191 : f32 to vector<1x16xf32>
    %497 = arith.addf %496, %495 : vector<1x16xf32>
    %498 = arith.divf %496, %497 : vector<1x16xf32>
    %499 = vector.extract_strided_slice %478 {offsets = [0, 32], sizes = [1, 16], strides = [1, 1]} : vector<1x48xf32> to vector<1x16xf32>
    %500 = vector.extract_strided_slice %482 {offsets = [0, 32], sizes = [1, 16], strides = [1, 1]} : vector<1x48xf32> to vector<1x16xf32>
    %501 = arith.mulf %490, %500 : vector<1x16xf32>
    %502 = arith.addf %499, %501 : vector<1x16xf32>
    %503 = math.tanh %502 : vector<1x16xf32>
    %cst_192 = arith.constant 1.000000e+00 : f32
    %504 = vector.broadcast %cst_192 : f32 to vector<1x16xf32>
    %505 = arith.subf %504, %498 : vector<1x16xf32>
    %506 = arith.mulf %505, %503 : vector<1x16xf32>
    %507 = arith.mulf %498, %474 : vector<1x16xf32>
    %508 = arith.addf %506, %507 : vector<1x16xf32>
    %c0_193 = arith.constant 0 : index
    %c0_194 = arith.constant 0 : index
    %c0_195 = arith.constant 0 : index
    %509 = vector.load %arg9[%c0_193, %c0_194, %c0_195] : memref<1x1x16xf32, #tpu.memory_space<vmem>>, vector<1x1x16xf32>
    %510 = vector.shape_cast %509 : vector<1x1x16xf32> to vector<1x16xf32>
    %511 = vector.shape_cast %508 : vector<1x16xf32> to vector<1x1x16xf32>
    tpu.vector_store %arg9[%c0_193, %c0_194, %c0_195], %511 {strides = array<i32>} : memref<1x1x16xf32, #tpu.memory_space<vmem>>, vector<1x1x16xf32>,
    %c1136 = arith.constant 1136 : index
    %c0_196 = arith.constant 0 : index
    %512 = vector.load %arg7[%c1136, %c0_196] : memref<1160x128xf32, #tpu.memory_space<vmem>>, vector<16x3xf32>
    %cst_197 = arith.constant dense<0.000000e+00> : vector<1x3xf32>
    %513 = tpu.matmul %508, %512, %cst_197 {dimension_numbers = #tpu.dot_dimension_numbers<[1], [0], [0], [1], [0, 0, 1, 1], [], []>} : vector<1x16xf32>, vector<16x3xf32>, vector<1x3xf32> -> vector<1x3xf32>
    %c1152 = arith.constant 1152 : index
    %c0_198 = arith.constant 0 : index
    %514 = vector.load %arg7[%c1152, %c0_198] : memref<1160x128xf32, #tpu.memory_space<vmem>>, vector<1x3xf32>
    %515 = arith.addf %513, %514 : vector<1x3xf32>
    %c0_199 = arith.constant 0 : index
    %c0_200 = arith.constant 0 : index
    %c0_201 = arith.constant 0 : index
    %c0_202 = arith.constant 0 : index
    %516 = vector.load %arg8[%c0_199, %c0_200, %c0_201, %c0_202] : memref<1x1x1x3xf32, #tpu.memory_space<vmem>>, vector<1x1x1x3xf32>
    %517 = vector.shape_cast %516 : vector<1x1x1x3xf32> to vector<1x3xf32>
    %518 = vector.shape_cast %515 : vector<1x3xf32> to vector<1x1x1x3xf32>
    tpu.vector_store %arg8[%c0_199, %c0_200, %c0_201, %c0_202], %518 {strides = array<i32>} : memref<1x1x1x3xf32, #tpu.memory_space<vmem>>, vector<1x1x1x3xf32>,
    return
  }
  func.func @transform_0(%arg0: i32, %arg1: i32) -> (i32, i32, i32, i32) {
    %c0_i32 = arith.constant 0 : i32
    %c0_i32_0 = arith.constant 0 : i32
    %c0_i32_1 = arith.constant 0 : i32
    return %arg1, %arg0, %c0_i32, %c0_i32_0 : i32, i32, i32, i32
  }
  func.func @transform_1(%arg0: i32, %arg1: i32) -> (i32, i32, i32, i32) {
    %c0_i32 = arith.constant 0 : i32
    %c0_i32_0 = arith.constant 0 : i32
    %c0_i32_1 = arith.constant 0 : i32
    return %arg1, %arg0, %c0_i32, %c0_i32_0 : i32, i32, i32, i32
  }
  func.func @transform_2(%arg0: i32, %arg1: i32) -> (i32, i32, i32, i32) {
    %c0_i32 = arith.constant 0 : i32
    %c0_i32_0 = arith.constant 0 : i32
    %c0_i32_1 = arith.constant 0 : i32
    return %arg1, %arg0, %c0_i32, %c0_i32_0 : i32, i32, i32, i32
  }
  func.func @transform_3(%arg0: i32, %arg1: i32) -> (i32, i32, i32, i32) {
    %c0_i32 = arith.constant 0 : i32
    %c0_i32_0 = arith.constant 0 : i32
    %c0_i32_1 = arith.constant 0 : i32
    return %arg1, %arg0, %c0_i32, %c0_i32_0 : i32, i32, i32, i32
  }
  func.func @transform_4(%arg0: i32, %arg1: i32) -> (i32, i32, i32) {
    %c0_i32 = arith.constant 0 : i32
    %c0_i32_0 = arith.constant 0 : i32
    %c0_i32_1 = arith.constant 0 : i32
    return %arg0, %c0_i32, %c0_i32_0 : i32, i32, i32
  }
  func.func @transform_5(%arg0: i32, %arg1: i32) -> (i32, i32) {
    %c0_i32 = arith.constant 0 : i32
    %c0_i32_0 = arith.constant 0 : i32
    %c0_i32_1 = arith.constant 0 : i32
    return %c0_i32, %c0_i32_0 : i32, i32
  }
  func.func @transform_6(%arg0: i32, %arg1: i32) -> (i32, i32, i32, i32) {
    %c0_i32 = arith.constant 0 : i32
    %c0_i32_0 = arith.constant 0 : i32
    %c0_i32_1 = arith.constant 0 : i32
    return %arg1, %arg0, %c0_i32, %c0_i32_0 : i32, i32, i32, i32
  }
  func.func @transform_7(%arg0: i32, %arg1: i32) -> (i32, i32, i32) {
    %c0_i32 = arith.constant 0 : i32
    %c0_i32_0 = arith.constant 0 : i32
    %c0_i32_1 = arith.constant 0 : i32
    return %arg0, %c0_i32, %c0_i32_0 : i32, i32, i32
  }
}

</mosaic_0001>

<bundles_post_ra>
// kernel: _forward.1
= control target key start
LH: loop header
LB: loop body
LE: loop exit
PB: predicated region body
PF: predicated region fallthrough
CT: control target
= control target key end

     0   :  { %s7003_s0 = inlined_call_operand.vmem [shape: f32[4,2,22,8], index: 0, kind: input, shape index: {}]   ;;  %s7004_s1 = inlined_call_operand.vmem [shape: f32[4,2,22,22], index: 1, kind: input, shape index: {}]   ;;  %s7005_s2 = inlined_call_operand.vmem [shape: f32[4,2,22,1], index: 2, kind: input, shape index: {}]   ;;  %s7006_s3 = inlined_call_operand.vmem [shape: f32[4,2,1,6], index: 3, kind: input, shape index: {}]   ;;  %s7007_s4 = inlined_call_operand.vmem [shape: f32[2,1,16], index: 4, kind: input, shape index: {}]   ;;  %s7008_s5 = inlined_call_operand.hbm [shape: f32[1160,128], index: 5, kind: input, shape index: {}]   ;;  %s7009_s6 = inlined_call_operand.vmem [shape: f32[4,2,1,3], index: 6, kind: output, shape index: {0}]   ;;  %s7010_s7 = inlined_call_operand.hbm [shape: f32[2,1,16], index: 7, kind: output, shape index: {1}]  }
   0x1   :  { %7018 = sst [smem:[#allocation12_spill]] %s7008_s5 }
   0x2   :  { %13 = vsyncpa [#allocation3], 0 }
   0x3   :  { %14 = vsyncpa [#allocation4], 0 }
   0x4   :  { %16 = vsyncpa [#allocation4 + $0x1], 0  ;;  %s6135_s24 = smov 0   ;;  %s6137_s25 = smov 0  }
   0x5   :  { %s6139_s26 = smov 0   ;;  %s6141_s27 = smov 0  }
   0x6   :  { %s6143_s28 = smov 0   ;;  %s6145_s29 = smov 0  }
   0x7   :  { %s6147_s30 = smov 0   ;;  %s6149_s8 = smov 0  }
   0x8 LB: > { %7019 = sst [smem:[#allocation8_spill]] %s6069_s29  ;;  %s4810_s9 = sadd.s32 4294967295, %s6077_s8   ;;  %s6077_s8 = sphi %s6149_s8, %s22_s8   ;;  %s6073_s30 = sphi %s6147_s30, %s7038_s30   ;;  %s6069_s29 = sphi %s6145_s29, %s7037_s29   ;;  %s6065_s28 = sphi %s6143_s28, %s7036_s28   ;;  %s6061_s27 = sphi %s6141_s27, %s7035_s27   ;;  %s6057_s26 = sphi %s6139_s26, %s7041_s26   ;;  %s6053_s25 = sphi %s6137_s25, %s7040_s25   ;;  %s6049_s24 = sphi %s6135_s24, %s7039_s24  }
   0x9   : > { %7020 = sst [smem:[#allocation9_spill]] %s6073_s30  ;;  %s4811_s10 = sadd.s32 4294967294, %s6077_s8  }
   0xa   : > { %s31_s11 = sadd.s32 1, %s6069_s29  ;;  %s34_s12 = sadd.s32 1, %s6073_s30 }
   0xb   : > { %p32_p0 = scmp.ge.s32.totalorder %s31_s11, 4  ;;  %s228_s13 = sadd.s32 1, %s6057_s26 }
   0xc   : > { %p238_p1 = scmp.ne.s32.totalorder %s6057_s26, %s6053_s25  ;;  %p239_p2 = scmp.eq.s32.totalorder %s4810_s9, 7 }
   0xd   : > { %s7043_s11 = smov (%p32_p0, %s31_s11), 0  ;;  %s7045_s12 = smov (!%p32_p0, %s34_s12), %s6073_s30 }
   0xe   : > { %7021 = sst [smem:[#allocation10_spill]] %s7043_s11  ;;  %p6185_p3 = por %p239_p2, %p238_p1 }
   0xf   : > { %p244_p4 = scmp.ne.s32.totalorder %s6053_s25, %s6049_s24  ;;  %p36_p5 = scmp.ge.s32.totalorder %s7045_s12, 2 }
  0x10   : > { %s7022_s14 = scalar_select %p6185_p3, 1, 0 }
  0x11   : > { %p245_p6 = scmp.eq.s32.totalorder %s4811_s10, 7  ;;  %p4812_p7 = scmp.ge.s32.totalorder %s6077_s8, 1 }
  0x12   : > { %p252_p8 = scmp.lt.s32.totalorder %s6077_s8, 9  ;;  %s7047_s12 = smov (%p36_p5, %s7045_s12), 0 }
  0x13   : > { %7023 = sst [smem:[#allocation11_spill]] %s7047_s12  ;;  %p6195_p9 = por %p245_p6, %p244_p4 }
  0x14   : > { %p6199_p10 = pnand %p4812_p7, %p252_p8  ;;  %s225_s17 = ssub.s32 %s6073_s30, %s7047_s12 }
  0x15   : > { %s7024_s15 = scalar_select %p6195_p9, 1, 0 }
  0x16   : > { %s7025_s16 = scalar_select %p6199_p10, 1, 0 }
  0x17   : > { %p226_p11 = scmp.eq.s32.totalorder %s225_s17, 0  ;;  %p5770_p12 = pneg %p6199_p10 }
  0x18   : > { %p6207_p13 = scmp.eq.s32.totalorder %s4810_s9, 0  ;;  %s6079_s20 = smov [#allocation2]  }
  0x19   : > { %s6212_s19 = scalar_select %p226_p11, %s6057_s26, %s228_s13  }
  0x1a   : > { %s7026_s18 = scalar_select %p6207_p13, 1, 0 }
  0x1b   : > { %s264_s21 = sshll.u32 %s6079_s20, 4  ;;  %p6216_p0 = pnand %p6207_p13, %p5770_p12  ;;  %s265_s21 = int_to_ptr.vmem [resolvable:$true] %s264_s21 }
  0x1c   : > { %s7028_s5 = sld [smem:[#allocation12_spill]] }
  0x1d   : > { %p5953_p2 = pneg %p6216_p0 }
  0x22   : > { %s5951_s17 = scalar_lea.hbm %s7028_s5, 18560 }
  0x23   : > { %p5952_p1 = scmp.ne.s32.totalorder %s7028_s5, %s5951_s17  ;;  %p5958_p6 = scmp.lt.u32.totalorder %s5951_s17, %s7028_s5 }
  0x25   : > { %p5954_p4 = pnand %p5953_p2, %p5952_p1 }
  0x27   : > { %p5955_p5 = pneg %p5954_p4 }
  0x29   : > { %p5960_p7 = pnand %p5958_p6, %p5955_p5 }
  0x2b   : > { %5963 = shalt.err (!%p5960_p7)
}
  0x2c   : > { %s5964_s11 = scalar_lea.vmem %s265_s21, 18560  ;;  %p5972_p9 = scmp.lt.s32.totalorder %s265_s21, %s265_s21 }
  0x2d   : > { %p5965_p8 = scmp.ne.s32.totalorder %s265_s21, %s5964_s11  ;;  %p5973_p3 = scmp.lt.s32.totalorder %s5964_s11, %s5964_s11 }
  0x2f   : > { %p5967_p11 = pnand %p5965_p8, %p5953_p2  ;;  %p5974_p13 = por %p5973_p3, %p5972_p9 }
  0x31   : > { %p5968_p12 = pneg %p5967_p11 }
  0x33   : > { %p5975_p10 = pnand %p5974_p13, %p5968_p12 }
  0x35   : > { %5978 = shalt.err (!%p5975_p10)
}
  0x36   : > { %s6080_s12 = smov 128   ;;  %s6081_s23 = smov 8  }
  0x37   : > { %5773 = dma.hbm_to_vmem [thread:$0]  (!%p6216_p0), %s7028_s5, 18560, %s265_s21, [#allocation3], %s6080_s12, %s6080_s12, %s6081_s23  }
  0x38   : > { %p7029_p1 = scmp.ne.s32.totalorder %s7025_s16, 0 }
  0x39   : > { %p7030_p4 = scmp.ne.s32.totalorder (!%p7029_p1), %s7026_s18, 0 }
  0x3a   : > { %332 = sbr.rel (%p7029_p1) target bundleno = 10066 (0x2752), region = 44 }
  0x41   : > { %6040 = dma.done.wait (%p7030_p4), [#allocation3], 18560  }
  0x42   : > { %6042 = vsyncadd (%p7030_p4), [#allocation3], 4294948736  ;;  %p402_p3 = scmp.lt.s32.totalorder %s6061_s27, 3  ;;  %v6082_v0 = vmov 0.0|0.0   ;;  %p404_p9 = scmp.lt.s32.totalorder %s6065_s28, 1  ;;  %vm6083_vm0 = vmmov 0  }
  0x43   : > { %5603 = vmatprep.subr.bf16.mxu0 %v6082_v0  ;;  %5606 = vmatprep.subr.bf16.mxu1 %v6082_v0  ;;  %v6084_v1 = vmov 0.0   ;;  %vm462_vm1 = vcmask 177152   ;;  %vm455_vm2 = vcmask 179200   ;;  %vm481_vm3 = vcmask 1045504   ;;  %s6085_s5 = smov 8   ;;  %v583_v12 = vld [vmem:[#allocation2] sm:$0xff] }
  0x44   : > { %s6248_s16 = scalar_select %p402_p3, %s6061_s27, 3  ;;  %5159 = vmatprep.mubr.msk.f32.mxu0 %vm6083_vm0, %v6084_v1  ;;  %5172 = vmatprep.mubr.msk.f32.mxu1 %vm6083_vm0, %v6084_v1  ;;  %v584_v13 = vld [vmem:[#allocation2 + $0x8] sm:$0xff]  ;;  %v6086_v15 = vmov 0   ;;  %vm579_vm4 = vcmask 64512   ;;  %vm590_vm5 = vcmask 130048   ;;  %vm689_vm6 = vcmask 62464  }
  0x45   : > { %s6255_s18 = scalar_select %p404_p9, %s6065_s28, 1  ;;  %v5607_v14 = vpack.c.bf16 %v584_v13, %v583_v12  ;;  %5860 = vset.pattern.permute.xlu1 %v6086_v15  ;;  %5861 = vset.pattern.permute.xlu0 %v6086_v15  ;;  %v4826_v41 = vld [vmem:[#allocation2 + $0x10] ss:$0 sm:$0xff]  ;;  %v4831_v13 = vld [vmem:[#allocation2 + $0x20] ss:$0 sm:$0xff]  ;;  %vm1177_vm7 = vcmask 48128  }
  0x46   : > { %s5763_s21 = smul.u32 6, %s6248_s16  ;;  %vm1184_vm8 = vcmask 46080   ;;  %vm2346_vm9 = vcmask 195584   ;;  %vm2359_vm10 = vcmask 392192   ;;  %vm2434_vm11 = vcmask 128000   ;;  %s6089_s17 = smov 32  }
  0x47   : > { %s5762_s22 = smul.u32 3, %s6255_s18  ;;  %s438_s20 = scalar_lea.vmem %s7007_s4, %s6255_s18  ;;  %5608 = vmatpush3.bf16.msra.mxu1 %v5607_v14  ;;  %vm2541_vm12 = vcmask 261120   ;;  %vm2796_vm13 = vcmask 13312   ;;  %vm2836_vm14 = vcmask 1041408   ;;  %vm2832_vm15 = vcmask 277504  }
  0x48   : > { %5609 = vmatprep.subr.bf16.mxu1 %v6082_v0  ;;  %s6090_s13 = smov 48   ;;  %p4952_p10 = scmp.ne.s32.totalorder %s6061_s27, 0 }
  0x49   : > { %s408_s12 = sadd.s32 %s5763_s21, %s5762_s22  ;;  %s6087_s22 = smov 16  }
  0x4a   : > { %s6263_s23 = sshll.u32 %s408_s12, 3  ;;  %s4820_s12 = sshll.u32 %s6248_s16, 1 }
  0x4b   : > { %s410_s11 = scalar_lea.vmem %s7003_s0, %s6263_s23  ;;  %s6273_s29 = scalar_lea.vmem %s7004_s1, %s6263_s23 }
  0x4c   : > { %v446_v2 = vld [vmem:[%s410_s11] sm:$0xff]  ;;  %v447_v3 = vld [vmem:[%s410_s11 + $0x8] sm:$0xff]  ;;  %v6279_v5 = vld [vmem:[%s6273_s29 + $0x10] sm:$0x3f]  ;;  %s6312_s21 = scalar_lea.vmem %s7005_s2, %s6263_s23  ;;  %s6891_s23 = sadd.s32 %s4820_s12, %s6255_s18 }
  0x4d   : > { %v6276_v4 = vld [vmem:[%s6273_s29] sm:$0xff]  ;;  %v5604_v6 = vpack.c.bf16 %v447_v3, %v446_v2  ;;  %v6284_v8 = vld [vmem:[%s6273_s29 + $0x8] sm:$0xff]  ;;  %v463_v9 = vsel %vm462_vm1, %v6279_v5, 0.0  ;;  %v448_v11 = vld [vmem:[%s410_s11 + $0x10] sm:$0x3f]  ;;  %vm3651_vm1 = vcmask 15360  }
  0x4e   : > { %v456_v7 = vsel %vm455_vm2, %v6276_v4, 0.0  ;;  %v459_v10 = vsel %vm455_vm2, %v6284_v8, 0.0  ;;  %464 = vadd.xlane.f32.xlu1 %v463_v9  ;;  %v452_v16 = vld [vmem:[%s6312_s21] sm:$0xff]  ;;  %v454_v57 = vld [vmem:[%s6312_s21 + $0x10] sm:$0x3f]  ;;  %v453_v58 = vld [vmem:[%s6312_s21 + $0x8] sm:$0xff]  ;;  %s445_s21 = scalar_lea.vmem %s7009_s6, %s6891_s23 }
  0x4f   : > { %457 = vadd.xlane.f32.xlu0 %v456_v7  ;;  %5605 = vmatpush3.bf16.msra.mxu0 %v5604_v6  ;;  %v4830_v9 = vld [vmem:[#allocation2 + $0x18] ss:$0 sm:$0xff]  ;;  %s6091_s16 = smov 96  }
  0x50   : > { %5157 = vmatprep.subr.mxu0 %v6084_v1 }
  0x53   : > { %460 = vadd.xlane.f32.xlu0 %v459_v10  ;;  %5158 = vmatpush3.msk.msra.mxu0 %vm481_vm3, %v448_v11 }
  0x54   : > { %5160 = vmatmul.mubr.msk.f32.vlgmr.msra.gmra.mrb[0].mxu0 %vm455_vm2, %v6276_v4  ;;  %5612 = vmatprep.subr.bf16.mxu0 %v6082_v0 }
  0x55   : > { %5162 = vmatprep.mubr.msk.f32.mxu0 %vm6083_vm0, %v6084_v1 }
  0x58   : > { %5163 = vmatmul.mubr.msk.f32.gmra.mrb[2].mxu0 %vm455_vm2, %v6284_v8 }
  0x59   : > { %5165 = vmatprep.mubr.msk.f32.mxu0 %vm6083_vm0, %v6084_v1 }
  0x5c   : > { %5166 = vmatmul.mubr.msk.f32.gmra.mrb[4].mxu0 %vm455_vm2, %v6279_v5 }
  0x5d   : > { %5200 = vmatprep.mubr.msk.f32.mxu0 %vm6083_vm0, %v6084_v1 }
  0x5f   : > { %570 = vrot.lane.b32.xlu1 %v446_v2, %s6085_s5 }
  0x63   : > { %574 = vrot.lane.b32.xlu1 %v448_v11, %s6085_s5 }
  0x67   : > { %704 = vperm.xlu1 %5860, %v452_v16   ;;  %v839_v16 = vld [vmem:[#allocation2 + $0x28] sm:$0xff] }
  0x69   : > { %572 = vrot.lane.b32.xlu0 %v447_v3, %s6085_s5 }
  0xdb   : > { %v465_v21 = vpop.xlane.xlu1 %464 }
  0xdc   : > { %v458_v17 = vpop.xlane.xlu0 %457  ;;  %v468_v22 = vmax.f32 %v465_v21, 1.0 }
  0xdd   : > { %v466_v18 = vmax.f32 %v458_v17, 1.0  ;;  %v840_v17 = vld [vmem:[#allocation2 + $0x30] sm:$0xff] }
  0xdf   : > { %5862 = vrcp.f32 %v466_v18  ;;  %v571_v25 = vpop.permute.xlu1 %570  ;;  %v5613_v18 = vpack.c.bf16 %v840_v17, %v839_v16 }
  0xe0   : > { %v461_v19 = vpop.xlane.xlu0 %460 }
  0xe1   : > { %v467_v20 = vmax.f32 %v461_v19, 1.0  ;;  %5614 = vmatpush3.bf16.msra.mxu0 %v5613_v18 }
  0xe2   : > { %5618 = vmatprep.subr.bf16.mxu0 %v6082_v0 }
  0xe3   : > { %5864 = vrcp.f32 %v467_v20  ;;  %v575_v37 = vpop.permute.xlu1 %574 }
  0xe4   : > { %5866 = vrcp.f32 %v468_v22  ;;  %v573_v31 = vpop.permute.xlu0 %572 }
  0xe7   : > { %v6350_v59 = vpop.permute.xlu1 %704 }
  0xe9   : > { %v6315_v23 = vpop.eup %5862 }
  0xed   : > { %v6318_v28 = vpop.eup %5864 }
  0xee   : > { %v6328_v34 = vpop.eup %5866 }
 0x127   : > { %v551_v24 = vpop.f32.mrb[0].mxu0 }
 0x128   : > { %v565_v26 = vmul.f32 %v6315_v23, %v551_v24  ;;  %v5161_v27 = vpop.f32.mrb[1].mxu0 }
 0x12a   : > { %v6321_v29 = vsel %vm579_vm4, %v565_v26, %v571_v25 }
 0x12b   : > { %v556_v30 = vpop.f32.mrb[2].mxu0  ;;  %5173 = vmatmul.mubr.msk.f32.vlgmr.msra.gmra.mrb[0].mxu1 %vm590_vm5, %v6321_v29 }
 0x12c   : > { %v566_v32 = vmul.f32 %v6318_v28, %v556_v30  ;;  %v5164_v33 = vpop.f32.mrb[3].mxu0  ;;  %5175 = vmatprep.mubr.msk.f32.mxu1 %vm6083_vm0, %v6084_v1 }
 0x12e   : > { %v6331_v35 = vsel %vm579_vm4, %v566_v32, %v573_v31 }
 0x12f   : > { %v561_v36 = vpop.f32.mrb[4].mxu0  ;;  %5176 = vmatmul.mubr.msk.f32.gmra.mrb[2].mxu1 %vm590_vm5, %v6331_v35 }
 0x130   : > { %v567_v38 = vmul.f32 %v6328_v34, %v561_v36  ;;  %v5167_v39 = vpop.f32.mrb[5].mxu0  ;;  %5178 = vmatprep.mubr.msk.f32.mxu1 %vm6083_vm0, %v6084_v1 }
 0x132   : > { %v6339_v40 = vsel %vm579_vm4, %v567_v38, %v575_v37 }
 0x133   : > { %5179 = vmatmul.mubr.msk.f32.gmra.mrb[4].mxu1 %vm590_vm5, %v6339_v40 }
 0x134   : > { %5187 = vmatprep.mubr.msk.f32.mxu1 %vm6083_vm0, %v6084_v1 }
 0x1fe   : > { %v666_v42 = vpop.f32.mrb[0].mxu1 }
 0x1ff   : > { %v667_v43 = vadd.f32 %v4826_v41, %v666_v42  ;;  %v5174_v44 = vpop.f32.mrb[1].mxu1 }
 0x201   : > { %v680_v45 = vmul.f32 %v667_v43, %v667_v43 }
 0x202   : > { %v671_v46 = vpop.f32.mrb[2].mxu1 }
 0x203   : > { %v672_v47 = vadd.f32 %v4826_v41, %v671_v46  ;;  %v5177_v48 = vpop.f32.mrb[3].mxu1  ;;  %v683_v49 = vsel %vm579_vm4, %v680_v45, 0.0 }
 0x204   : > { %684 = vadd.xlane.f32.xlu1 %v683_v49 }
 0x205   : > { %v681_v50 = vmul.f32 %v672_v47, %v672_v47 }
 0x206   : > { %v676_v51 = vpop.f32.mrb[4].mxu1 }
 0x207   : > { %v677_v52 = vadd.f32 %v4826_v41, %v676_v51  ;;  %v686_v53 = vsel %vm579_vm4, %v681_v50, 0.0  ;;  %v5180_v54 = vpop.f32.mrb[5].mxu1 }
 0x208   : > { %687 = vadd.xlane.f32.xlu0 %v686_v53  ;;  %v4836_v54 = vld [vmem:[#allocation2 + $0x38] ss:$0 sm:$0xff] }
 0x209   : > { %v682_v55 = vmul.f32 %v677_v52, %v677_v52 }
 0x20b   : > { %v690_v56 = vsel %vm689_vm6, %v682_v55, 0.0 }
 0x20c   : > { %691 = vadd.xlane.f32.xlu0 %v690_v56 }
 0x215   : > { %714 = vperm.xlu1 %5860, %v454_v57  }
 0x222   : > { %709 = vperm.xlu0 %5861, %v453_v58  }
 0x291   : > { %v685_v60 = vpop.xlane.xlu1 %684 }
 0x292   : > { %v693_v61 = vmax.f32 %v685_v60, 1e-24 }
 0x294   : > { %5868 = vrsqrt.f32 %v693_v61 }
 0x295   : > { %v688_v62 = vpop.xlane.xlu0 %687  ;;  %v6359_v26 = vpop.permute.xlu1 %714 }
 0x296   : > { %v694_v63 = vmax.f32 %v688_v62, 1e-24 }
 0x298   : > { %5870 = vrsqrt.f32 %v694_v63 }
 0x299   : > { %v692_v2 = vpop.xlane.xlu0 %691 }
 0x29a   : > { %v695_v3 = vmax.f32 %v692_v2, 1e-24 }
 0x29c   : > { %5872 = vrsqrt.f32 %v695_v3 }
 0x29e   : > { %v5869_v6 = vpop.eup %5868 }
 0x29f   : > { %v699_v7 = vmul.f32 %v5869_v6, %v667_v43 }
 0x2a1   : > { %v717_v10 = vmul.f32 %v6350_v59, %v699_v7  ;;  %v6353_v12 = vpop.permute.xlu0 %709 }
 0x2a2   : > { %v5871_v11 = vpop.eup %5870 }
 0x2a3   : > { %v725_v14 = vmul.f32 %v4830_v9, %v717_v10  ;;  %v700_v15 = vmul.f32 %v5871_v11, %v672_v47 }
 0x2a5   : > { %v733_v19 = vadd.f32 %v4831_v13, %v725_v14  ;;  %v718_v20 = vmul.f32 %v6353_v12, %v700_v15 }
 0x2a6   : > { %v5873_v21 = vpop.eup %5872 }
 0x2a7   : > { %v6356_v22 = vmax.f32 %v733_v19, 0.0  ;;  %v726_v24 = vmul.f32 %v4830_v9, %v718_v20  ;;  %v701_v25 = vmul.f32 %v5873_v21, %v677_v52  ;;  %v4840_v21 = vld [vmem:[#allocation2 + $0x40] ss:$0 sm:$0xff] }
 0x2a9   : > { %827 = vrot.lane.b32.xlu1 %v6356_v22, %s6085_s5  ;;  %v734_v27 = vadd.f32 %v4831_v13, %v726_v24  ;;  %v719_v30 = vmul.f32 %v6359_v26, %v701_v25 }
 0x2ab   : > { %v6364_v31 = vmax.f32 %v734_v27, 0.0  ;;  %v727_v32 = vmul.f32 %v4830_v9, %v719_v30  ;;  %v4841_v27 = vld [vmem:[#allocation2 + $0x48] ss:$0 sm:$0xff] }
 0x2ad   : > { %829 = vrot.lane.b32.xlu1 %v6364_v31, %s6085_s5  ;;  %v5610_v33 = vpack.c.bf16 %v6364_v31, %v6356_v22  ;;  %v735_v36 = vadd.f32 %v4831_v13, %v727_v32 }
 0x2af   : > { %5611 = vmatpush3.bf16.msra.mxu1 %v5610_v33  ;;  %v6370_v37 = vmax.f32 %v735_v36, 0.0  ;;  %v1078_v33 = vld [vmem:[#allocation2 + $0x50] sm:$0xff]  ;;  %v1079_v36 = vld [vmem:[#allocation2 + $0x58] sm:$0xff] }
 0x2b0   : > { %5185 = vmatprep.subr.mxu1 %v6084_v1 }
 0x2b1   : > { %831 = vrot.lane.b32.xlu1 %v6370_v37, %s6085_s5 }
 0x2b3   : > { %5186 = vmatpush3.msk.msra.mxu1 %vm481_vm3, %v6370_v37 }
 0x2b4   : > { %5188 = vmatmul.mubr.msk.f32.vlgmr.msra.gmra.mrb[6].mxu1 %vm455_vm2, %v6276_v4  ;;  %5615 = vmatprep.subr.bf16.mxu1 %v6082_v0 }
 0x2b5   : > { %5190 = vmatprep.mubr.msk.f32.mxu1 %vm6083_vm0, %v6084_v1 }
 0x2b8   : > { %5191 = vmatmul.mubr.msk.f32.gmra.mrb[8].mxu1 %vm455_vm2, %v6284_v8 }
 0x2b9   : > { %5193 = vmatprep.mubr.msk.f32.mxu1 %vm6083_vm0, %v6084_v1 }
 0x2bc   : > { %5194 = vmatmul.mubr.msk.f32.gmra.mrb[10].mxu1 %vm455_vm2, %v6279_v5 }
 0x2bd   : > { %5215 = vmatprep.mubr.msk.f32.mxu1 %vm6083_vm0, %v6084_v1 }
 0x31b   : > { %v828_v38 = vpop.permute.xlu1 %827 }
 0x31f   : > { %v830_v44 = vpop.permute.xlu1 %829 }
 0x323   : > { %v832_v52 = vpop.permute.xlu1 %831 }
 0x387   : > { %v808_v39 = vpop.f32.mrb[6].mxu1 }
 0x388   : > { %v822_v41 = vmul.f32 %v6315_v23, %v808_v39  ;;  %v5189_v42 = vpop.f32.mrb[7].mxu1 }
 0x38a   : > { %v836_v43 = vsel %vm579_vm4, %v822_v41, %v828_v38  ;;  %v5619_v41 = vpack.c.bf16 %v1079_v36, %v1078_v33 }
 0x38b   : > { %v813_v45 = vpop.f32.mrb[8].mxu1  ;;  %5201 = vmatmul.mubr.msk.f32.vlgmr.msra.gmra.mrb[6].mxu0 %vm590_vm5, %v836_v43 }
 0x38c   : > { %v823_v46 = vmul.f32 %v6318_v28, %v813_v45  ;;  %v5192_v47 = vpop.f32.mrb[9].mxu1  ;;  %5203 = vmatprep.mubr.msk.f32.mxu0 %vm6083_vm0, %v6084_v1  ;;  %5620 = vmatpush3.bf16.msra.mxu0 %v5619_v41 }
 0x38d   : > { %5624 = vmatprep.subr.bf16.mxu0 %v6082_v0 }
 0x38e   : > { %v837_v48 = vsel %vm579_vm4, %v823_v46, %v830_v44 }
 0x38f   : > { %v818_v49 = vpop.f32.mrb[10].mxu1  ;;  %5204 = vmatmul.mubr.msk.f32.gmra.mrb[8].mxu0 %vm590_vm5, %v837_v48 }
 0x390   : > { %v824_v50 = vmul.f32 %v6328_v34, %v818_v49  ;;  %v5195_v51 = vpop.f32.mrb[11].mxu1  ;;  %5206 = vmatprep.mubr.msk.f32.mxu0 %vm6083_vm0, %v6084_v1 }
 0x392   : > { %v838_v53 = vsel %vm579_vm4, %v824_v50, %v832_v52 }
 0x393   : > { %5207 = vmatmul.mubr.msk.f32.gmra.mrb[10].mxu0 %vm590_vm5, %v838_v53  ;;  %v1340_v53 = vld [vmem:[#allocation2 + $0x98] sm:$0xff] }
 0x394   : > { %5228 = vmatprep.mubr.msk.f32.mxu0 %vm6083_vm0, %v6084_v1 }
 0x45e   : > { %v921_v55 = vpop.f32.mrb[6].mxu0 }
 0x45f   : > { %v922_v56 = vadd.f32 %v4836_v54, %v921_v55  ;;  %v5202_v57 = vpop.f32.mrb[7].mxu0 }
 0x461   : > { %v935_v58 = vmul.f32 %v922_v56, %v922_v56 }
 0x462   : > { %v926_v60 = vpop.f32.mrb[8].mxu0 }
 0x463   : > { %v927_v61 = vadd.f32 %v4836_v54, %v926_v60  ;;  %v5205_v62 = vpop.f32.mrb[9].mxu0  ;;  %v938_v63 = vsel %vm579_vm4, %v935_v58, 0.0 }
 0x464   : > { %939 = vadd.xlane.f32.xlu1 %v938_v63 }
 0x465   : > { %v936_v2 = vmul.f32 %v927_v61, %v927_v61 }
 0x466   : > { %v931_v3 = vpop.f32.mrb[10].mxu0 }
 0x467   : > { %v932_v6 = vadd.f32 %v4836_v54, %v931_v3  ;;  %v5208_v7 = vpop.f32.mrb[11].mxu0  ;;  %v941_v9 = vsel %vm579_vm4, %v936_v2, 0.0  ;;  %v1341_v54 = vld [vmem:[#allocation2 + $0xa0] sm:$0xff] }
 0x468   : > { %942 = vadd.xlane.f32.xlu0 %v941_v9  ;;  %v5625_v58 = vpack.c.bf16 %v1341_v54, %v1340_v53  ;;  %v1237_v53 = vld [vmem:[#allocation2 + $0x78] sm:$0xff]  ;;  %v1238_v54 = vld [vmem:[#allocation2 + $0x80] sm:$0xff] }
 0x469   : > { %v937_v10 = vmul.f32 %v932_v6, %v932_v6 }
 0x46b   : > { %v944_v11 = vsel %vm689_vm6, %v937_v10, 0.0 }
 0x46c   : > { %945 = vadd.xlane.f32.xlu1 %v944_v11 }
 0x4f1   : > { %v940_v13 = vpop.xlane.xlu1 %939 }
 0x4f2   : > { %v947_v14 = vmax.f32 %v940_v13, 1e-24 }
 0x4f4   : > { %5874 = vrsqrt.f32 %v947_v14  ;;  %v4846_v14 = vld [vmem:[#allocation2 + $0x60] ss:$0 sm:$0xff] }
 0x4f5   : > { %v943_v15 = vpop.xlane.xlu0 %942 }
 0x4f6   : > { %v948_v16 = vmax.f32 %v943_v15, 1e-24 }
 0x4f8   : > { %5876 = vrsqrt.f32 %v948_v16 }
 0x4f9   : > { %v946_v17 = vpop.xlane.xlu1 %945 }
 0x4fa   : > { %v949_v18 = vmax.f32 %v946_v17, 1e-24 }
 0x4fc   : > { %5878 = vrsqrt.f32 %v949_v18 }
 0x4fe   : > { %v5875_v19 = vpop.eup %5874 }
 0x4ff   : > { %v953_v20 = vmul.f32 %v5875_v19, %v922_v56 }
 0x501   : > { %v956_v24 = vmul.f32 %v953_v20, %v6350_v59 }
 0x502   : > { %v5877_v25 = vpop.eup %5876 }
 0x503   : > { %v964_v30 = vmul.f32 %v4840_v21, %v956_v24  ;;  %v954_v32 = vmul.f32 %v5877_v25, %v927_v61 }
 0x505   : > { %v972_v38 = vadd.f32 %v4841_v27, %v964_v30  ;;  %v957_v39 = vmul.f32 %v954_v32, %v6353_v12  ;;  %v4857_v30 = vld [vmem:[#allocation2 + $0xa8] ss:$0 sm:$0xff] }
 0x506   : > { %v5879_v42 = vpop.eup %5878 }
 0x507   : > { %v975_v43 = vmax.f32 %v972_v38, 0.0  ;;  %v965_v44 = vmul.f32 %v4840_v21, %v957_v39  ;;  %v955_v45 = vmul.f32 %v5879_v42, %v932_v6 }
 0x509   : > { %1066 = vrot.lane.b32.xlu1 %v975_v43, %s6085_s5  ;;  %v973_v46 = vadd.f32 %v4841_v27, %v965_v44  ;;  %v958_v47 = vmul.f32 %v955_v45, %v6359_v26 }
 0x50b   : > { %v976_v48 = vmax.f32 %v973_v46, 0.0  ;;  %v966_v49 = vmul.f32 %v4840_v21, %v958_v47 }
 0x50d   : > { %1068 = vrot.lane.b32.xlu0 %v976_v48, %s6085_s5  ;;  %v5616_v50 = vpack.c.bf16 %v976_v48, %v975_v43  ;;  %v974_v51 = vadd.f32 %v4841_v27, %v966_v49 }
 0x50f   : > { %5617 = vmatpush3.bf16.msra.mxu1 %v5616_v50  ;;  %v977_v52 = vmax.f32 %v974_v51, 0.0 }
 0x510   : > { %5213 = vmatprep.subr.mxu1 %v6084_v1 }
 0x511   : > { %1070 = vrot.lane.b32.xlu1 %v977_v52, %s6085_s5 }
 0x513   : > { %5214 = vmatpush3.msk.msra.mxu1 %vm481_vm3, %v977_v52 }
 0x514   : > { %5216 = vmatmul.mubr.msk.f32.vlgmr.msra.gmra.mrb[12].mxu1 %vm455_vm2, %v6276_v4  ;;  %5621 = vmatprep.subr.bf16.mxu1 %v6082_v0 }
 0x515   : > { %5218 = vmatprep.mubr.msk.f32.mxu1 %vm6083_vm0, %v6084_v1 }
 0x518   : > { %5219 = vmatmul.mubr.msk.f32.gmra.mrb[14].mxu1 %vm455_vm2, %v6284_v8 }
 0x519   : > { %5221 = vmatprep.mubr.msk.f32.mxu1 %vm6083_vm0, %v6084_v1 }
 0x51c   : > { %5222 = vmatmul.mubr.msk.f32.gmra.mrb[16].mxu1 %vm455_vm2, %v6279_v5 }
 0x51d   : > { %5243 = vmatprep.mubr.msk.f32.mxu1 %vm6083_vm0, %v6084_v1 }
 0x57b   : > { %v6431_v60 = vpop.permute.xlu1 %1066 }
 0x57f   : > { %v6439_v3 = vpop.permute.xlu0 %1068 }
 0x583   : > { %v6448_v11 = vpop.permute.xlu1 %1070 }
 0x5e7   : > { %v1047_v55 = vpop.f32.mrb[12].mxu1 }
 0x5e8   : > { %v1061_v56 = vmul.f32 %v6315_v23, %v1047_v55  ;;  %v5217_v57 = vpop.f32.mrb[13].mxu1  ;;  %v5622_v55 = vpack.c.bf16 %v1238_v54, %v1237_v53 }
 0x5ea   : > { %v1075_v61 = vsel %vm579_vm4, %v1061_v56, %v6431_v60  ;;  %5623 = vmatpush3.bf16.msra.mxu1 %v5622_v55  ;;  %v1239_v56 = vld [vmem:[#allocation2 + $0x88] sm:$0x3f] }
 0x5eb   : > { %v1052_v62 = vpop.f32.mrb[14].mxu1  ;;  %5229 = vmatmul.mubr.msk.f32.vlgmr.msra.gmra.mrb[12].mxu0 %vm590_vm5, %v1075_v61  ;;  %5241 = vmatprep.subr.mxu1 %v6084_v1 }
 0x5ec   : > { %v1062_v63 = vmul.f32 %v6318_v28, %v1052_v62  ;;  %v5220_v2 = vpop.f32.mrb[15].mxu1  ;;  %5231 = vmatprep.mubr.msk.f32.mxu0 %vm6083_vm0, %v6084_v1  ;;  %5626 = vmatpush3.bf16.msra.mxu0 %v5625_v58 }
 0x5ed   : > { %5630 = vmatprep.subr.bf16.mxu0 %v6082_v0 }
 0x5ee   : > { %v1076_v6 = vsel %vm579_vm4, %v1062_v63, %v6439_v3  ;;  %5242 = vmatpush3.msk.msra.mxu1 %vm481_vm3, %v1239_v56 }
 0x5ef   : > { %v1057_v7 = vpop.f32.mrb[16].mxu1  ;;  %5232 = vmatmul.mubr.msk.f32.gmra.mrb[14].mxu0 %vm590_vm5, %v1076_v6  ;;  %5627 = vmatprep.subr.bf16.mxu1 %v6082_v0 }
 0x5f0   : > { %v1063_v9 = vmul.f32 %v6328_v34, %v1057_v7  ;;  %v5223_v10 = vpop.f32.mrb[17].mxu1  ;;  %5234 = vmatprep.mubr.msk.f32.mxu0 %vm6083_vm0, %v6084_v1 }
 0x5f2   : > { %v1077_v13 = vsel %vm579_vm4, %v1063_v9, %v6448_v11 }
 0x5f3   : > { %5235 = vmatmul.mubr.msk.f32.gmra.mrb[16].mxu0 %vm590_vm5, %v1077_v13  ;;  %v4850_v13 = vld [vmem:[#allocation2 + $0x68] ss:$0 sm:$0xff] }
 0x5f4   : > { %5256 = vmatprep.mubr.msk.f32.mxu0 %vm6083_vm0, %v6084_v1 }
 0x5f7   : > { %5257 = vmatmul.mubr.msk.f32.vlgmr.msra.gmra.mrb[18].mxu0 %vm590_vm5, %v6321_v29 }
 0x5f8   : > { %5259 = vmatprep.mubr.msk.f32.mxu0 %vm6083_vm0, %v6084_v1 }
 0x5fb   : > { %5260 = vmatmul.mubr.msk.f32.gmra.mrb[20].mxu0 %vm590_vm5, %v6331_v35 }
 0x5fc   : > { %5262 = vmatprep.mubr.msk.f32.mxu0 %vm6083_vm0, %v6084_v1 }
 0x5ff   : > { %5263 = vmatmul.mubr.msk.f32.gmra.mrb[22].mxu0 %vm590_vm5, %v6339_v40 }
 0x600   : > { %5284 = vmatprep.mubr.msk.f32.mxu0 %vm6083_vm0, %v6084_v1 }
 0x6be   : > { %v1160_v15 = vpop.f32.mrb[12].mxu0 }
 0x6bf   : > { %v1161_v16 = vadd.f32 %v4846_v14, %v1160_v15  ;;  %v5230_v17 = vpop.f32.mrb[13].mxu0 }
 0x6c1   : > { %v1174_v29 = vmul.f32 %v1161_v16, %v1161_v16 }
 0x6c2   : > { %v1165_v18 = vpop.f32.mrb[14].mxu0 }
 0x6c3   : > { %v1166_v19 = vadd.f32 %v4846_v14, %v1165_v18  ;;  %v5233_v20 = vpop.f32.mrb[15].mxu0  ;;  %v1178_v35 = vsel %vm1177_vm7, %v1174_v29, 0.0  ;;  %v4851_v18 = vld [vmem:[#allocation2 + $0x70] ss:$0 sm:$0xff] }
 0x6c4   : > { %1179 = vadd.xlane.f32.xlu1 %v1178_v35 }
 0x6c5   : > { %v1175_v21 = vmul.f32 %v1166_v19, %v1166_v19 }
 0x6c6   : > { %v1170_v24 = vpop.f32.mrb[16].mxu0 }
 0x6c7   : > { %v6468_v25 = vadd.f32 %v4846_v14, %v1170_v24  ;;  %v5236_v40 = vpop.f32.mrb[17].mxu0  ;;  %v1181_v27 = vsel %vm1177_vm7, %v1175_v21, 0.0 }
 0x6c8   : > { %1182 = vadd.xlane.f32.xlu0 %v1181_v27 }
 0x6c9   : > { %v1176_v32 = vmul.f32 %v6468_v25, %v6468_v25 }
 0x6ca   : > { %v1413_v33 = vpop.f32.mrb[18].mxu0 }
 0x6cb   : > { %v6473_v36 = vadd.f32 %v4857_v30, %v1413_v33  ;;  %v5258_v38 = vpop.f32.mrb[19].mxu0  ;;  %v1185_v39 = vsel %vm1184_vm8, %v1176_v32, 0.0 }
 0x6cc   : > { %1186 = vadd.xlane.f32.xlu1 %v1185_v39 }
 0x6cd   : > { %v1427_v41 = vmul.f32 %v6473_v36, %v6473_v36 }
 0x6ce   : > { %v1418_v42 = vpop.f32.mrb[20].mxu0 }
 0x6cf   : > { %v6478_v43 = vadd.f32 %v4857_v30, %v1418_v42  ;;  %v5261_v44 = vpop.f32.mrb[21].mxu0  ;;  %v1430_v45 = vsel %vm579_vm4, %v1427_v41, 0.0 }
 0x6d0   : > { %1431 = vadd.xlane.f32.xlu0 %v1430_v45  ;;  %v4861_v45 = vld [vmem:[#allocation2 + $0xb0] ss:$0 sm:$0xff] }
 0x6d1   : > { %v1428_v46 = vmul.f32 %v6478_v43, %v6478_v43 }
 0x6d2   : > { %v1423_v47 = vpop.f32.mrb[22].mxu0 }
 0x6d3   : > { %v6483_v48 = vadd.f32 %v4857_v30, %v1423_v47  ;;  %v5264_v49 = vpop.f32.mrb[23].mxu0  ;;  %v1433_v50 = vsel %vm579_vm4, %v1428_v46, 0.0 }
 0x6d4   : > { %1434 = vadd.xlane.f32.xlu1 %v1433_v50 }
 0x6d5   : > { %v1429_v51 = vmul.f32 %v6483_v48, %v6483_v48 }
 0x6d7   : > { %v1436_v52 = vsel %vm689_vm6, %v1429_v51, 0.0 }
 0x6d8   : > { %1437 = vadd.xlane.f32.xlu0 %v1436_v52 }
 0x751   : > { %v1180_v57 = vpop.xlane.xlu1 %1179 }
 0x752   : > { %v1188_v58 = vmax.f32 %v1180_v57, 1e-24 }
 0x754   : > { %5880 = vrsqrt.f32 %v1188_v58 }
 0x755   : > { %v1183_v61 = vpop.xlane.xlu0 %1182 }
 0x756   : > { %v1189_v62 = vmax.f32 %v1183_v61, 1e-24 }
 0x758   : > { %5882 = vrsqrt.f32 %v1189_v62 }
 0x759   : > { %v1187_v63 = vpop.xlane.xlu1 %1186 }
 0x75a   : > { %v1190_v2 = vmax.f32 %v1187_v63, 1e-24 }
 0x75c   : > { %5884 = vrsqrt.f32 %v1190_v2 }
 0x75d   : > { %v1432_v6 = vpop.xlane.xlu0 %1431 }
 0x75e   : > { %v5881_v7 = vpop.eup %5880  ;;  %v1439_v9 = vmax.f32 %v1432_v6, 1e-24 }
 0x75f   : > { %v1194_v10 = vmul.f32 %v5881_v7, %v1161_v16 }
 0x760   : > { %5886 = vrsqrt.f32 %v1439_v9 }
 0x761   : > { %v1435_v14 = vpop.xlane.xlu1 %1434  ;;  %v1197_v15 = vmul.f32 %v1194_v10, %v6350_v59  ;;  %v1232_v10 = vsel %vm579_vm4, %v6364_v31, %v6439_v3  ;;  %v1571_v3 = vld [vmem:[#allocation2 + $0xc8] sm:$0xff] }
 0x762   : > { %v5883_v17 = vpop.eup %5882  ;;  %v1440_v29 = vmax.f32 %v1435_v14, 1e-24 }
 0x763   : > { %v1205_v20 = vmul.f32 %v4850_v13, %v1197_v15  ;;  %v1195_v35 = vmul.f32 %v5883_v17, %v1166_v19 }
 0x764   : > { %5888 = vrsqrt.f32 %v1440_v29 }
 0x765   : > { %v1438_v21 = vpop.xlane.xlu0 %1437  ;;  %v1213_v24 = vadd.f32 %v4851_v18, %v1205_v20  ;;  %v1198_v40 = vmul.f32 %v1195_v35, %v6353_v12 }
 0x766   : > { %v5885_v27 = vpop.eup %5884  ;;  %v1441_v30 = vmax.f32 %v1438_v21, 1e-24 }
 0x767   : > { %v1216_v32 = vmax.f32 %v1213_v24, 0.0  ;;  %v1206_v33 = vmul.f32 %v4850_v13, %v1198_v40  ;;  %v1196_v16 = vmul.f32 %v5885_v27, %v6468_v25  ;;  %v4862_v25 = vld [vmem:[#allocation2 + $0xb8] ss:$0 sm:$0xff] }
 0x768   : > { %5890 = vrsqrt.f32 %v1441_v30 }
 0x769   : > { %1222 = vrot.lane.b32.xlu1 %v1216_v32, %s6087_s22  ;;  %v1214_v38 = vadd.f32 %v4851_v18, %v1206_v33  ;;  %v1199_v39 = vmul.f32 %v1196_v16, %v6359_v26 }
 0x76a   : > { %v5887_v41 = vpop.eup %5886 }
 0x76b   : > { %v1217_v19 = vmax.f32 %v1214_v38, 0.0  ;;  %v1207_v42 = vmul.f32 %v4850_v13, %v1199_v39  ;;  %v1445_v44 = vmul.f32 %v5887_v41, %v6473_v36 }
 0x76d   : > { %1224 = vrot.lane.b32.xlu0 %v1217_v19, %s6087_s22  ;;  %v1215_v46 = vadd.f32 %v4851_v18, %v1207_v42  ;;  %v1448_v47 = vmul.f32 %v1445_v44, %v6350_v59 }
 0x76e   : > { %v5889_v49 = vpop.eup %5888 }
 0x76f   : > { %v1218_v50 = vmax.f32 %v1215_v46, 0.0  ;;  %v1456_v51 = vmul.f32 %v4861_v45, %v1448_v47  ;;  %v1446_v52 = vmul.f32 %v5889_v49, %v6478_v43  ;;  %v4867_v46 = vld [vmem:[#allocation2 + $0xd0] ss:$0 sm:$0xff] }
 0x771   : > { %1226 = vrot.lane.b32.xlu1 %v1218_v50, %s6087_s22  ;;  %v1464_v53 = vadd.f32 %v4862_v25, %v1456_v51  ;;  %v1449_v54 = vmul.f32 %v1446_v52, %v6353_v12 }
 0x772   : > { %v5891_v55 = vpop.eup %5890 }
 0x773   : > { %v6503_v56 = vmax.f32 %v1464_v53, 0.0  ;;  %v1457_v36 = vmul.f32 %v4861_v45, %v1449_v54  ;;  %v1447_v57 = vmul.f32 %v5891_v55, %v6483_v48  ;;  %v1231_v48 = vsel %vm579_vm4, %v6356_v22, %v6431_v60 }
 0x774   : > { %v1233_v60 = vsel %vm579_vm4, %v6370_v37, %v6448_v11  ;;  %v1570_v37 = vld [vmem:[#allocation2 + $0xc0] sm:$0xff] }
 0x775   : > { %1558 = vrot.lane.b32.xlu1 %v6503_v56, %s6085_s5  ;;  %v1465_v58 = vadd.f32 %v4862_v25, %v1457_v36  ;;  %v1450_v61 = vmul.f32 %v1447_v57, %v6359_v26  ;;  %v5631_v11 = vpack.c.bf16 %v1571_v3, %v1570_v37  ;;  %v4872_v3 = vld [vmem:[#allocation2 + $0xe0] ss:$0 sm:$0xff] }
 0x777   : > { %v6509_v62 = vmax.f32 %v1465_v58, 0.0  ;;  %v1458_v43 = vmul.f32 %v4861_v45, %v1450_v61  ;;  %5632 = vmatpush3.bf16.msra.mxu0 %v5631_v11 }
 0x778   : > { %5636 = vmatprep.subr.bf16.mxu0 %v6082_v0 }
 0x779   : > { %1560 = vrot.lane.b32.xlu0 %v6509_v62, %s6085_s5  ;;  %v1466_v63 = vadd.f32 %v4862_v25, %v1458_v43  ;;  %v5628_v9 = vpack.c.bf16 %v6509_v62, %v6503_v56 }
 0x77b   : > { %v6513_v2 = vmax.f32 %v1466_v63, 0.0 }
 0x77d   : > { %1562 = vrot.lane.b32.xlu1 %v6513_v2, %s6085_s5 }
 0x7db   : > { %v1223_v6 = vpop.permute.xlu1 %1222 }
 0x7dc   : > { %v1234_v7 = vsel %vm590_vm5, %v1231_v48, %v1223_v6 }
 0x7dd   : > { %5244 = vmatmul.mubr.msk.f32.vlgmr.msra.gmra.mrb[18].mxu1 %vm455_vm2, %v1234_v7 }
 0x7de   : > { %5629 = vmatpush3.bf16.msra.mxu1 %v5628_v9  ;;  %5246 = vmatprep.mubr.msk.f32.mxu1 %vm6083_vm0, %v6084_v1 }
 0x7df   : > { %v1225_v13 = vpop.permute.xlu0 %1224  ;;  %5269 = vmatprep.subr.mxu1 %v6084_v1 }
 0x7e0   : > { %v1235_v22 = vsel %vm590_vm5, %v1232_v10, %v1225_v13 }
 0x7e1   : > { %5247 = vmatmul.mubr.msk.f32.gmra.mrb[20].mxu1 %vm455_vm2, %v1235_v22 }
 0x7e2   : > { %5270 = vmatpush3.msk.msra.mxu1 %vm481_vm3, %v6513_v2  ;;  %5249 = vmatprep.mubr.msk.f32.mxu1 %vm6083_vm0, %v6084_v1 }
 0x7e3   : > { %v1227_v14 = vpop.permute.xlu1 %1226  ;;  %5633 = vmatprep.subr.bf16.mxu1 %v6082_v0 }
 0x7e4   : > { %v1236_v31 = vsel %vm590_vm5, %v1233_v60, %v1227_v14  ;;  %v4871_v14 = vld [vmem:[#allocation2 + $0xd8] ss:$0 sm:$0xff] }
 0x7e5   : > { %5250 = vmatmul.mubr.msk.f32.gmra.mrb[22].mxu1 %vm455_vm2, %v1236_v31 }
 0x7e6   : > { %5271 = vmatprep.mubr.msk.f32.mxu1 %vm6083_vm0, %v6084_v1 }
 0x7e7   : > { %v1559_v27 = vpop.permute.xlu1 %1558 }
 0x7e9   : > { %5272 = vmatmul.mubr.msk.f32.vlgmr.msra.gmra.mrb[24].mxu1 %vm455_vm2, %v6276_v4 }
 0x7ea   : > { %5274 = vmatprep.mubr.msk.f32.mxu1 %vm6083_vm0, %v6084_v1 }
 0x7eb   : > { %v1561_v38 = vpop.permute.xlu0 %1560 }
 0x7ed   : > { %5275 = vmatmul.mubr.msk.f32.gmra.mrb[26].mxu1 %vm455_vm2, %v6284_v8 }
 0x7ee   : > { %5277 = vmatprep.mubr.msk.f32.mxu1 %vm6083_vm0, %v6084_v1 }
 0x7ef   : > { %v1563_v44 = vpop.permute.xlu1 %1562 }
 0x7f1   : > { %5278 = vmatmul.mubr.msk.f32.gmra.mrb[28].mxu1 %vm455_vm2, %v6279_v5 }
 0x7f2   : > { %5299 = vmatprep.mubr.msk.f32.mxu1 %vm6083_vm0, %v6084_v1 }
 0x8b0   : > { %v6557_v15 = vpop.f32.mrb[18].mxu1 }
 0x8b1   : > { %v5245_v17 = vpop.f32.mrb[19].mxu1 }
 0x8b4   : > { %v6559_v29 = vpop.f32.mrb[20].mxu1 }
 0x8b5   : > { %v5248_v18 = vpop.f32.mrb[21].mxu1 }
 0x8b8   : > { %v6561_v20 = vpop.f32.mrb[22].mxu1 }
 0x8b9   : > { %v5251_v35 = vpop.f32.mrb[23].mxu1 }
 0x8bc   : > { %v1539_v21 = vpop.f32.mrb[24].mxu1 }
 0x8bd   : > { %v1553_v24 = vmul.f32 %v6315_v23, %v1539_v21  ;;  %v5273_v40 = vpop.f32.mrb[25].mxu1 }
 0x8bf   : > { %v1567_v30 = vsel %vm579_vm4, %v1553_v24, %v1559_v27 }
 0x8c0   : > { %v1544_v32 = vpop.f32.mrb[26].mxu1  ;;  %5285 = vmatmul.mubr.msk.f32.vlgmr.msra.gmra.mrb[24].mxu0 %vm590_vm5, %v1567_v30 }
 0x8c1   : > { %v1554_v33 = vmul.f32 %v6318_v28, %v1544_v32  ;;  %v5276_v16 = vpop.f32.mrb[27].mxu1  ;;  %5287 = vmatprep.mubr.msk.f32.mxu0 %vm6083_vm0, %v6084_v1 }
 0x8c3   : > { %v1568_v39 = vsel %vm579_vm4, %v1554_v33, %v1561_v38 }
 0x8c4   : > { %v1549_v41 = vpop.f32.mrb[28].mxu1  ;;  %5288 = vmatmul.mubr.msk.f32.gmra.mrb[26].mxu0 %vm590_vm5, %v1568_v39 }
 0x8c5   : > { %v1555_v19 = vmul.f32 %v6328_v34, %v1549_v41  ;;  %v5279_v42 = vpop.f32.mrb[29].mxu1  ;;  %5290 = vmatprep.mubr.msk.f32.mxu0 %vm6083_vm0, %v6084_v1 }
 0x8c7   : > { %v1569_v45 = vsel %vm579_vm4, %v1555_v19, %v1563_v44  ;;  %v4852_v19 = vld [vmem:[#allocation2 + $0x90] ss:$0 sm:$0xff] }
 0x8c8   : > { %5291 = vmatmul.mubr.msk.f32.gmra.mrb[28].mxu0 %vm590_vm5, %v1569_v45  ;;  %v1334_v44 = vadd.f32 %v4852_v19, %v6561_v20 }
 0x8c9   : > { %5312 = vmatprep.mubr.msk.f32.mxu0 %vm6083_vm0, %v6084_v1 }
 0x8ca   : > { %v1339_v45 = vmax.f32 %v1334_v44, 0.0 }
 0x993   : > { %v1652_v47 = vpop.f32.mrb[24].mxu0 }
 0x994   : > { %v1653_v49 = vadd.f32 %v4867_v46, %v1652_v47  ;;  %v5286_v25 = vpop.f32.mrb[25].mxu0  ;;  %v1329_v47 = vadd.f32 %v4852_v19, %v6559_v29 }
 0x995   : > { %v1809_v25 = vld [vmem:[#allocation2 + $0xe8] sm:$0xff] }
 0x996   : > { %v1666_v50 = vmul.f32 %v1653_v49, %v1653_v49 }
 0x997   : > { %v1657_v51 = vpop.f32.mrb[26].mxu0 }
 0x998   : > { %v1658_v52 = vadd.f32 %v4867_v46, %v1657_v51  ;;  %v5289_v53 = vpop.f32.mrb[27].mxu0  ;;  %v1669_v54 = vsel %vm579_vm4, %v1666_v50, 0.0  ;;  %v1810_v50 = vld [vmem:[#allocation2 + $0xf0] sm:$0xff] }
 0x999   : > { %1670 = vadd.xlane.f32.xlu0 %v1669_v54  ;;  %v5637_v51 = vpack.c.bf16 %v1810_v50, %v1809_v25 }
 0x99a   : > { %v1667_v55 = vmul.f32 %v1658_v52, %v1658_v52 }
 0x99b   : > { %v1662_v36 = vpop.f32.mrb[28].mxu0  ;;  %5638 = vmatpush3.bf16.msra.mxu0 %v5637_v51 }
 0x99c   : > { %v1663_v57 = vadd.f32 %v4867_v46, %v1662_v36  ;;  %v5292_v58 = vpop.f32.mrb[29].mxu0  ;;  %v1672_v61 = vsel %vm579_vm4, %v1667_v55, 0.0  ;;  %5642 = vmatprep.subr.bf16.mxu0 %v6082_v0 }
 0x99d   : > { %1673 = vadd.xlane.f32.xlu1 %v1672_v61 }
 0x99e   : > { %v1668_v43 = vmul.f32 %v1663_v57, %v1663_v57 }
 0x9a0   : > { %v1675_v63 = vsel %vm689_vm6, %v1668_v43, 0.0 }
 0x9a1   : > { %1676 = vadd.xlane.f32.xlu0 %v1675_v63 }
 0xa26   : > { %v1671_v48 = vpop.xlane.xlu0 %1670 }
 0xa27   : > { %v1678_v6 = vmax.f32 %v1671_v48, 1e-24 }
 0xa29   : > { %5892 = vrsqrt.f32 %v1678_v6 }
 0xa2a   : > { %v1674_v7 = vpop.xlane.xlu1 %1673 }
 0xa2b   : > { %v1679_v9 = vmax.f32 %v1674_v7, 1e-24 }
 0xa2d   : > { %5894 = vrsqrt.f32 %v1679_v9 }
 0xa2e   : > { %v1677_v10 = vpop.xlane.xlu0 %1676 }
 0xa2f   : > { %v1680_v13 = vmax.f32 %v1677_v10, 1e-24 }
 0xa31   : > { %5896 = vrsqrt.f32 %v1680_v13 }
 0xa33   : > { %v5893_v22 = vpop.eup %5892 }
 0xa34   : > { %v1684_v60 = vmul.f32 %v5893_v22, %v1653_v49  ;;  %v1338_v49 = vmax.f32 %v1329_v47, 0.0 }
 0xa36   : > { %v1687_v31 = vmul.f32 %v1684_v60, %v6350_v59 }
 0xa37   : > { %v5895_v37 = vpop.eup %5894 }
 0xa38   : > { %v1695_v11 = vmul.f32 %v4871_v14, %v1687_v31  ;;  %v1685_v17 = vmul.f32 %v5895_v37, %v1658_v52 }
 0xa3a   : > { %v1703_v18 = vadd.f32 %v4872_v3, %v1695_v11  ;;  %v1688_v35 = vmul.f32 %v1685_v17, %v6353_v12 }
 0xa3b   : > { %v5897_v21 = vpop.eup %5896 }
 0xa3c   : > { %v1706_v24 = vmax.f32 %v1703_v18, 0.0  ;;  %v1696_v40 = vmul.f32 %v4871_v14, %v1688_v35  ;;  %v1686_v27 = vmul.f32 %v5897_v21, %v1663_v57  ;;  %v5942_v35 = vld [vmem:[%s6273_s29] sm:$0xff]  ;;  %v5943_v21 = vld [vmem:[%s6273_s29 + $0x8] sm:$0xff] }
 0xa3e   : > { %1797 = vrot.lane.b32.xlu0 %v1706_v24, %s6085_s5  ;;  %v1704_v30 = vadd.f32 %v4872_v3, %v1696_v40  ;;  %v1689_v32 = vmul.f32 %v1686_v27, %v6359_v26  ;;  %v5944_v40 = vld [vmem:[%s6273_s29 + $0x10] sm:$0x3f]  ;;  %s6088_s29 = smov 24  }
 0xa40   : > { %v1707_v33 = vmax.f32 %v1704_v30, 0.0  ;;  %v1697_v16 = vmul.f32 %v4871_v14, %v1689_v32 }
 0xa42   : > { %1799 = vrot.lane.b32.xlu1 %v1707_v33, %s6085_s5  ;;  %v5634_v38 = vpack.c.bf16 %v1707_v33, %v1706_v24  ;;  %v1705_v39 = vadd.f32 %v4872_v3, %v1697_v16  ;;  %v5643_v24 = vpack.c.bf16 %v5943_v21, %v5942_v35 }
 0xa44   : > { %5635 = vmatpush3.bf16.msra.mxu1 %v5634_v38  ;;  %v1708_v41 = vmax.f32 %v1705_v39, 0.0 }
 0xa45   : > { %5297 = vmatprep.subr.mxu1 %v6084_v1 }
 0xa46   : > { %1801 = vrot.lane.b32.xlu1 %v1708_v41, %s6085_s5  ;;  %s435_s5 = scalar_lea.vmem %s7006_s3, %s6891_s23 }
 0xa48   : > { %5298 = vmatpush3.msk.msra.mxu1 %vm481_vm3, %v1708_v41 }
 0xa49   : > { %5300 = vmatmul.mubr.msk.f32.vlgmr.msra.gmra.mrb[30].mxu1 %vm455_vm2, %v6276_v4  ;;  %5639 = vmatprep.subr.bf16.mxu1 %v6082_v0  ;;  %v1324_v4 = vadd.f32 %v4852_v19, %v6557_v15 }
 0xa4a   : > { %5302 = vmatprep.mubr.msk.f32.mxu1 %vm6083_vm0, %v6084_v1 }
 0xa4b   : > { %v1337_v42 = vmax.f32 %v1324_v4, 0.0 }
 0xa4d   : > { %5303 = vmatmul.mubr.msk.f32.gmra.mrb[32].mxu1 %vm455_vm2, %v6284_v8  ;;  %v1966_v46 = vsel %vm1177_vm7, %v1337_v42, -inf  ;;  %v1972_v8 = vsel %vm1184_vm8, %v1339_v45, -inf }
 0xa4e   : > { %5305 = vmatprep.mubr.msk.f32.mxu1 %vm6083_vm0, %v6084_v1 }
 0xa51   : > { %5306 = vmatmul.mubr.msk.f32.gmra.mrb[34].mxu1 %vm455_vm2, %v6279_v5  ;;  %v1969_v5 = vsel %vm1177_vm7, %v1338_v49, -inf }
 0xa52   : > { %5327 = vmatprep.mubr.msk.f32.mxu1 %vm6083_vm0, %v6084_v1 }
 0xa5d   : > { %1967 = vmax.xlane.f32.xlu0 %v1966_v46 }
 0xa61   : > { %1973 = vmax.xlane.f32.xlu0 %v1972_v8 }
 0xa6a   : > { %1970 = vmax.xlane.f32.xlu1 %v1969_v5 }
 0xab0   : > { %v6609_v15 = vpop.permute.xlu0 %1797 }
 0xab4   : > { %v6611_v53 = vpop.permute.xlu1 %1799 }
 0xab8   : > { %v6613_v57 = vpop.permute.xlu1 %1801 }
 0xaea   : > { %v1968_v20 = vpop.xlane.xlu0 %1967 }
 0xaeb   : > { %v1975_v52 = vsub.f32 %v1337_v42, %v1968_v20 }
 0xaed   : > { %v1978_v54 = vmul.f32 1.442695, %v1975_v52 }
 0xaee   : > { %v1974_v55 = vpop.xlane.xlu0 %1973 }
 0xaef   : > { %5898 = vpow2.f32 %v1978_v54  ;;  %v1977_v29 = vsub.f32 %v1339_v45, %v1974_v55  ;;  %v4877_v45 = vld [vmem:[#allocation2 + $0xf8] ss:$0 sm:$0xff] }
 0xaf1   : > { %v1982_v36 = vmul.f32 1.442695, %v1977_v29 }
 0xaf3   : > { %5900 = vpow2.f32 %v1982_v36 }
 0xaf7   : > { %v1971_v58 = vpop.xlane.xlu1 %1970 }
 0xaf8   : > { %v1976_v61 = vsub.f32 %v1338_v49, %v1971_v58 }
 0xaf9   : > { %v5899_v43 = vpop.eup %5898 }
 0xafa   : > { %v1980_v63 = vmul.f32 1.442695, %v1976_v61  ;;  %v1984_v48 = vsel %vm1177_vm7, %v5899_v43, 0.0 }
 0xafb   : > { %1985 = vadd.xlane.f32.xlu0 %v1984_v48 }
 0xafc   : > { %5902 = vpow2.f32 %v1980_v63 }
 0xafd   : > { %v5901_v6 = vpop.eup %5900 }
 0xafe   : > { %v1990_v7 = vsel %vm1184_vm8, %v5901_v6, 0.0 }
 0xaff   : > { %1991 = vadd.xlane.f32.xlu0 %v1990_v7 }
 0xb06   : > { %v5903_v9 = vpop.eup %5902 }
 0xb07   : > { %v1987_v10 = vsel %vm1177_vm7, %v5903_v9, 0.0 }
 0xb08   : > { %1988 = vadd.xlane.f32.xlu1 %v1987_v10 }
 0xb1c   : > { %v1778_v13 = vpop.f32.mrb[30].mxu1 }
 0xb1d   : > { %v1792_v22 = vmul.f32 %v6315_v23, %v1778_v13  ;;  %v5301_v60 = vpop.f32.mrb[31].mxu1 }
 0xb1f   : > { %v1806_v14 = vsel %vm579_vm4, %v1792_v22, %v6609_v15  ;;  %v4881_v22 = vld [vmem:[#allocation2 + $0x100] ss:$0 sm:$0xff] }
 0xb20   : > { %v1783_v31 = vpop.f32.mrb[32].mxu1  ;;  %5313 = vmatmul.mubr.msk.f32.vlgmr.msra.gmra.mrb[30].mxu0 %vm590_vm5, %v1806_v14 }
 0xb21   : > { %v1793_v37 = vmul.f32 %v6318_v28, %v1783_v31  ;;  %v5304_v3 = vpop.f32.mrb[33].mxu1  ;;  %5315 = vmatprep.mubr.msk.f32.mxu0 %vm6083_vm0, %v6084_v1  ;;  %5644 = vmatpush3.bf16.msra.mxu0 %v5643_v24  ;;  %v4882_v31 = vld [vmem:[#allocation2 + $0x108] ss:$0 sm:$0xff] }
 0xb22   : > { %5334 = vmatprep.subr.mxu0 %v6084_v1 }
 0xb23   : > { %v1807_v11 = vsel %vm579_vm4, %v1793_v37, %v6611_v53 }
 0xb24   : > { %v1788_v23 = vpop.f32.mrb[34].mxu1  ;;  %5316 = vmatmul.mubr.msk.f32.gmra.mrb[32].mxu0 %vm590_vm5, %v1807_v11 }
 0xb25   : > { %v1794_v17 = vmul.f32 %v6328_v34, %v1788_v23  ;;  %5318 = vmatprep.mubr.msk.f32.mxu0 %vm6083_vm0, %v6084_v1  ;;  %v5307_v18 = vpop.f32.mrb[35].mxu1  ;;  %5335 = vmatpush3.msk.msra.mxu0 %vm481_vm3, %v5944_v40 }
 0xb26   : > { %5648 = vmatprep.subr.bf16.mxu0 %v6082_v0 }
 0xb27   : > { %v1808_v28 = vsel %vm579_vm4, %v1794_v17, %v6613_v57 }
 0xb28   : > { %5319 = vmatmul.mubr.msk.f32.gmra.mrb[34].mxu0 %vm590_vm5, %v1808_v28 }
 0xb29   : > { %5336 = vmatprep.mubr.msk.f32.mxu0 %vm6083_vm0, %v6084_v1 }
 0xb88   : > { %v1986_v34 = vpop.xlane.xlu0 %1985 }
 0xb89   : > { %5904 = vrcp.f32 %v1986_v34 }
 0xb8c   : > { %v1992_v27 = vpop.xlane.xlu0 %1991 }
 0xb8d   : > { %5906 = vrcp.f32 %v1992_v27 }
 0xb93   : > { %v5905_v30 = vpop.eup %5904 }
 0xb94   : > { %v1996_v32 = vmul.f32 %v5905_v30, %v5899_v43 }
 0xb95   : > { %v1989_v33 = vpop.xlane.xlu1 %1988 }
 0xb96   : > { %5908 = vrcp.f32 %v1989_v33  ;;  %v6643_v16 = vmul.f32 %v1996_v32, %v6350_v59 }
 0xb97   : > { %v5907_v38 = vpop.eup %5906 }
 0xb98   : > { %2005 = vxpose.xlu1.b32.start [1/3] (short) (narrow) %v6643_v16, 8  ;;  %v1998_v4 = vmul.f32 %v5907_v38, %v5901_v6 }
 0xb9a   : > { %v6653_v44 = vmul.f32 %v1998_v4, %v6359_v26  ;;  %v1961_v4 = vsel %vm579_vm4, %v6509_v62, %v6611_v53  ;;  %v2348_v53 = vld [vmem:[#allocation2 + $0x110] sm:$0xff] }
 0xba0   : > { %v5909_v39 = vpop.eup %5908 }
 0xba1   : > { %v1997_v41 = vmul.f32 %v5909_v39, %v5903_v9  ;;  %v1960_v39 = vsel %vm579_vm4, %v6503_v56, %v6609_v15 }
 0xba3   : > { %v6647_v19 = vmul.f32 %v1997_v41, %v6353_v12 }
 0xba5   : > { %v5646_v42 = vpack.c.bf16 %v6647_v19, %v6643_v16  ;;  %2006 = vxpose.xlu1.b32.cont [2/3] (short) (narrow) %v6647_v19, 8  ;;  %v2350_v16 = vld [vmem:[#allocation2 + $0x120] sm:$0xff] }
 0xba9   : > { %2007 = vxpose.xlu1.b32.end [3/3] (short) (narrow) %v6653_v44, 8 }
 0xbf3   : > { %v1891_v46 = vpop.f32.mrb[30].mxu0 }
 0xbf4   : > { %v1892_v8 = vadd.f32 %v4877_v45, %v1891_v46  ;;  %v5314_v47 = vpop.f32.mrb[31].mxu0 }
 0xbf6   : > { %v1905_v49 = vmul.f32 %v1892_v8, %v1892_v8 }
 0xbf7   : > { %v1896_v5 = vpop.f32.mrb[32].mxu0 }
 0xbf8   : > { %v1897_v25 = vadd.f32 %v4877_v45, %v1896_v5  ;;  %v5317_v50 = vpop.f32.mrb[33].mxu0  ;;  %v1908_v51 = vsel %vm579_vm4, %v1905_v49, 0.0  ;;  %v1962_v49 = vsel %vm579_vm4, %v6513_v2, %v6613_v57  ;;  %v2349_v57 = vld [vmem:[#allocation2 + $0x118] sm:$0xff] }
 0xbf9   : > { %1909 = vadd.xlane.f32.xlu0 %v1908_v51  ;;  %v5649_v19 = vpack.c.bf16 %v2349_v57, %v2348_v53  ;;  %v2352_v50 = vld [vmem:[#allocation2 + $0x130] sm:$0xff]  ;;  %v2353_v51 = vld [vmem:[#allocation2 + $0x138] sm:$0xff]  ;;  %v2715_v53 = vld [vmem:[#allocation2 + $0x1a0] sm:$0xff] }
 0xbfa   : > { %v1906_v20 = vmul.f32 %v1897_v25, %v1897_v25  ;;  %v2716_v57 = vld [vmem:[#allocation2 + $0x1a8] sm:$0xff] }
 0xbfb   : > { %v1901_v52 = vpop.f32.mrb[34].mxu0 }
 0xbfc   : > { %v1902_v54 = vadd.f32 %v4877_v45, %v1901_v52  ;;  %v5320_v55 = vpop.f32.mrb[35].mxu0  ;;  %v1911_v29 = vsel %vm579_vm4, %v1906_v20, 0.0  ;;  %v5655_v20 = vpack.c.bf16 %v2353_v51, %v2352_v50  ;;  %vm3750_vm4 = vcmask 785408  }
 0xbfd   : > { %1912 = vadd.xlane.f32.xlu0 %v1911_v29 }
 0xbfe   : > { %v1907_v36 = vmul.f32 %v1902_v54, %v1902_v54 }
 0xc00   : > { %v1914_v58 = vsel %vm689_vm6, %v1907_v36, 0.0  ;;  %vm3825_vm6 = vcmask 254976  }
 0xc01   : > { %1915 = vadd.xlane.f32.xlu0 %v1914_v58 }
 0xc21   : > { %v2021_v61 = vpop.trf.xlu1 }
 0xc22   : > { %5337 = vmatmul.mubr.msk.f32.vlgmr.msra.gmra.mrb[36].mxu0 %vm455_vm2, %v2021_v61 }
 0xc23   : > { %5365 = vmatprep.mubr.msk.f32.mxu0 %vm6083_vm0, %v6084_v1  ;;  %5650 = vmatpush3.bf16.msra.mxu0 %v5649_v19  ;;  %v2911_v19 = vld [vmem:[#allocation2 + $0x1f8] sm:$0xff] }
 0xc24   : > { %5651 = vmatprep.subr.bf16.mxu0 %v6082_v0 }
 0xc86   : > { %v1910_v43 = vpop.xlane.xlu0 %1909 }
 0xc87   : > { %v1917_v63 = vmax.f32 %v1910_v43, 1e-24 }
 0xc89   : > { %5910 = vrsqrt.f32 %v1917_v63  ;;  %v4891_v63 = vld [vmem:[#allocation2 + $0x140] ss:$0 sm:$0xff] }
 0xc8a   : > { %v1913_v48 = vpop.xlane.xlu0 %1912 }
 0xc8b   : > { %v1918_v6 = vmax.f32 %v1913_v48, 1e-24 }
 0xc8d   : > { %5912 = vrsqrt.f32 %v1918_v6 }
 0xc8e   : > { %v1916_v7 = vpop.xlane.xlu0 %1915 }
 0xc8f   : > { %v1919_v9 = vmax.f32 %v1916_v7, 1e-24 }
 0xc91   : > { %5914 = vrsqrt.f32 %v1919_v9 }
 0xc93   : > { %v5911_v10 = vpop.eup %5910 }
 0xc94   : > { %v1923_v13 = vmul.f32 %v5911_v10, %v1892_v8 }
 0xc96   : > { %v1926_v60 = vmul.f32 %v1923_v13, %v6350_v59 }
 0xc97   : > { %v5913_v14 = vpop.eup %5912 }
 0xc98   : > { %v1934_v37 = vmul.f32 %v4881_v22, %v1926_v60  ;;  %v1924_v3 = vmul.f32 %v5913_v14, %v1897_v25  ;;  %v4893_v14 = vld [vmem:[#allocation2 + $0x148] ss:$0 sm:$0xff] }
 0xc9a   : > { %v1942_v11 = vadd.f32 %v4882_v31, %v1934_v37  ;;  %v1927_v23 = vmul.f32 %v1924_v3, %v6353_v12  ;;  %v4894_v37 = vld [vmem:[#allocation2 + $0x150] ss:$0 sm:$0xff] }
 0xc9b   : > { %v5915_v17 = vpop.eup %5914 }
 0xc9c   : > { %v1945_v18 = vmax.f32 %v1942_v11, 0.0  ;;  %v1935_v28 = vmul.f32 %v4881_v22, %v1927_v23  ;;  %v1925_v35 = vmul.f32 %v5915_v17, %v1902_v54  ;;  %v2532_v11 = vld [vmem:[#allocation2 + $0x158] sm:$0xff]  ;;  %v2533_v23 = vld [vmem:[#allocation2 + $0x160] sm:$0xff] }
 0xc9e   : > { %1951 = vrot.lane.b32.xlu0 %v1945_v18, %s6087_s22  ;;  %v1943_v21 = vadd.f32 %v4882_v31, %v1935_v28  ;;  %v1928_v24 = vmul.f32 %v1925_v35, %v6359_v26  ;;  %v5658_v28 = vpack.c.bf16 %v2533_v23, %v2532_v11  ;;  %v2534_v35 = vld [vmem:[#allocation2 + $0x168] sm:$0xff]  ;;  %v2823_v23 = vld [vmem:[#allocation2 + $0x1d0] sm:$0xff] }
 0xca0   : > { %v1946_v40 = vmax.f32 %v1943_v21, 0.0  ;;  %v1936_v34 = vmul.f32 %v4881_v22, %v1928_v24  ;;  %v2535_v21 = vld [vmem:[#allocation2 + $0x170] sm:$0xff] }
 0xca1   : > { %v5661_v24 = vpack.c.bf16 %v2535_v21, %v2534_v35  ;;  %v2825_v35 = vld [vmem:[#allocation2 + $0x1e0] sm:$0xff] }
 0xca2   : > { %1953 = vrot.lane.b32.xlu0 %v1946_v40, %s6087_s22  ;;  %v1944_v27 = vadd.f32 %v4882_v31, %v1936_v34 }
 0xca4   : > { %v1947_v30 = vmax.f32 %v1944_v27, 0.0 }
 0xca6   : > { %1955 = vrot.lane.b32.xlu0 %v1947_v30, %s6087_s22 }
 0xcf5   : > { %v2181_v32 = vpop.f32.mrb[36].mxu0 }
 0xcf6   : > { %v5338_v33 = vpop.f32.mrb[37].mxu0 }
 0xcf7   : > { %v4897_v33 = vld [vmem:[#allocation2 + $0x178] ss:$0 sm:$0xff] }
 0xd10   : > { %v1952_v38 = vpop.permute.xlu0 %1951 }
 0xd11   : > { %v1963_v41 = vsel %vm590_vm5, %v1960_v39, %v1952_v38 }
 0xd12   : > { %v2002_v8 = vmul.f32 %v1963_v41, %v6350_v59 }
 0xd14   : > { %v1954_v45 = vpop.permute.xlu0 %1953 }
 0xd15   : > { %v1964_v46 = vsel %vm590_vm5, %v1961_v4, %v1954_v45 }
 0xd16   : > { %v2003_v47 = vmul.f32 %v1964_v46, %v6353_v12 }
 0xd18   : > { %v5640_v5 = vpack.c.bf16 %v2003_v47, %v2002_v8  ;;  %v1956_v25 = vpop.permute.xlu0 %1955  ;;  %v2713_v47 = vld [vmem:[#allocation2 + $0x190] sm:$0xff] }
 0xd19   : > { %v1965_v56 = vsel %vm590_vm5, %v1962_v49, %v1956_v25  ;;  %v2714_v49 = vld [vmem:[#allocation2 + $0x198] sm:$0xff] }
 0xd1a   : > { %5641 = vmatpush3.bf16.msra.mxu1 %v5640_v5  ;;  %v2004_v62 = vmul.f32 %v1965_v56, %v6359_v26  ;;  %v5664_v5 = vpack.c.bf16 %v2714_v49, %v2713_v47  ;;  %v4899_v56 = vld [vmem:[#allocation2 + $0x180] ss:$0 sm:$0xff]  ;;  %v4913_v49 = vld [vmem:[#allocation2 + $0x238] ss:$0 sm:$0xff] }
 0xd1b   : > { %5325 = vmatprep.subr.mxu1 %v6084_v1 }
 0xd1e   : > { %5326 = vmatpush3.msk.msra.mxu1 %vm481_vm3, %v2004_v62 }
 0xd1f   : > { %5328 = vmatmul.mubr.msk.f32.vlgmr.msra.gmra.mrb[36].mxu1 %vm455_vm2, %v2021_v61  ;;  %5645 = vmatprep.subr.bf16.mxu1 %v6082_v0 }
 0xd20   : > { %5647 = vmatpush3.bf16.msra.mxu1 %v5646_v42  ;;  %5345 = vmatprep.mubr.msk.f32.mxu1 %vm6083_vm0, %v6084_v1  ;;  %v2351_v42 = vld [vmem:[#allocation2 + $0x128] sm:$0xff] }
 0xd21   : > { %5343 = vmatprep.subr.mxu1 %v6084_v1 }
 0xd24   : > { %5344 = vmatpush3.msk.msra.mxu1 %vm481_vm3, %v6653_v44  ;;  %v5652_v44 = vpack.c.bf16 %v2351_v42, %v2350_v16  ;;  %v5667_v16 = vpack.c.bf16 %v2716_v57, %v2715_v53  ;;  %v2912_v42 = vld [vmem:[#allocation2 + $0x200] sm:$0xff]  ;;  %v3092_v53 = vld [vmem:[#allocation2 + $0x250] sm:$0xff]  ;;  %v3093_v57 = vld [vmem:[#allocation2 + $0x258] sm:$0xff] }
 0xd25   : > { %5346 = vmatmul.mubr.msk.f32.vlgmr.msra.gmra.mrb[38].mxu1 %vm455_vm2, %v2181_v32  ;;  %5348 = vmatprep.subr.mxu1 %v6084_v1  ;;  %vm3645_vm2 = vcmask 9216  }
 0xd26   : > { %5350 = vmatprep.mubr.msk.f32.mxu1 %vm6083_vm0, %v6084_v1  ;;  %5653 = vmatpush3.bf16.msra.mxu0 %v5652_v44 }
 0xd27   : > { %5654 = vmatprep.subr.bf16.mxu0 %v6082_v0 }
 0xd2a   : > { %5656 = vmatpush3.bf16.msra.mxu0 %v5655_v20  ;;  %v5676_v20 = vpack.c.bf16 %v2912_v42, %v2911_v19 }
 0xd2b   : > { %5384 = vmatprep.subr.mxu0 %v6084_v1 }
 0xdf2   : > { %v2109_v59 = vpop.f32.mrb[36].mxu1 }
 0xdf3   : > { %2343 = vrot.lane.b32.xlu1 %v2109_v59, %s6088_s29  ;;  %v5329_v12 = vpop.f32.mrb[37].mxu1  ;;  %5349 = vmatpush3.msk.msra.mxu1 %vm481_vm3, %v2109_v59  ;;  %v4900_v59 = vld [vmem:[#allocation2 + $0x188] ss:$0 sm:$0xff]  ;;  %s6092_s29 = smov 64  }
 0xdf4   : > { %5368 = vmatprep.subr.mxu1 %v6084_v1 }
 0xdf8   : > { %v6701_v26 = vpop.f32.mrb[38].mxu1 }
 0xdf9   : > { %5351 = vmatmul.mubr.msk.f32.vlgmr.msra.gmra.mrb[40].mxu1 %vm1177_vm7, %v6701_v26  ;;  %v5347_v2 = vpop.f32.mrb[39].mxu1  ;;  %v2261_v15 = vsel %vm1184_vm8, %v6701_v26, 0.0  ;;  %vm3936_vm8 = vcmask 523264  }
 0xdfa   : > { %2262 = vadd.xlane.f32.xlu0 %v2261_v15  ;;  %5370 = vmatprep.mubr.msk.f32.mxu1 %vm6083_vm0, %v6084_v1 }
 0xe65   : > { %v2344_v61 = vpop.permute.xlu1 %2343 }
 0xe87   : > { %v2263_v52 = vpop.xlane.xlu0 %2262 }
 0xe88   : > { %v2264_v54 = vmax.f32 %v2263_v52, 1.0 }
 0xe8a   : > { %5916 = vrcp.f32 %v2264_v54  ;;  %v2913_v54 = vld [vmem:[#allocation2 + $0x208] sm:$0xff] }
 0xe94   : > { %v6712_v55 = vpop.eup %5916 }
 0xecc   : > { %v2338_v29 = vpop.f32.mrb[40].mxu1 }
 0xecd   : > { %v2342_v36 = vmul.f32 %v6712_v55, %v2338_v29  ;;  %v5352_v58 = vpop.f32.mrb[41].mxu1  ;;  %v2914_v29 = vld [vmem:[#allocation2 + $0x210] sm:$0xff] }
 0xece   : > { %v5679_v58 = vpack.c.bf16 %v2914_v29, %v2913_v54  ;;  %v4916_v54 = vld [vmem:[#allocation2 + $0x260] ss:$0 sm:$0xff] }
 0xecf   : > { %v6715_v43 = vsel %vm2346_vm9, %v2342_v36, %v2344_v61  ;;  %v2915_v61 = vld [vmem:[#allocation2 + $0x218] sm:$0xff] }
 0xed0   : > { %5366 = vmatmul.mubr.msk.f32.vlgmr.msra.gmra.mrb[38].mxu0 %vm2359_vm10, %v6715_v43 }
 0xed1   : > { %5386 = vmatprep.mubr.msk.f32.mxu0 %vm6083_vm0, %v6084_v1 }
 0xfa3   : > { %v2429_v48 = vpop.f32.mrb[38].mxu0 }
 0xfa4   : > { %v2430_v6 = vadd.f32 %v4891_v63, %v2429_v48  ;;  %v5367_v7 = vpop.f32.mrb[39].mxu0  ;;  %v2916_v63 = vld [vmem:[#allocation2 + $0x220] sm:$0xff] }
 0xfa5   : > { %v5682_v48 = vpack.c.bf16 %v2916_v63, %v2915_v61 }
 0xfa6   : > { %v2433_v9 = vmul.f32 %v2430_v6, %v2430_v6 }
 0xfa8   : > { %v2435_v10 = vsel %vm2434_vm11, %v2433_v9, 0.0 }
 0xfa9   : > { %2436 = vadd.xlane.f32.xlu0 %v2435_v10 }
0x1036   : > { %v2437_v13 = vpop.xlane.xlu0 %2436 }
0x1037   : > { %v2438_v22 = vmax.f32 %v2437_v13, 1e-24 }
0x1039   : > { %5918 = vrsqrt.f32 %v2438_v22 }
0x1043   : > { %v5919_v60 = vpop.eup %5918 }
0x1044   : > { %v2440_v31 = vmul.f32 %v5919_v60, %v2430_v6  ;;  %v4903_v6 = vld [vmem:[#allocation2 + $0x1b0] ss:$0 sm:$0xff]  ;;  %v4910_v60 = vld [vmem:[#allocation2 + $0x228] ss:$0 sm:$0xff] }
0x1046   : > { %v2446_v3 = vmul.f32 %v4893_v14, %v2440_v31 }
0x1048   : > { %v2452_v17 = vadd.f32 %v4894_v37, %v2446_v3 }
0x104a   : > { %v6722_v18 = vmax.f32 %v2452_v17, 0.0  ;;  %v2824_v17 = vld [vmem:[#allocation2 + $0x1d8] sm:$0xff] }
0x104b   : > { %v5673_v21 = vpack.c.bf16 %v2825_v35, %v2824_v17  ;;  %v3273_v35 = vld [vmem:[#allocation2 + $0x290] sm:$0xff] }
0x104c   : > { %2528 = vrot.lane.b32.xlu0 %v6722_v18, %s6087_s22  ;;  %5369 = vmatpush3.msk.msra.mxu1 %vm481_vm3, %v6722_v18 }
0x104d   : > { %5371 = vmatmul.mubr.msk.f32.vlgmr.msra.gmra.mrb[42].mxu1 %vm1177_vm7, %v6701_v26  ;;  %5657 = vmatprep.subr.bf16.mxu1 %v6082_v0 }
0x104e   : > { %5659 = vmatpush3.bf16.msra.mxu1 %v5658_v28  ;;  %5381 = vmatprep.mubr.msk.f32.mxu1 %vm6083_vm0, %v6084_v1 }
0x104f   : > { %5660 = vmatprep.subr.bf16.mxu1 %v6082_v0 }
0x1052   : > { %5662 = vmatpush3.bf16.msra.mxu1 %v5661_v24  ;;  %v2826_v24 = vld [vmem:[#allocation2 + $0x1e8] sm:$0x3] }
0x1053   : > { %5663 = vmatprep.subr.bf16.mxu1 %v6082_v0 }
0x10be   : > { %v2529_v30 = vpop.permute.xlu0 %2528 }
0x1120   : > { %v2523_v40 = vpop.f32.mrb[42].mxu1 }
0x1121   : > { %v2527_v34 = vmul.f32 %v6712_v55, %v2523_v40  ;;  %v5372_v27 = vpop.f32.mrb[43].mxu1 }
0x1123   : > { %v2531_v32 = vsel %vm590_vm5, %v2527_v34, %v2529_v30 }
0x1124   : > { %5382 = vmatmul.mubr.msk.f32.vlgmr.msra.gmra.mrb[44].mxu1 %vm2541_vm12, %v2531_v32 }
0x1125   : > { %5397 = vmatprep.mubr.msk.f32.mxu1 %vm6083_vm0, %v6084_v1  ;;  %5665 = vmatpush3.bf16.msra.mxu1 %v5664_v5 }
0x1126   : > { %5666 = vmatprep.subr.bf16.mxu1 %v6082_v0 }
0x1129   : > { %5668 = vmatpush3.bf16.msra.mxu1 %v5667_v16  ;;  %v5688_v16 = vpack.c.bf16 %v3093_v57, %v3092_v53 }
0x112a   : > { %5675 = vmatprep.subr.bf16.mxu1 %v6082_v0 }
0x11f7   : > { %v2611_v38 = vpop.f32.mrb[44].mxu1 }
0x11f8   : > { %v2612_v39 = vadd.f32 %v4897_v33, %v2611_v38  ;;  %v5383_v41 = vpop.f32.mrb[45].mxu1  ;;  %v4905_v33 = vld [vmem:[#allocation2 + $0x1b8] ss:$0 sm:$0xff] }
0x11fa   : > { %v2615_v4 = vmul.f32 %v2612_v39, %v2612_v39 }
0x11fc   : > { %v2616_v45 = vsel %vm2434_vm11, %v2615_v4, 0.0 }
0x11fd   : > { %2617 = vadd.xlane.f32.xlu1 %v2616_v45 }
0x128a   : > { %v2618_v46 = vpop.xlane.xlu1 %2617 }
0x128b   : > { %v2619_v8 = vmax.f32 %v2618_v46, 1e-24 }
0x128d   : > { %5920 = vrsqrt.f32 %v2619_v8  ;;  %v4912_v8 = vld [vmem:[#allocation2 + $0x230] ss:$0 sm:$0xff] }
0x1297   : > { %v5921_v25 = vpop.eup %5920 }
0x1298   : > { %v2621_v62 = vmul.f32 %v5921_v25, %v2612_v39  ;;  %v4906_v39 = vld [vmem:[#allocation2 + $0x1c0] ss:$0 sm:$0xff] }
0x129a   : > { %v2627_v12 = vmul.f32 %v4899_v56, %v2621_v62 }
0x129c   : > { %v2633_v2 = vadd.f32 %v4900_v59, %v2627_v12 }
0x129e   : > { %v2634_v15 = vmax.f32 %v2633_v2, 0.0  ;;  %v3090_v2 = vld [vmem:[#allocation2 + $0x240] sm:$0xff] }
0x12a0   : > { %2709 = vrot.lane.b32.xlu0 %v2634_v15, %s6087_s22  ;;  %5385 = vmatpush3.msk.msra.mxu0 %vm481_vm3, %v2634_v15 }
0x12a1   : > { %5387 = vmatmul.mubr.msk.f32.vlgmr.msra.gmra.mrb[40].mxu0 %vm1177_vm7, %v6701_v26  ;;  %5669 = vmatprep.subr.bf16.mxu0 %v6082_v0 }
0x12a2   : > { %5410 = vmatprep.mubr.msk.f32.mxu0 %vm6083_vm0, %v6084_v1 }
0x1312   : > { %v6751_v52 = vpop.permute.xlu0 %2709 }
0x1313   : > { %v2820_v62 = vsel %vm590_vm5, %v6722_v18, %v6751_v52  ;;  %v3091_v18 = vld [vmem:[#allocation2 + $0x248] sm:$0xff] }
0x1314   : > { %v5685_v15 = vpack.c.bf16 %v3091_v18, %v3090_v2  ;;  %v4925_v18 = vld [vmem:[#allocation2 + $0x2a8] ss:$0 sm:$0xff] }
0x1374   : > { %v2704_v44 = vpop.f32.mrb[40].mxu0 }
0x1375   : > { %v2708_v50 = vmul.f32 %v6712_v55, %v2704_v44  ;;  %v5388_v51 = vpop.f32.mrb[41].mxu0 }
0x1377   : > { %v2712_v36 = vsel %vm590_vm5, %v2708_v50, %v6751_v52 }
0x1378   : > { %5398 = vmatmul.mubr.msk.f32.vlgmr.msra.gmra.mrb[46].mxu1 %vm2541_vm12, %v2712_v36 }
0x1379   : > { %5677 = vmatpush3.bf16.msra.mxu1 %v5676_v20  ;;  %5425 = vmatprep.mubr.msk.f32.mxu1 %vm6083_vm0, %v6084_v1 }
0x137a   : > { %5678 = vmatprep.subr.bf16.mxu1 %v6082_v0 }
0x137d   : > { %5680 = vmatpush3.bf16.msra.mxu1 %v5679_v58 }
0x137e   : > { %5681 = vmatprep.subr.bf16.mxu1 %v6082_v0 }
0x1381   : > { %5683 = vmatpush3.bf16.msra.mxu1 %v5682_v48 }
0x1382   : > { %5444 = vmatprep.subr.mxu1 %v6084_v1 }
0x1384   : > { %5426 = vmatmul.mubr.msk.f32.vlgmr.msra.gmra.mrb[48].mxu1 %vm2359_vm10, %v6715_v43  ;;  %v2822_v43 = vld [vmem:[#allocation2 + $0x1c8] sm:$0xff] }
0x1385   : > { %5446 = vmatprep.mubr.msk.f32.mxu1 %vm6083_vm0, %v6084_v1  ;;  %v5670_v28 = vpack.c.bf16 %v2823_v23, %v2822_v43  ;;  %v3270_v43 = vld [vmem:[#allocation2 + $0x278] sm:$0xff]  ;;  %v3271_v23 = vld [vmem:[#allocation2 + $0x280] sm:$0xff] }
0x1386   : > { %v5691_v17 = vpack.c.bf16 %v3271_v23, %v3270_v43 }
0x1387   : > { %5671 = vmatpush3.bf16.msra.mxu0 %v5670_v28  ;;  %v3272_v28 = vld [vmem:[#allocation2 + $0x288] sm:$0xff] }
0x1388   : > { %5672 = vmatprep.subr.bf16.mxu0 %v6082_v0 }
0x138b   : > { %5674 = vmatpush3.bf16.msra.mxu0 %v5673_v21  ;;  %v5694_v21 = vpack.c.bf16 %v3273_v35, %v3272_v28 }
0x138c   : > { %5408 = vmatprep.subr.mxu0 %v6084_v1 }
0x138f   : > { %5409 = vmatpush3.msk.msra.mxu0 %vm2836_vm14, %v2826_v24 }
0x1390   : > { %5428 = vmatprep.subr.mxu0 %v6084_v1 }
0x144b   : > { %v2791_v7 = vpop.f32.mrb[46].mxu1 }
0x144c   : > { %v2792_v9 = vadd.f32 %v4903_v6, %v2791_v7  ;;  %v5399_v10 = vpop.f32.mrb[47].mxu1 }
0x144e   : > { %v2795_v13 = vmul.f32 %v2792_v9, %v2792_v9 }
0x1450   : > { %v2797_v22 = vsel %vm2796_vm13, %v2795_v13, 0.0  ;;  %v4919_v13 = vld [vmem:[#allocation2 + $0x270] ss:$0 sm:$0xff] }
0x1451   : > { %2798 = vadd.xlane.f32.xlu0 %v2797_v22 }
0x1457   : > { %v2988_v14 = vpop.f32.mrb[48].mxu1 }
0x1458   : > { %v2989_v31 = vadd.f32 %v4910_v60, %v2988_v14  ;;  %v5427_v37 = vpop.f32.mrb[49].mxu1 }
0x145a   : > { %v2992_v3 = vmul.f32 %v2989_v31, %v2989_v31 }
0x145c   : > { %v2993_v11 = vsel %vm2434_vm11, %v2992_v3, 0.0 }
0x145d   : > { %2994 = vadd.xlane.f32.xlu1 %v2993_v11 }
0x14de   : > { %v2799_v40 = vpop.xlane.xlu0 %2798 }
0x14df   : > { %v2800_v34 = vmax.f32 %v2799_v40, 1e-24 }
0x14e1   : > { %5922 = vrsqrt.f32 %v2800_v34 }
0x14ea   : > { %v2995_v27 = vpop.xlane.xlu1 %2994 }
0x14eb   : > { %v5923_v30 = vpop.eup %5922  ;;  %v2996_v32 = vmax.f32 %v2995_v27, 1e-24 }
0x14ec   : > { %v2802_v38 = vmul.f32 %v5923_v30, %v2792_v9  ;;  %v4918_v9 = vld [vmem:[#allocation2 + $0x268] ss:$0 sm:$0xff] }
0x14ed   : > { %5924 = vrsqrt.f32 %v2996_v32 }
0x14ee   : > { %v2808_v41 = vmul.f32 %v4905_v33, %v2802_v38 }
0x14f0   : > { %v2814_v4 = vadd.f32 %v4906_v39, %v2808_v41  ;;  %v4922_v39 = vld [vmem:[#allocation2 + $0x298] ss:$0 sm:$0xff] }
0x14f2   : > { %v2815_v45 = vmax.f32 %v2814_v4, 0.0 }
0x14f4   : > { %2817 = vrot.lane.b32.xlu1 %v2815_v45, %s6089_s17 }
0x14f7   : > { %v5925_v46 = vpop.eup %5924 }
0x14f8   : > { %v2998_v47 = vmul.f32 %v5925_v46, %v2989_v31  ;;  %v4907_v31 = vld [vmem:[#allocation2 + $0x1f0] ss:$0 sm:$0xff] }
0x14fa   : > { %v3004_v5 = vmul.f32 %v4912_v8, %v2998_v47 }
0x14fc   : > { %v3010_v25 = vadd.f32 %v4913_v49, %v3004_v5 }
0x14fe   : > { %v6772_v56 = vmax.f32 %v3010_v25, 0.0 }
0x1500   : > { %3086 = vrot.lane.b32.xlu0 %v6772_v56, %s6087_s22 }
0x1566   : > { %v2818_v59 = vpop.permute.xlu1 %2817 }
0x1567   : > { %v2821_v12 = vsel %vm2541_vm12, %v2820_v62, %v2818_v59  ;;  %v4924_v59 = vld [vmem:[#allocation2 + $0x2a0] ss:$0 sm:$0xff] }
0x1568   : > { %5411 = vmatmul.mubr.msk.f32.vlgmr.msra.gmra.mrb[42].mxu0 %vm2832_vm15, %v2821_v12 }
0x1569   : > { %5429 = vmatpush3.msk.msra.mxu0 %vm481_vm3, %v6772_v56  ;;  %5430 = vmatprep.mubr.msk.f32.mxu0 %vm6083_vm0, %v6084_v1 }
0x156a   : > { %5684 = vmatprep.subr.bf16.mxu0 %v6082_v0 }
0x156c   : > { %5431 = vmatmul.mubr.msk.f32.vlgmr.msra.gmra.mrb[44].mxu0 %vm1177_vm7, %v6701_v26 }
0x156d   : > { %5441 = vmatprep.mubr.msk.f32.mxu0 %vm6083_vm0, %v6084_v1  ;;  %5686 = vmatpush3.bf16.msra.mxu0 %v5685_v15 }
0x156e   : > { %5687 = vmatprep.subr.bf16.mxu0 %v6082_v0 }
0x1571   : > { %5689 = vmatpush3.bf16.msra.mxu0 %v5688_v16 }
0x1572   : > { %5460 = vmatprep.subr.mxu0 %v6084_v1  ;;  %v3087_v20 = vpop.permute.xlu0 %3086 }
0x163b   : > { %v2906_v19 = vpop.f32.mrb[42].mxu0 }
0x163c   : > { %v5412_v42 = vpop.f32.mrb[43].mxu0  ;;  %v2907_v37 = vadd.f32 %v4907_v31, %v2906_v19  ;;  %v3742_v31 = vld [vmem:[#allocation2 + $0x2f8] sm:$0xff] }
0x163e   : > { %v2910_v3 = vmax.f32 %v2907_v37, 0.0 }
0x163f   : > { %v3081_v44 = vpop.f32.mrb[44].mxu0 }
0x1640   : > { %v3085_v50 = vmul.f32 %v6712_v55, %v3081_v44  ;;  %v5432_v51 = vpop.f32.mrb[45].mxu0  ;;  %v3378_v11 = vsel %vm2796_vm13, %v2910_v3, -inf }
0x1642   : > { %v3089_v52 = vsel %vm590_vm5, %v3085_v50, %v3087_v20 }
0x1643   : > { %5442 = vmatmul.mubr.msk.f32.vlgmr.msra.gmra.mrb[46].mxu0 %vm2541_vm12, %v3089_v52 }
0x1644   : > { %5462 = vmatprep.mubr.msk.f32.mxu0 %vm6083_vm0, %v6084_v1 }
0x1716   : > { %v3168_v29 = vpop.f32.mrb[46].mxu0 }
0x1717   : > { %v3169_v36 = vadd.f32 %v4916_v54, %v3168_v29  ;;  %v5443_v58 = vpop.f32.mrb[47].mxu0 }
0x1718   : > { %v3734_v58 = vld [vmem:[#allocation2 + $0x2b8] sm:$0xff] }
0x1719   : > { %v3172_v61 = vmul.f32 %v3169_v36, %v3169_v36 }
0x171b   : > { %v3173_v63 = vsel %vm2434_vm11, %v3172_v61, 0.0  ;;  %v3735_v61 = vld [vmem:[#allocation2 + $0x2c0] sm:$0xff] }
0x171c   : > { %3174 = vadd.xlane.f32.xlu1 %v3173_v63 }
0x17a9   : > { %v3175_v48 = vpop.xlane.xlu1 %3174 }
0x17aa   : > { %v3176_v6 = vmax.f32 %v3175_v48, 1e-24  ;;  %v3736_v48 = vld [vmem:[#allocation2 + $0x2c8] sm:$0xff] }
0x17ac   : > { %5926 = vrsqrt.f32 %v3176_v6  ;;  %v5700_v6 = vpack.c.bf16 %v3736_v48, %v3735_v61 }
0x17b6   : > { %v5927_v7 = vpop.eup %5926 }
0x17b7   : > { %v3178_v10 = vmul.f32 %v5927_v7, %v3169_v36  ;;  %v3733_v36 = vld [vmem:[#allocation2 + $0x2b0] sm:$0xff] }
0x17b8   : > { %v5697_v63 = vpack.c.bf16 %v3734_v58, %v3733_v36  ;;  %v3737_v7 = vld [vmem:[#allocation2 + $0x2d0] sm:$0xff] }
0x17b9   : > { %v3184_v22 = vmul.f32 %v4918_v9, %v3178_v10  ;;  %v3738_v9 = vld [vmem:[#allocation2 + $0x2d8] sm:$0xff] }
0x17ba   : > { %v5703_v10 = vpack.c.bf16 %v3738_v9, %v3737_v7  ;;  %v4109_v7 = vld [vmem:[#allocation2 + $0x388] sm:$0xff]  ;;  %v4110_v9 = vld [vmem:[#allocation2 + $0x390] sm:$0xff] }
0x17bb   : > { %v3190_v60 = vadd.f32 %v4919_v13, %v3184_v22  ;;  %v3739_v13 = vld [vmem:[#allocation2 + $0x2e0] sm:$0xff]  ;;  %v3740_v22 = vld [vmem:[#allocation2 + $0x2e8] sm:$0xff] }
0x17bd   : > { %v3191_v14 = vmax.f32 %v3190_v60, 0.0  ;;  %v5706_v60 = vpack.c.bf16 %v3740_v22, %v3739_v13  ;;  %v4111_v13 = vld [vmem:[#allocation2 + $0x398] sm:$0xff] }
0x17be   : > { %v5730_v22 = vpack.c.bf16 %v4111_v13, %v4110_v9 }
0x17bf   : > { %3266 = vrot.lane.b32.xlu0 %v3191_v14, %s6087_s22  ;;  %5445 = vmatpush3.msk.msra.mxu1 %vm481_vm3, %v3191_v14  ;;  %v3741_v14 = vld [vmem:[#allocation2 + $0x2f0] sm:$0xff] }
0x17c0   : > { %5447 = vmatmul.mubr.msk.f32.vlgmr.msra.gmra.mrb[50].mxu1 %vm1177_vm7, %v6701_v26  ;;  %5690 = vmatprep.subr.bf16.mxu1 %v6082_v0  ;;  %v5709_v37 = vpack.c.bf16 %v3742_v31, %v3741_v14  ;;  %v4942_v14 = vld [vmem:[#allocation2 + $0x370] ss:$0 sm:$0xff]  ;;  %v4112_v31 = vld [vmem:[#allocation2 + $0x3a0] sm:$0xff] }
0x17c1   : > { %5457 = vmatprep.mubr.msk.f32.mxu1 %vm6083_vm0, %v6084_v1  ;;  %5692 = vmatpush3.bf16.msra.mxu1 %v5691_v17 }
0x17c2   : > { %5693 = vmatprep.subr.bf16.mxu1 %v6082_v0 }
0x17c5   : > { %5695 = vmatpush3.bf16.msra.mxu1 %v5694_v21 }
0x17c6   : > { %5470 = vmatprep.subr.mxu1 %v6084_v1 }
0x17de   : > { %3379 = vmax.xlane.f32.xlu0 %v3378_v11  ;;  %v3744_v11 = vld [vmem:[#allocation2 + $0x308] sm:$0xff] }
0x1831   : > { %v3267_v27 = vpop.permute.xlu0 %3266 }
0x1832   : > { %v3376_v19 = vsel %vm590_vm5, %v6772_v56, %v3267_v27 }
0x186b   : > { %v3380_v32 = vpop.xlane.xlu0 %3379 }
0x186c   : > { %v3381_v33 = vsub.f32 %v2910_v3, %v3380_v32  ;;  %v3743_v3 = vld [vmem:[#allocation2 + $0x300] sm:$0xff] }
0x186d   : > { %v5712_v43 = vpack.c.bf16 %v3744_v11, %v3743_v3  ;;  %v4943_v11 = vld [vmem:[#allocation2 + $0x378] ss:$0 sm:$0xff] }
0x186e   : > { %v3382_v38 = vmul.f32 1.442695, %v3381_v33 }
0x1870   : > { %5928 = vpow2.f32 %v3382_v38 }
0x187a   : > { %v5929_v8 = vpop.eup %5928 }
0x187b   : > { %v3384_v47 = vsel %vm2796_vm13, %v5929_v8, 0.0 }
0x1893   : > { %v3261_v24 = vpop.f32.mrb[50].mxu1 }
0x1894   : > { %v3265_v40 = vmul.f32 %v6712_v55, %v3261_v24  ;;  %v5448_v34 = vpop.f32.mrb[51].mxu1 }
0x1896   : > { %v3269_v30 = vsel %vm590_vm5, %v3265_v40, %v3267_v27  ;;  %v4934_v27 = vld [vmem:[#allocation2 + $0x310] ss:$0 sm:$0xff] }
0x1897   : > { %5458 = vmatmul.mubr.msk.f32.vlgmr.msra.gmra.mrb[52].mxu1 %vm2541_vm12, %v3269_v30 }
0x1898   : > { %5472 = vmatprep.mubr.msk.f32.mxu1 %vm6083_vm0, %v6084_v1 }
0x196a   : > { %v3348_v41 = vpop.f32.mrb[52].mxu1 }
0x196b   : > { %v3349_v4 = vadd.f32 %v4922_v39, %v3348_v41  ;;  %v5459_v45 = vpop.f32.mrb[53].mxu1 }
0x196d   : > { %v3352_v46 = vmul.f32 %v3349_v4, %v3349_v4 }
0x196f   : > { %v3353_v55 = vsel %vm2434_vm11, %v3352_v46, 0.0  ;;  %v4936_v46 = vld [vmem:[#allocation2 + $0x318] ss:$0 sm:$0xff] }
0x1970   : > { %3354 = vadd.xlane.f32.xlu1 %v3353_v55 }
0x1974   : > { %3385 = vadd.xlane.f32.xlu1 %v3384_v47 }
0x19fd   : > { %v3355_v49 = vpop.xlane.xlu1 %3354 }
0x19fe   : > { %v3356_v5 = vmax.f32 %v3355_v49, 1e-24  ;;  %v3923_v49 = vld [vmem:[#allocation2 + $0x328] sm:$0xff] }
0x1a00   : > { %5930 = vrsqrt.f32 %v3356_v5  ;;  %v3924_v5 = vld [vmem:[#allocation2 + $0x330] sm:$0xff] }
0x1a01   : > { %v3386_v25 = vpop.xlane.xlu1 %3385 }
0x1a02   : > { %5932 = vrcp.f32 %v3386_v25 }
0x1a0a   : > { %v5931_v62 = vpop.eup %5930 }
0x1a0b   : > { %v3358_v12 = vmul.f32 %v5931_v62, %v3349_v4 }
0x1a0c   : > { %v5933_v2 = vpop.eup %5932 }
0x1a0d   : > { %v3388_v15 = vmul.f32 %v5933_v2, %v5929_v8  ;;  %v3364_v53 = vmul.f32 %v4924_v59, %v3358_v12  ;;  %v4937_v8 = vld [vmem:[#allocation2 + $0x320] ss:$0 sm:$0xff]  ;;  %v5715_v59 = vpack.c.bf16 %v3924_v5, %v3923_v49  ;;  %v3925_v12 = vld [vmem:[#allocation2 + $0x338] sm:$0xff] }
0x1a0e   : > { %v3926_v2 = vld [vmem:[#allocation2 + $0x340] sm:$0xff] }
0x1a0f   : > { %3389 = vxpose.xlu0.b32.start.end [1/1] (short) (narrow) %v3388_v15, 8  ;;  %5471 = vmatpush3.msk.msra.mxu1 %vm481_vm3, %v3388_v15  ;;  %v3370_v57 = vadd.f32 %v4925_v18, %v3364_v53  ;;  %v5718_v18 = vpack.c.bf16 %v3926_v2, %v3925_v12  ;;  %v3927_v15 = vld [vmem:[#allocation2 + $0x348] sm:$0xff]  ;;  %v3928_v53 = vld [vmem:[#allocation2 + $0x350] sm:$0xff] }
0x1a10   : > { %5696 = vmatprep.subr.bf16.mxu1 %v6082_v0  ;;  %v4948_v2 = vld [vmem:[#allocation2 + $0x3c8] ss:$0 sm:$0xff] }
0x1a11   : > { %v3371_v16 = vmax.f32 %v3370_v57, 0.0  ;;  %v5721_v57 = vpack.c.bf16 %v3928_v53, %v3927_v15  ;;  %v4949_v15 = vld [vmem:[#allocation2 + $0x3d0] ss:$0 sm:$0xff] }
0x1a13   : > { %3373 = vrot.lane.b32.xlu1 %v3371_v16, %s6089_s17  ;;  %v3929_v16 = vld [vmem:[#allocation2 + $0x358] sm:$0xff] }
0x1a85   : > { %v3374_v42 = vpop.permute.xlu1 %3373 }
0x1a86   : > { %v3377_v44 = vsel %vm2541_vm12, %v3376_v19, %v3374_v42  ;;  %v3930_v19 = vld [vmem:[#allocation2 + $0x360] sm:$0xff] }
0x1a87   : > { %5461 = vmatpush3.msk.msra.mxu0 %vm481_vm3, %v3377_v44  ;;  %v5724_v42 = vpack.c.bf16 %v3930_v19, %v3929_v16 }
0x1a88   : > { %5465 = vmatprep.subr.mxu0 %v6084_v1 }
0x1a8f   : > { %v3405_v50 = vpop.trf.xlu0 }
0x1a90   : > { %5463 = vmatmul.mubr.msk.f32.vlgmr.msra.gmra.mrb[48].mxu0 %vm1177_vm7, %v3405_v50 }
0x1a91   : > { %5466 = vmatpush3.msk.msra.mxu0 %vm481_vm3, %v6701_v26  ;;  %5467 = vmatprep.mubr.msk.f32.mxu0 %vm6083_vm0, %v6084_v1 }
0x1a92   : > { %5475 = vmatprep.subr.mxu0 %v6084_v1 }
0x1a94   : > { %5468 = vmatmul.mubr.msk.f32.vlgmr.msra.gmra.mrb[50].mxu0 %vm1177_vm7, %v3405_v50 }
0x1a95   : > { %5477 = vmatprep.mubr.msk.f32.mxu0 %vm6083_vm0, %v6084_v1 }
0x1b63   : > { %v3493_v56 = vpop.f32.mrb[48].mxu0 }
0x1b64   : > { %v5464_v51 = vpop.f32.mrb[49].mxu0  ;;  %3729 = vrot.lane.b32.xlu0 %v3493_v56, %s6090_s13  ;;  %5476 = vmatpush3.msk.msra.mxu0 %vm2836_vm14, %v3493_v56  ;;  %s7031_s13 = sand.u32 1, %s6053_s25  }
0x1b65   : > { %5507 = vmatprep.subr.mxu0 %v6084_v1  ;;  %s6913_s12 = scalar_lea.vmem [#allocation5], %s7031_s13 }
0x1b67   : > { %v3565_v20 = vpop.f32.mrb[50].mxu0 }
0x1b68   : > { %v5469_v26 = vpop.f32.mrb[51].mxu0  ;;  %5473 = vmatmul.mubr.msk.f32.vlgmr.msra.gmra.mrb[54].mxu1 %vm1177_vm7, %v3565_v20 }
0x1b69   : > { %5504 = vmatprep.mubr.msk.f32.mxu1 %vm6083_vm0, %v6084_v1  ;;  %5698 = vmatpush3.bf16.msra.mxu1 %v5697_v63  ;;  %v4940_v26 = vld [vmem:[#allocation2 + $0x368] ss:$0 sm:$0xff] }
0x1b6a   : > { %5699 = vmatprep.subr.bf16.mxu1 %v6082_v0 }
0x1b6d   : > { %5701 = vmatpush3.bf16.msra.mxu1 %v5700_v6  ;;  %v4108_v6 = vld [vmem:[#allocation2 + $0x380] sm:$0xff] }
0x1b6e   : > { %5702 = vmatprep.subr.bf16.mxu1 %v6082_v0 }
0x1b71   : > { %5704 = vmatpush3.bf16.msra.mxu1 %v5703_v10  ;;  %v5727_v10 = vpack.c.bf16 %v4109_v7, %v4108_v6 }
0x1b72   : > { %5705 = vmatprep.subr.bf16.mxu1 %v6082_v0 }
0x1b75   : > { %5707 = vmatpush3.bf16.msra.mxu1 %v5706_v60 }
0x1b76   : > { %5708 = vmatprep.subr.bf16.mxu1 %v6082_v0 }
0x1b79   : > { %5710 = vmatpush3.bf16.msra.mxu1 %v5709_v37  ;;  %v4113_v37 = vld [vmem:[#allocation2 + $0x3a8] sm:$0xff] }
0x1b7a   : > { %5711 = vmatprep.subr.bf16.mxu1 %v6082_v0 }
0x1b7d   : > { %5713 = vmatpush3.bf16.msra.mxu1 %v5712_v43 }
0x1b7e   : > { %5726 = vmatprep.subr.bf16.mxu1 %v6082_v0 }
0x1bd6   : > { %v3730_v40 = vpop.permute.xlu0 %3729 }
0x1c3b   : > { %v6836_v52 = vpop.f32.mrb[54].mxu1 }
0x1c3c   : > { %v5474_v54 = vpop.f32.mrb[55].mxu1  ;;  %5478 = vmatmul.mubr.msk.f32.vlgmr.msra.gmra.mrb[52].mxu0 %vm3651_vm1, %v6836_v52  ;;  %v3646_v29 = vsel %vm3645_vm2, %v6836_v52, 0.0 }
0x1c3d   : > { %3647 = vadd.xlane.f32.xlu1 %v3646_v29  ;;  %5509 = vmatprep.mubr.msk.f32.mxu0 %vm6083_vm0, %v6084_v1 }
0x1cca   : > { %v3648_v23 = vpop.xlane.xlu1 %3647 }
0x1ccb   : > { %v3649_v17 = vmax.f32 %v3648_v23, 1.0  ;;  %v5733_v23 = vpack.c.bf16 %v4113_v37, %v4112_v31 }
0x1ccd   : > { %5934 = vrcp.f32 %v3649_v17 }
0x1cd7   : > { %v6849_v28 = vpop.eup %5934 }
0x1d0f   : > { %v3724_v35 = vpop.f32.mrb[52].mxu0 }
0x1d10   : > { %v3728_v21 = vmul.f32 %v6849_v28, %v3724_v35  ;;  %v5479_v24 = vpop.f32.mrb[53].mxu0 }
0x1d11   : > { %v4115_v24 = vld [vmem:[#allocation2 + $0x3b8] sm:$0xff] }
0x1d12   : > { %v3732_v34 = vsel %vm2359_vm10, %v3728_v21, %v3730_v40  ;;  %v4114_v21 = vld [vmem:[#allocation2 + $0x3b0] sm:$0xff] }
0x1d13   : > { %5505 = vmatmul.mubr.msk.f32.vlgmr.msra.gmra.mrb[56].mxu1 %vm3750_vm4, %v3732_v34  ;;  %v5736_v40 = vpack.c.bf16 %v4115_v24, %v4114_v21  ;;  %v4231_v34 = vld [vmem:[#allocation2 + $0x3d8] sm:$0x3f] }
0x1d14   : > { %5552 = vmatprep.mubr.msk.f32.mxu1 %vm6083_vm0, %v6084_v1  ;;  %5728 = vmatpush3.bf16.msra.mxu1 %v5727_v10 }
0x1d15   : > { %5729 = vmatprep.subr.bf16.mxu1 %v6082_v0 }
0x1d18   : > { %5731 = vmatpush3.bf16.msra.mxu1 %v5730_v22 }
0x1d19   : > { %5732 = vmatprep.subr.bf16.mxu1 %v6082_v0 }
0x1d1c   : > { %5734 = vmatpush3.bf16.msra.mxu1 %v5733_v23 }
0x1d1d   : > { %5735 = vmatprep.subr.bf16.mxu1 %v6082_v0 }
0x1d20   : > { %5737 = vmatpush3.bf16.msra.mxu1 %v5736_v40 }
0x1de6   : > { %v3820_v30 = vpop.f32.mrb[56].mxu1 }
0x1de7   : > { %v3821_v32 = vadd.f32 %v4934_v27, %v3820_v30  ;;  %v5506_v33 = vpop.f32.mrb[57].mxu1 }
0x1de9   : > { %v3824_v38 = vmul.f32 %v3821_v32, %v3821_v32 }
0x1deb   : > { %v3826_v39 = vsel %vm3825_vm6, %v3824_v38, 0.0 }
0x1dec   : > { %3827 = vadd.xlane.f32.xlu1 %v3826_v39  ;;  %v4946_v39 = vld [vmem:[#allocation2 + $0x3c0] ss:$0 sm:$0xff] }
0x1e79   : > { %v3828_v41 = vpop.xlane.xlu1 %3827 }
0x1e7a   : > { %v3829_v4 = vmax.f32 %v3828_v41, 1e-24 }
0x1e7c   : > { %5936 = vrsqrt.f32 %v3829_v4 }
0x1e86   : > { %v5937_v45 = vpop.eup %5936 }
0x1e87   : > { %v3831_v55 = vmul.f32 %v5937_v45, %v3821_v32 }
0x1e89   : > { %v3837_v47 = vmul.f32 %v4936_v46, %v3831_v55 }
0x1e8b   : > { %v3843_v25 = vadd.f32 %v4937_v8, %v3837_v47  ;;  %v4232_v8 = vld [vmem:[#allocation2 + $0x3e0] sm:$0x1] }
0x1e8d   : > { %v6857_v62 = vmax.f32 %v3843_v25, 0.0 }
0x1e8f   : > { %3919 = vrot.lane.b32.xlu1 %v6857_v62, %s6089_s17  ;;  %5508 = vmatpush3.msk.msra.mxu0 %vm2836_vm14, %v6857_v62 }
0x1e90   : > { %5510 = vmatmul.mubr.msk.f32.vlgmr.msra.gmra.mrb[54].mxu0 %vm3651_vm1, %v6836_v52  ;;  %5714 = vmatprep.subr.bf16.mxu0 %v6082_v0 }
0x1e91   : > { %5716 = vmatpush3.bf16.msra.mxu0 %v5715_v59  ;;  %5528 = vmatprep.mubr.msk.f32.mxu0 %vm6083_vm0, %v6084_v1 }
0x1e92   : > { %5717 = vmatprep.subr.bf16.mxu0 %v6082_v0 }
0x1e95   : > { %5719 = vmatpush3.bf16.msra.mxu0 %v5718_v18 }
0x1e96   : > { %5720 = vmatprep.subr.bf16.mxu0 %v6082_v0 }
0x1e99   : > { %5722 = vmatpush3.bf16.msra.mxu0 %v5721_v57 }
0x1e9a   : > { %5723 = vmatprep.subr.bf16.mxu0 %v6082_v0 }
0x1e9d   : > { %5725 = vmatpush3.bf16.msra.mxu0 %v5724_v42 }
0x1e9e   : > { %5531 = vmatprep.subr.mxu0 %v6084_v1 }
0x1f01   : > { %v3920_v51 = vpop.permute.xlu1 %3919 }
0x1f63   : > { %v3914_v44 = vpop.f32.mrb[54].mxu0 }
0x1f64   : > { %v3918_v50 = vmul.f32 %v6849_v28, %v3914_v44  ;;  %v5511_v56 = vpop.f32.mrb[55].mxu0 }
0x1f66   : > { %v3922_v20 = vsel %vm2541_vm12, %v3918_v50, %v3920_v51 }
0x1f67   : > { %5529 = vmatmul.mubr.msk.f32.vlgmr.msra.gmra.mrb[56].mxu0 %vm3936_vm8, %v3922_v20 }
0x1f68   : > { %5533 = vmatprep.mubr.msk.f32.mxu0 %vm6083_vm0, %v6084_v1 }
0x203a   : > { %v4006_v54 = vpop.f32.mrb[56].mxu0 }
0x203b   : > { %v4007_v29 = vadd.f32 %v4940_v26, %v4006_v54  ;;  %v5530_v36 = vpop.f32.mrb[57].mxu0 }
0x203d   : > { %v4010_v58 = vmul.f32 %v4007_v29, %v4007_v29 }
0x203f   : > { %v4011_v61 = vsel %vm3825_vm6, %v4010_v58, 0.0 }
0x2040   : > { %4012 = vadd.xlane.f32.xlu1 %v4011_v61 }
0x20cd   : > { %v4013_v63 = vpop.xlane.xlu1 %4012 }
0x20ce   : > { %v4014_v48 = vmax.f32 %v4013_v63, 1e-24 }
0x20d0   : > { %5938 = vrsqrt.f32 %v4014_v48 }
0x20da   : > { %v5939_v60 = vpop.eup %5938 }
0x20db   : > { %v4016_v3 = vmul.f32 %v5939_v60, %v4007_v29 }
0x20dd   : > { %v4022_v43 = vmul.f32 %v4942_v14, %v4016_v3 }
0x20df   : > { %v4028_v17 = vadd.f32 %v4943_v11, %v4022_v43 }
0x20e1   : > { %v4029_v35 = vmax.f32 %v4028_v17, 0.0 }
0x20e3   : > { %4104 = vrot.lane.b32.xlu0 %v4029_v35, %s6089_s17  ;;  %5532 = vmatpush3.msk.msra.mxu0 %vm2836_vm14, %v4029_v35 }
0x20e4   : > { %5534 = vmatmul.mubr.msk.f32.vlgmr.msra.gmra.mrb[58].mxu0 %vm3651_vm1, %v6836_v52  ;;  %5555 = vmatprep.subr.mxu0 %v6084_v1  ;;  %v4230_v52 = vld [vmem:[%s435_s5] sm:$0x1] }
0x20e5   : > { %5557 = vmatprep.mubr.msk.f32.mxu0 %vm6083_vm0, %v6084_v1  ;;  %5556 = vmatpush3.msk.msra.mxu0 %vm481_vm3, %v4231_v34  ;;  %vm4220_vm3 = vcmask 779264  }
0x20e8   : > { %5558 = vmatmul.mubr.msk.f32.vlgmr.msra.gmra.mrb[60].mxu0 %vm1177_vm7, %v4230_v52  ;;  %vm4320_vm7 = vcmask (!%p4952_p10), 122880  }
0x2155   : > { %v4105_v33 = vpop.permute.xlu0 %4104 }
0x2156   : > { %v4218_v19 = vsel %vm2541_vm12, %v6857_v62, %v4105_v33  ;;  %v4319_v62 = vld [vmem:[%s438_s20] sm:$0x1] (!%p4952_p10) }
0x2157   : > { %4321 = vst.msk [vmem:[%s6913_s12] sm:$0x1] (!%p4952_p10), %vm4320_vm7, %v4319_v62 }
0x21b7   : > { %v4099_v27 = vpop.f32.mrb[58].mxu0 }
0x21b8   : > { %v4103_v30 = vmul.f32 %v6849_v28, %v4099_v27  ;;  %v5535_v32 = vpop.f32.mrb[59].mxu0 }
0x21ba   : > { %v4107_v38 = vsel %vm2541_vm12, %v4103_v30, %v4105_v33 }
0x21bb   : > { %5553 = vmatmul.mubr.msk.f32.vlgmr.msra.gmra.mrb[58].mxu1 %vm3936_vm8, %v4107_v38  ;;  %v4305_v47 = vpop.f32.mrb[60].mxu0 }
0x21bc   : > { %v4306_v49 = vadd.f32 %v4305_v47, %v4232_v8  ;;  %v5559_v5 = vpop.f32.mrb[61].mxu0 }
0x21be   : > { %v4309_v25 = vmax.f32 %v4306_v49, 0.0 }
0x228e   : > { %v4190_v41 = vpop.f32.mrb[58].mxu1 }
0x228f   : > { %v4191_v4 = vadd.f32 %v4946_v39, %v4190_v41  ;;  %v5554_v45 = vpop.f32.mrb[59].mxu1 }
0x2291   : > { %v4194_v46 = vmul.f32 %v4191_v4, %v4191_v4 }
0x2293   : > { %v4195_v55 = vsel %vm3825_vm6, %v4194_v46, 0.0 }
0x2294   : > { %4196 = vadd.xlane.f32.xlu0 %v4195_v55 }
0x22aa   : > { %4311 = vrot.lane.b32.xlu0 %v4309_v25, %s6091_s16 }
0x2321   : > { %v4197_v28 = vpop.xlane.xlu0 %4196 }
0x2322   : > { %v4198_v59 = vmax.f32 %v4197_v28, 1e-24 }
0x2324   : > { %5940 = vrsqrt.f32 %v4198_v59 }
0x2325   : > { %v4312_v36 = vpop.permute.xlu0 %4311 }
0x232e   : > { %v5941_v12 = vpop.eup %5940 }
0x232f   : > { %v4200_v18 = vmul.f32 %v5941_v12, %v4191_v4 }
0x2331   : > { %v4206_v53 = vmul.f32 %v4948_v2, %v4200_v18 }
0x2333   : > { %v4212_v57 = vadd.f32 %v4949_v15, %v4206_v53 }
0x2335   : > { %v4213_v16 = vmax.f32 %v4212_v57, 0.0 }
0x2337   : > { %4215 = vrot.lane.b32.xlu1 %v4213_v16, %s6092_s29 }
0x23a9   : > { %v4216_v42 = vpop.permute.xlu1 %4215 }
0x23aa   : > { %v4219_v44 = vsel %vm3936_vm8, %v4218_v19, %v4216_v42 }
0x23ab   : > { %v4221_v50 = vsel %vm4220_vm3, %v4219_v44, 0.0 }
0x23ac   : > { %v4222_v56 = vrot.slane %v4221_v50, 4 }
0x23ae   : > { %v4223_v51 = vadd.f32 %v4222_v56, %v4221_v50 }
0x23b0   : > { %v4224_v20 = vrot.slane %v4223_v51, 2 }
0x23b2   : > { %v4225_v26 = vadd.f32 %v4224_v20, %v4223_v51 }
0x23b4   : > { %v4226_v54 = vrot.slane %v4225_v26, 1  ;;  %4318 = sbr.rel (%p4952_p10) target bundleno = 9147 (0x23bb), region = 52 }
0x23b6   : > { %v4227_v29 = vadd.f32 %v4226_v54, %v4225_v26 }
0x23b8   : > { %v4229_v58 = vmul.f32 0.5, %v4227_v29 }
0x23ba   : > { %v4314_v61 = vsel %vm3750_vm4, %v4229_v58, %v4312_v36 }
0x23bb PF: > { %5738 = vmatprep.subr.bf16.mxu0 %v6082_v0  ;;  %5756 = vmatprep.subr.bf16.mxu1 %v6082_v0  ;;  %v4323_v63 = vld [vmem:[#allocation2 + $0x3e8] sm:$0xff]  ;;  %v4324_v48 = vld [vmem:[#allocation2 + $0x3f0] sm:$0xff]  ;;  %v4412_v9 = vld [vmem:[#allocation2 + $0x458] sm:$0xff]  ;;  %v4511_v25 = vlaneseq  ;;  %s6093_s27 = smov 112   ;;  %vm4524_vm9 = vcmask 122880   ;;  %s4957_s18 = sshll.u32 %s6065_s28, 4 }
0x23bc   : > { %v4411_v6 = vld [vmem:[#allocation2 + $0x450] sm:$0xff]  ;;  %v5739_v7 = vpack.c.bf16 %v4324_v48, %v4323_v63  ;;  %5593 = vmatprep.mubr.msk.f32.mxu1 %vm6083_vm0, %v6084_v1  ;;  %v4325_v10 = vld [vmem:[#allocation2 + $0x3f8] sm:$0xff]  ;;  %5586 = vmatprep.mubr.msk.f32.mxu0 %vm6083_vm0, %v6084_v1  ;;  %v4326_v22 = vld [vmem:[#allocation2 + $0x400] sm:$0xff]  ;;  %s4626_s20 = sshll.u32 %s6913_s12, 4  ;;  %s7032_s30 = sand.u32 1, %s6053_s25   ;;  %s4627_s20 = int_to_ptr.vmem [resolvable:$true] %s4626_s20 }
0x23bd   : > { %v5757_v13 = vpack.c.bf16 %v4412_v9, %v4411_v6  ;;  %v5742_v60 = vpack.c.bf16 %v4326_v22, %v4325_v10  ;;  %v4322_v14 = vld [vmem:[%s6913_s12] sm:$0x1]  ;;  %v4327_v31 = vld [vmem:[#allocation2 + $0x408] sm:$0xff]  ;;  %v4328_v37 = vld [vmem:[#allocation2 + $0x410] sm:$0xff]  ;;  %v4512_v28 = vshrl.u32 %v4511_v25, 7  ;;  %s4611_s11 = scalar_lea.sflag [#allocation4], %s7032_s30 }
0x23be   : > { %5740 = vmatpush3.bf16.msra.mxu0 %v5739_v7  ;;  %v5745_v3 = vpack.c.bf16 %v4328_v37, %v4327_v31  ;;  %v4329_v11 = vld [vmem:[#allocation2 + $0x418] sm:$0xff]  ;;  %v4330_v43 = vld [vmem:[#allocation2 + $0x420] sm:$0xff]  ;;  %v4331_v17 = vld [vmem:[#allocation2 + $0x428] sm:$0xff]  ;;  %p7033_p0 = scmp.ne.s32.totalorder %s7022_s14, 0  ;;  %s6094_s29 = smov [#allocation5]  }
0x23bf   : > { %5758 = vmatpush3.bf16.msra.mxu1 %v5757_v13  ;;  %5741 = vmatprep.subr.bf16.mxu0 %v6082_v0  ;;  %v5748_v23 = vpack.c.bf16 %v4330_v43, %v4329_v11  ;;  %v4332_v35 = vld [vmem:[#allocation2 + $0x430] sm:$0xff]  ;;  %v4333_v24 = vld [vmem:[#allocation2 + $0x438] sm:$0xff]  ;;  %v4334_v40 = vld [vmem:[#allocation2 + $0x440] sm:$0xff]  ;;  %v4513_v2 = vsub.s32 0, %v4512_v28  ;;  %s5983_s13 = sshll.u32 %s6094_s29, 4  ;;  %s5984_s13 = int_to_ptr.vmem [resolvable:$false] %s5983_s13 }
0x23c0   : > { %5759 = vmatprep.subr.bf16.mxu1 %v6082_v0  ;;  %v5751_v21 = vpack.c.bf16 %v4332_v35, %v4331_v17  ;;  %v5754_v34 = vpack.c.bf16 %v4334_v40, %v4333_v24  ;;  %v4335_v52 = vld [vmem:[#allocation2 + $0x448] sm:$0xff]  ;;  %v4336_v41 = vld [vmem:[#allocation2 + $0x460] sm:$0x1]  ;;  %v4526_v59 = vld [vmem:[#allocation2 + $0x470] sm:$0xff]  ;;  %s5985_s10 = scalar_lea.vmem %s5984_s13, 32  ;;  %p5986_p6 = scmp.lt.s32.totalorder %s4627_s20, %s5984_s13 }
0x23c1   : > { %v4413_v27 = vld [vmem:[#allocation2 + $0x468] sm:$0x1]  ;;  %v4527_v12 = vld [vmem:[#allocation2 + $0x478] sm:$0xff]  ;;  %v4514_v53 = vrot.slane %v4322_v14, %v4513_v2 }
0x23c2   : > { %5594 = vmatmul.mubr.msk.f32.vlgmr.msra.gmra.mrb[60].mxu1 %vm590_vm5, %v4322_v14  ;;  %5743 = vmatpush3.bf16.msra.mxu0 %v5742_v60  ;;  %v5760_v18 = vpack.c.bf16 %v4527_v12, %v4526_v59 }
0x23c3   : > { %5744 = vmatprep.subr.bf16.mxu0 %v6082_v0  ;;  %5600 = vmatprep.mubr.msk.f32.mxu1 %vm6083_vm0, %v6084_v1  ;;  %vm4337_vm0 = vcmask 850944  }
0x23c4   : > { %5761 = vmatpush3.bf16.msra.mxu1 %v5760_v18 }
0x23c6   : > { %5746 = vmatpush3.bf16.msra.mxu0 %v5745_v3 }
0x23c7   : > { %5747 = vmatprep.subr.bf16.mxu0 %v6082_v0 }
0x23ca   : > { %5749 = vmatpush3.bf16.msra.mxu0 %v5748_v23 }
0x23cb   : > { %5750 = vmatprep.subr.bf16.mxu0 %v6082_v0 }
0x23ce   : > { %5752 = vmatpush3.bf16.msra.mxu0 %v5751_v21 }
0x23cf   : > { %5753 = vmatprep.subr.bf16.mxu0 %v6082_v0 }
0x23d2   : > { %5755 = vmatpush3.bf16.msra.mxu0 %v5754_v34 }
0x23d3   : > { %5584 = vmatprep.subr.mxu0 %v6084_v1 }
0x23d6   : > { %5585 = vmatpush3.msra.mxu0 %v4335_v52 }
0x23d7   : > { %5587 = vmatmul.mubr.msk.f32.vlgmr.msra.gmra.mrb[62].mxu0 %vm4337_vm0, %v4314_v61 }
0x2495   : > { %v4483_v30 = vpop.f32.mrb[60].mxu1 }
0x2496   : > { %v4484_v32 = vadd.f32 %v4483_v30, %v4413_v27  ;;  %v5595_v33 = vpop.f32.mrb[61].mxu1 }
0x2498   : > { %4495 = vrot.lane.b32.xlu0 %v4484_v32, %s6091_s16  ;;  %s5979_s16 = scalar_lea.vmem %s4627_s20, 16 }
0x2499   : > { %p5980_p13 = scmp.ne.s32.totalorder %s4627_s20, %s5979_s16  ;;  %p5987_p7 = scmp.lt.s32.totalorder %s5985_s10, %s5979_s16 }
0x249b   : > { %p5981_p2 = pnand %p5980_p13, %p7033_p0  ;;  %p5988_p8 = por %p5987_p7, %p5986_p6 }
0x249d   : > { %p5982_p5 = pneg %p5981_p2 }
0x249f   : > { %p5989_p11 = pnand %p5988_p8, %p5982_p5 }
0x24aa   : > { %v4407_v38 = vpop.f32.mrb[62].mxu0 }
0x24ab   : > { %v5588_v39 = vpop.f32.mrb[63].mxu0  ;;  %v4408_v4 = vadd.f32 %v4407_v38, %v4336_v41 }
0x24ad   : > { %v4487_v45 = vadd.f32 %v4484_v32, %v4408_v4 }
0x24af   : > { %v4955_v46 = vmul.f32 -1.442695, %v4487_v45 }
0x24b1   : > { %5945 = vpow2.f32 %v4955_v46 }
0x24bb   : > { %v5946_v0 = vpop.eup %5945 }
0x24bc   : > { %v4491_v55 = vadd.f32 1.0, %v5946_v0 }
0x24be   : > { %5947 = vrcp.f32 %v4491_v55 }
0x24c8   : > { %v5948_v1 = vpop.eup %5947 }
0x24c9   : > { %v4505_v16 = vsub.f32 1.0, %v5948_v1 }
0x250a   : > { %v4496_v8 = vpop.permute.xlu0 %4495 }
0x250b   : > { %v4498_v47 = vmul.f32 %v5948_v1, %v4496_v8 }
0x250d   : > { %4500 = vrot.lane.b32.xlu0 %v4498_v47, %s6089_s17 }
0x257f   : > { %v4501_v49 = vpop.permute.xlu0 %4500 }
0x2580   : > { %v4503_v5 = vadd.f32 %v4501_v49, %v4408_v4 }
0x2582   : > { %5949 = vtanh.f32 %v4503_v5 }
0x258c   : > { %v5950_v15 = vpop.eup %5949 }
0x258d   : > { %4507 = vrot.lane.b32.xlu1 %v5950_v15, %s6093_s27 }
0x2591   : > { %4515 = vrot.lane.b32.xlu1 %v4514_v53, %s6087_s22  ;;  %s6949_s22 = scalar_lea.hbm %s7010_s7, %s4957_s18 }
0x25ff   : > { %v4508_v57 = vpop.permute.xlu1 %4507 }
0x2600   : > { %v4510_v42 = vmul.f32 %v4508_v57, %v4505_v16 }
0x2603   : > { %v4516_v19 = vpop.permute.xlu1 %4515 }
0x2604   : > { %v4518_v44 = vmul.f32 %v5948_v1, %v4516_v19 }
0x2606   : > { %v4519_v50 = vadd.f32 %v4518_v44, %v4510_v42 }
0x2608   : > { %4521 = vrot.lane.b32.xlu0 %v4519_v50, %s6093_s27 }
0x267a   : > { %v4522_v56 = vpop.permute.xlu0 %4521 }
0x267b   : > { %4525 = vst.msk [vmem:[%s6913_s12] sm:$0x1] %vm4524_vm9, %v4522_v56  ;;  %5601 = vmatmul.mubr.msk.f32.vlgmr.msra.gmra.mrb[62].mxu1 %vm590_vm5, %v4522_v56 }
0x267c   : > { %5992 = shalt.err (!%p5989_p11)
}
0x267d   : > { %s5993_s28 = scalar_lea.hbm %s6949_s22, 16  ;;  %s5997_s27 = scalar_lea.hbm %s7010_s7, 32 }
0x267e   : > { %p5994_p12 = scmp.ne.s32.totalorder %s6949_s22, %s5993_s28  ;;  %p5998_p3 = scmp.lt.u32.totalorder %s6949_s22, %s7010_s7 }
0x267f   : > { %p5999_p9 = scmp.lt.u32.totalorder %s5997_s27, %s5993_s28  ;;  %p6001_p13 = scmp.lt.u32.totalorder %s5993_s28, %s6949_s22 }
0x2680   : > { %p5995_p1 = pnand %p5994_p12, %p7033_p0 }
0x2681   : > { %p6000_p10 = por %p5999_p9, %p5998_p3 }
0x2682   : > { %p5996_p4 = pneg %p5995_p1 }
0x2683   : > { %p6002_p2 = por %p6001_p13, %p6000_p10 }
0x2685   : > { %p6003_p5 = pnand %p6002_p2, %p5996_p4 }
0x2687   : > { %6006 = shalt.err (!%p6003_p5)
}
0x2688   : > { %5768 = dma.vmem_to_hbm [thread:$0]  (%p7033_p0), %s4627_s20, 16, %s6949_s22, %s4611_s11   ;;  %v4528_v51 = vld [vmem:[#allocation2 + $0x480] sm:$0x1]  ;;  %vm4601_vm5 = vcmask 16384  }
0x274e   : > { %v4597_v20 = vpop.f32.mrb[62].mxu1 }
0x274f   : > { %v4598_v26 = vadd.f32 %v4597_v20, %v4528_v51  ;;  %v5602_v54 = vpop.f32.mrb[63].mxu1 }
0x2751   : > { %4602 = vst.msk [vmem:[%s445_s21] sm:$0x1] %vm4601_vm5, %v4598_v26 }
0x2752 PF: > { %p5780_p6 = scmp.ge.s32.totalorder %s6077_s8, 2  ;;  %s4648_s16 = sand.u32 1, %s6049_s24  }
0x2753   : > { %p7034_p7 = scmp.ne.s32.totalorder %s7024_s15, 0  ;;  %s4649_s14 = scalar_lea.sflag [#allocation4], %s4648_s16 }
0x2755   : > { %p5775_p8 = pnand %p5780_p6, %p7034_p7 }
0x2757   : > { %6044 = dma.done.wait (!%p5775_p8), %s4649_s14, 16  }
0x2758   : > { %6046 = vsyncadd (!%p5775_p8), %s4649_s14, 4294967280  ;;  %s22_s8 = sadd.s32 1, %s6077_s8   ;;  %s7035_s27 = sld [smem:[#allocation8_spill]] }
0x2759   : > { %p19_p0 = scmp.ge.s32.totalorder %s22_s8, 10   ;;  %s7036_s28 = sld [smem:[#allocation9_spill]] }
0x275a   : > { %s7037_s29 = sld [smem:[#allocation10_spill]]  ;;  %s7038_s30 = sld [smem:[#allocation11_spill]] }
0x275b   : > { %s7039_s24 = smov %s6053_s25  ;;  %s7040_s25 = smov %s6057_s26 }
0x275c   : > { %s7041_s26 = smov %s6212_s19  ;;  %21 = sbr.rel (!%p19_p0) target bundleno = 8 (0x8), region = 112 }
0x2763   :  { %4653 = vsyncpa [#allocation3], 1 }
0x2764   :  { %4655 = vsyncpa [#allocation3 + $0x1], 1 }
0x2765   :  { %4656 = vsyncpa [#allocation4], 1 }
0x2766   :  { %4658 = vsyncpa [#allocation4 + $0x1], 1 }

</bundles_post_ra>
